<compile_context>
chip_gen: v7x
topology: tpu7x:2x2x1
jax: 0.10.0
libtpu: 0.0.40
codegen_flags: <defaults>
</compile_context>

<pallas_src>
import functools
import math

import jax
import jax.numpy as jnp
from jax.experimental import pallas as pl
from jax.experimental.pallas import tpu as pltpu


def _round_up(x, m):
    return ((x + m - 1) // m) * m


def _has_two_tensorcores():
    """True on chips with 2 TensorCores per chip (v7x); 'parallel' grid axes split across them."""
    try:
        kind = jax.devices()[0].device_kind.lower()
    except Exception:
        return False
    return "v7" in kind


def _select_tile_b(batch):
    """Generation-aware batch tile (multiple of 128).

    v7x (2 TCs): one contiguous half of the padded batch per core, clamped to [128, 256]
    (256 fills the 256-wide MXU in M once batch >= 512).
    v5e/v6e (1 TC): fewest possible fat steps (up to 512 rows) to cut per-grid-step overhead.
    """
    b128 = _round_up(max(batch, 1), 128)
    if _has_two_tensorcores():
        return max(128, min(256, b128 // 2))
    return min(b128, 512)


def critic_mlp_kernel(x_ref, w1_ref, b1_ref, w2_ref, b2_ref, w3_ref, b3_ref, o_ref):
    # Entire 3-layer MLP fused: matmuls on the MXU (bf16 in, f32 accumulate),
    # bias + ReLU + casts on the VPU. x arrives already cast to bf16 by the wrapper.
    x = x_ref[...]

    h1 = jnp.dot(x, w1_ref[...], preferred_element_type=jnp.float32) + b1_ref[...]
    h1 = jnp.maximum(h1, 0.0).astype(jnp.bfloat16)

    h2 = jnp.dot(h1, w2_ref[...], preferred_element_type=jnp.float32) + b2_ref[...]
    h2 = jnp.maximum(h2, 0.0).astype(jnp.bfloat16)

    out = jnp.dot(h2, w3_ref[...], preferred_element_type=jnp.float32) + b3_ref[...]
    o_ref[...] = out.astype(o_ref.dtype)


def init_critic_params(key, critic_input_size, critic_output_size,
                       fc1_units=400, fc2_units=300):
    """f32 master params mimicking PyTorch nn.Linear default init (U[-1/sqrt(fan_in), ...])."""
    ks = jax.random.split(key, 6)

    def linear(kw, kb, fan_in, fan_out):
        bound = 1.0 / math.sqrt(fan_in)
        w = jax.random.uniform(kw, (fan_in, fan_out), jnp.float32, -bound, bound)
        b = jax.random.uniform(kb, (1, fan_out), jnp.float32, -bound, bound)
        return w, b

    w1, b1 = linear(ks[0], ks[1], critic_input_size, fc1_units)
    w2, b2 = linear(ks[2], ks[3], fc1_units, fc2_units)
    w3, b3 = linear(ks[4], ks[5], fc2_units, critic_output_size)
    return {"w1": w1, "b1": b1, "w2": w2, "b2": b2, "w3": w3, "b3": b3}


def prepare_padded_params(params):
    """Pad every feature dim up to a multiple of 128 and cast weights to bf16.

    Done ONCE; the padded/cast params are kept resident across calls. Zero padding
    is numerically exact: padded inputs are zero, padded hidden units are
    relu(0+0)=0 and their outgoing weight rows are zero.
    """
    def pad2(a, rows, cols):
        return jnp.pad(a, ((0, rows - a.shape[0]), (0, cols - a.shape[1])))

    d_in, fc1 = params["w1"].shape
    fc2 = params["w2"].shape[1]
    d_out = params["w3"].shape[1]

    d_in_p = _round_up(d_in, 128)
    fc1_p = _round_up(fc1, 128)
    fc2_p = _round_up(fc2, 128)
    d_out_p = _round_up(d_out, 128)   # lane-dense output block (real value in col 0..d_out-1)

    return {
        "w1": pad2(params["w1"], d_in_p, fc1_p).astype(jnp.bfloat16),
        "b1": pad2(params["b1"], 1, fc1_p),
        "w2": pad2(params["w2"], fc1_p, fc2_p).astype(jnp.bfloat16),
        "b2": pad2(params["b2"], 1, fc2_p),
        "w3": pad2(params["w3"], fc2_p, d_out_p).astype(jnp.bfloat16),
        "b3": pad2(params["b3"], 1, d_out_p),
        "d_in": d_in,
        "d_out": d_out,
    }


@functools.partial(jax.jit, static_argnames=("d_out", "use_buffered"))
def _critic_forward_impl(state, w1, b1, w2, b2, w3, b3, *, d_out, use_buffered):
    B, d_in = state.shape
    d_in_p, fc1_p = w1.shape
    fc2_p = w2.shape[1]
    d_out_p = w3.shape[1]

    tile_b = _select_tile_b(B)
    b_pad = _round_up(max(B, tile_b), tile_b)
    num_tiles = b_pad // tile_b

    # Zero-pad batch rows / input features and cast to bf16. Under jit the cast fuses
    # into the pad (no extra HBM round-trip) and halves the per-tile x DMA.
    x = jnp.pad(state, ((0, b_pad - B), (0, d_in_p - d_in))).astype(jnp.bfloat16)

    vmem = pltpu.MemorySpace.VMEM
    batch_spec = pl.BlockSpec((tile_b, d_in_p), lambda i: (i, 0), memory_space=vmem)
    out_spec = pl.BlockSpec((tile_b, d_out_p), lambda i: (i, 0), memory_space=vmem)

    def resident(shape):
        # Constant index_map -> block DMA'd once and kept resident across grid steps.
        # Buffered(1) drops the pointless second buffer for these never-refetched blocks.
        if use_buffered:
            return pl.BlockSpec(shape, lambda i: (0, 0), memory_space=vmem,
                                pipeline_mode=pl.Buffered(1))
        return pl.BlockSpec(shape, lambda i: (0, 0), memory_space=vmem)

    out_padded = pl.pallas_call(
        critic_mlp_kernel,
        out_shape=jax.ShapeDtypeStruct((b_pad, d_out_p), jnp.float32),
        grid=(num_tiles,),
        in_specs=[
            batch_spec,
            resident((d_in_p, fc1_p)), resident((1, fc1_p)),
            resident((fc1_p, fc2_p)), resident((1, fc2_p)),
            resident((fc2_p, d_out_p)), resident((1, d_out_p)),
        ],
        out_specs=out_spec,
        compiler_params=pltpu.CompilerParams(
            dimension_semantics=("parallel",),  # batch tiles split across TCs on v7x
        ),
    )(x, w1, b1, w2, b2, w3, b3)

    # Lane-dense (tile_b, 128) output inside the kernel (unmasked vst); the real
    # width-d_out Q value is sliced out here, fused into the jitted epilogue.
    return out_padded[:B, :d_out]


_BUFFERED_OK = True  # flipped to False if this Pallas version rejects pipeline_mode=Buffered(1)


def critic_forward(state, pp):
    """state: [B, critic_input_size] f32. pp: output of prepare_padded_params."""
    global _BUFFERED_OK
    args = (state, pp["w1"], pp["b1"], pp["w2"], pp["b2"], pp["w3"], pp["b3"])
    if _BUFFERED_OK:
        try:
            return _critic_forward_impl(*args, d_out=pp["d_out"], use_buffered=True)
        except Exception:
            _BUFFERED_OK = False  # fall back to default double-buffering (still correct)
    return _critic_forward_impl(*args, d_out=pp["d_out"], use_buffered=False)


if __name__ == "__main__":
    key = jax.random.PRNGKey(0)
    k_params, k_state = jax.random.split(key)

    # MADDPG-style critic: (obs + act) for 2 agents -> scalar Q. Batch sized like a
    # replay-buffer minibatch so the MXU sees full-width LHS tiles.
    batch = 256
    critic_input_size = 52   # 2 * (24 obs + 2 act)
    critic_output_size = 1

    params = init_critic_params(k_params, critic_input_size, critic_output_size,
                                fc1_units=400, fc2_units=300)
    padded = prepare_padded_params(params)
    state = jax.random.normal(k_state, (batch, critic_input_size), jnp.float32)

    q = critic_forward(state, padded)
    q = jax.block_until_ready(q)
    assert q.shape == (batch, critic_output_size)

    # Reference 1: same bf16 weights / bf16 activations / f32 accumulation as the kernel.
    xb = jnp.pad(state, ((0, 0), (0, padded["w1"].shape[0] - critic_input_size)))
    xb = xb.astype(jnp.bfloat16)
    r1 = jnp.maximum(jnp.dot(xb, padded["w1"], preferred_element_type=jnp.float32)
                     + padded["b1"], 0.0).astype(jnp.bfloat16)
    r2 = jnp.maximum(jnp.dot(r1, padded["w2"], preferred_element_type=jnp.float32)
                     + padded["b2"], 0.0).astype(jnp.bfloat16)
    ref_bf16 = (jnp.dot(r2, padded["w3"], preferred_element_type=jnp.float32)
                + padded["b3"])[:, :critic_output_size]
    assert jnp.allclose(q, ref_bf16, atol=1e-3, rtol=1e-3)

    # Reference 2: original full-f32 PyTorch-equivalent forward (loose tolerance vs bf16 weights).
    h1 = jnp.maximum(state @ params["w1"] + params["b1"], 0.0)
    h2 = jnp.maximum(h1 @ params["w2"] + params["b2"], 0.0)
    ref_f32 = h2 @ params["w3"] + params["b3"]
    assert jnp.allclose(q, ref_f32, atol=5e-2, rtol=5e-2)

    print("KERNEL_OK")
</pallas_src>

<mosaic_0001>
module attributes {stable_mosaic.version = 11 : i64} {
  func.func @critic_mlp_kernel(%arg0: i32, %arg1: memref<256x128xbf16, #tpu.memory_space<vmem>>, %arg2: memref<128x512xbf16, #tpu.memory_space<vmem>>, %arg3: memref<1x512xf32, #tpu.memory_space<vmem>>, %arg4: memref<512x384xbf16, #tpu.memory_space<vmem>>, %arg5: memref<1x384xf32, #tpu.memory_space<vmem>>, %arg6: memref<384x128xbf16, #tpu.memory_space<vmem>>, %arg7: memref<1x128xf32, #tpu.memory_space<vmem>>, %arg8: memref<256x128xf32, #tpu.memory_space<vmem>>) attributes {dimension_semantics = [#tpu.dimension_semantics<parallel>], iteration_bounds = array<i64: 1>, scalar_prefetch = 0 : i64, scratch_operands = 0 : i64, tpu.core_type = #tpu.core_type<tc>, window_params = [{transform_indices = @transform_0, window_bounds = array<i64: 256, 128>}, {pipeline_mode = #tpu.pipeline_mode<synchronous>, transform_indices = @transform_1, window_bounds = array<i64: 128, 512>}, {pipeline_mode = #tpu.pipeline_mode<synchronous>, transform_indices = @transform_2, window_bounds = array<i64: 1, 512>}, {pipeline_mode = #tpu.pipeline_mode<synchronous>, transform_indices = @transform_3, window_bounds = array<i64: 512, 384>}, {pipeline_mode = #tpu.pipeline_mode<synchronous>, transform_indices = @transform_4, window_bounds = array<i64: 1, 384>}, {pipeline_mode = #tpu.pipeline_mode<synchronous>, transform_indices = @transform_5, window_bounds = array<i64: 384, 128>}, {pipeline_mode = #tpu.pipeline_mode<synchronous>, transform_indices = @transform_6, window_bounds = array<i64: 1, 128>}, {transform_indices = @transform_7, window_bounds = array<i64: 256, 128>}]} {
    %c0 = arith.constant 0 : index
    %c0_0 = arith.constant 0 : index
    %0 = vector.load %arg1[%c0, %c0_0] : memref<256x128xbf16, #tpu.memory_space<vmem>>, vector<256x128xbf16>
    %c0_1 = arith.constant 0 : index
    %c0_2 = arith.constant 0 : index
    %1 = vector.load %arg2[%c0_1, %c0_2] : memref<128x512xbf16, #tpu.memory_space<vmem>>, vector<128x512xbf16>
    %cst = arith.constant dense<0.000000e+00> : vector<256x512xf32>
    %2 = tpu.matmul %0, %1, %cst {dimension_numbers = #tpu.dot_dimension_numbers<[1], [0], [0], [1], [0, 0, 1, 1], [], []>} : vector<256x128xbf16>, vector<128x512xbf16>, vector<256x512xf32> -> vector<256x512xf32>
    %c0_3 = arith.constant 0 : index
    %c0_4 = arith.constant 0 : index
    %3 = vector.load %arg3[%c0_3, %c0_4] : memref<1x512xf32, #tpu.memory_space<vmem>>, vector<1x512xf32>
    %4 = vector.broadcast %3 : vector<1x512xf32> to vector<256x512xf32>
    %5 = arith.addf %2, %4 : vector<256x512xf32>
    %cst_5 = arith.constant 0.000000e+00 : f32
    %6 = vector.broadcast %cst_5 : f32 to vector<256x512xf32>
    %7 = arith.maximumf %5, %6 : vector<256x512xf32>
    %8 = arith.truncf %7 : vector<256x512xf32> to vector<256x512xbf16>
    %c0_6 = arith.constant 0 : index
    %c0_7 = arith.constant 0 : index
    %9 = vector.load %arg4[%c0_6, %c0_7] : memref<512x384xbf16, #tpu.memory_space<vmem>>, vector<512x384xbf16>
    %cst_8 = arith.constant dense<0.000000e+00> : vector<256x384xf32>
    %10 = tpu.matmul %8, %9, %cst_8 {dimension_numbers = #tpu.dot_dimension_numbers<[1], [0], [0], [1], [0, 0, 1, 1], [], []>} : vector<256x512xbf16>, vector<512x384xbf16>, vector<256x384xf32> -> vector<256x384xf32>
    %c0_9 = arith.constant 0 : index
    %c0_10 = arith.constant 0 : index
    %11 = vector.load %arg5[%c0_9, %c0_10] : memref<1x384xf32, #tpu.memory_space<vmem>>, vector<1x384xf32>
    %12 = vector.broadcast %11 : vector<1x384xf32> to vector<256x384xf32>
    %13 = arith.addf %10, %12 : vector<256x384xf32>
    %cst_11 = arith.constant 0.000000e+00 : f32
    %14 = vector.broadcast %cst_11 : f32 to vector<256x384xf32>
    %15 = arith.maximumf %13, %14 : vector<256x384xf32>
    %16 = arith.truncf %15 : vector<256x384xf32> to vector<256x384xbf16>
    %c0_12 = arith.constant 0 : index
    %c0_13 = arith.constant 0 : index
    %17 = vector.load %arg6[%c0_12, %c0_13] : memref<384x128xbf16, #tpu.memory_space<vmem>>, vector<384x128xbf16>
    %cst_14 = arith.constant dense<0.000000e+00> : vector<256x128xf32>
    %18 = tpu.matmul %16, %17, %cst_14 {dimension_numbers = #tpu.dot_dimension_numbers<[1], [0], [0], [1], [0, 0, 1, 1], [], []>} : vector<256x384xbf16>, vector<384x128xbf16>, vector<256x128xf32> -> vector<256x128xf32>
    %c0_15 = arith.constant 0 : index
    %c0_16 = arith.constant 0 : index
    %19 = vector.load %arg7[%c0_15, %c0_16] : memref<1x128xf32, #tpu.memory_space<vmem>>, vector<1x128xf32>
    %20 = vector.broadcast %19 : vector<1x128xf32> to vector<256x128xf32>
    %21 = arith.addf %18, %20 : vector<256x128xf32>
    %c0_17 = arith.constant 0 : index
    %c0_18 = arith.constant 0 : index
    %22 = vector.load %arg8[%c0_17, %c0_18] : memref<256x128xf32, #tpu.memory_space<vmem>>, vector<256x128xf32>
    tpu.vector_store %arg8[%c0_17, %c0_18], %21 {strides = array<i32>} : memref<256x128xf32, #tpu.memory_space<vmem>>, vector<256x128xf32>,
    return
  }
  func.func @transform_0(%arg0: i32) -> (i32, i32) {
    %c0_i32 = arith.constant 0 : i32
    %c0_i32_0 = arith.constant 0 : i32
    return %arg0, %c0_i32 : i32, i32
  }
  func.func @transform_1(%arg0: i32) -> (i32, i32) {
    %c0_i32 = arith.constant 0 : i32
    %c0_i32_0 = arith.constant 0 : i32
    %c0_i32_1 = arith.constant 0 : i32
    return %c0_i32, %c0_i32_0 : i32, i32
  }
  func.func @transform_2(%arg0: i32) -> (i32, i32) {
    %c0_i32 = arith.constant 0 : i32
    %c0_i32_0 = arith.constant 0 : i32
    %c0_i32_1 = arith.constant 0 : i32
    return %c0_i32, %c0_i32_0 : i32, i32
  }
  func.func @transform_3(%arg0: i32) -> (i32, i32) {
    %c0_i32 = arith.constant 0 : i32
    %c0_i32_0 = arith.constant 0 : i32
    %c0_i32_1 = arith.constant 0 : i32
    return %c0_i32, %c0_i32_0 : i32, i32
  }
  func.func @transform_4(%arg0: i32) -> (i32, i32) {
    %c0_i32 = arith.constant 0 : i32
    %c0_i32_0 = arith.constant 0 : i32
    %c0_i32_1 = arith.constant 0 : i32
    return %c0_i32, %c0_i32_0 : i32, i32
  }
  func.func @transform_5(%arg0: i32) -> (i32, i32) {
    %c0_i32 = arith.constant 0 : i32
    %c0_i32_0 = arith.constant 0 : i32
    %c0_i32_1 = arith.constant 0 : i32
    return %c0_i32, %c0_i32_0 : i32, i32
  }
  func.func @transform_6(%arg0: i32) -> (i32, i32) {
    %c0_i32 = arith.constant 0 : i32
    %c0_i32_0 = arith.constant 0 : i32
    %c0_i32_1 = arith.constant 0 : i32
    return %c0_i32, %c0_i32_0 : i32, i32
  }
  func.func @transform_7(%arg0: i32) -> (i32, i32) {
    %c0_i32 = arith.constant 0 : i32
    %c0_i32_0 = arith.constant 0 : i32
    return %arg0, %c0_i32 : i32, i32
  }
}

module attributes {stable_mosaic.version = 11 : i64} {
  func.func @critic_mlp_kernel(%arg0: i32, %arg1: memref<256x128xbf16, #tpu.memory_space<vmem>>, %arg2: memref<128x512xbf16, #tpu.memory_space<vmem>>, %arg3: memref<1x512xf32, #tpu.memory_space<vmem>>, %arg4: memref<512x384xbf16, #tpu.memory_space<vmem>>, %arg5: memref<1x384xf32, #tpu.memory_space<vmem>>, %arg6: memref<384x128xbf16, #tpu.memory_space<vmem>>, %arg7: memref<1x128xf32, #tpu.memory_space<vmem>>, %arg8: memref<256x128xf32, #tpu.memory_space<vmem>>) attributes {dimension_semantics = [#tpu.dimension_semantics<parallel>], iteration_bounds = array<i64: 1>, scalar_prefetch = 0 : i64, scratch_operands = 0 : i64, tpu.core_type = #tpu.core_type<tc>, window_params = [{transform_indices = @transform_0, window_bounds = array<i64: 256, 128>}, {pipeline_mode = #tpu.pipeline_mode<synchronous>, transform_indices = @transform_1, window_bounds = array<i64: 128, 512>}, {pipeline_mode = #tpu.pipeline_mode<synchronous>, transform_indices = @transform_2, window_bounds = array<i64: 1, 512>}, {pipeline_mode = #tpu.pipeline_mode<synchronous>, transform_indices = @transform_3, window_bounds = array<i64: 512, 384>}, {pipeline_mode = #tpu.pipeline_mode<synchronous>, transform_indices = @transform_4, window_bounds = array<i64: 1, 384>}, {pipeline_mode = #tpu.pipeline_mode<synchronous>, transform_indices = @transform_5, window_bounds = array<i64: 384, 128>}, {pipeline_mode = #tpu.pipeline_mode<synchronous>, transform_indices = @transform_6, window_bounds = array<i64: 1, 128>}, {transform_indices = @transform_7, window_bounds = array<i64: 256, 128>}]} {
    %c0 = arith.constant 0 : index
    %c0_0 = arith.constant 0 : index
    %0 = vector.load %arg1[%c0, %c0_0] : memref<256x128xbf16, #tpu.memory_space<vmem>>, vector<256x128xbf16>
    %c0_1 = arith.constant 0 : index
    %c0_2 = arith.constant 0 : index
    %1 = vector.load %arg2[%c0_1, %c0_2] : memref<128x512xbf16, #tpu.memory_space<vmem>>, vector<128x512xbf16>
    %cst = arith.constant dense<0.000000e+00> : vector<256x512xf32>
    %2 = tpu.matmul %0, %1, %cst {dimension_numbers = #tpu.dot_dimension_numbers<[1], [0], [0], [1], [0, 0, 1, 1], [], []>} : vector<256x128xbf16>, vector<128x512xbf16>, vector<256x512xf32> -> vector<256x512xf32>
    %c0_3 = arith.constant 0 : index
    %c0_4 = arith.constant 0 : index
    %3 = vector.load %arg3[%c0_3, %c0_4] : memref<1x512xf32, #tpu.memory_space<vmem>>, vector<1x512xf32>
    %4 = vector.broadcast %3 : vector<1x512xf32> to vector<256x512xf32>
    %5 = arith.addf %2, %4 : vector<256x512xf32>
    %cst_5 = arith.constant 0.000000e+00 : f32
    %6 = vector.broadcast %cst_5 : f32 to vector<256x512xf32>
    %7 = arith.maximumf %5, %6 : vector<256x512xf32>
    %8 = arith.truncf %7 : vector<256x512xf32> to vector<256x512xbf16>
    %c0_6 = arith.constant 0 : index
    %c0_7 = arith.constant 0 : index
    %9 = vector.load %arg4[%c0_6, %c0_7] : memref<512x384xbf16, #tpu.memory_space<vmem>>, vector<512x384xbf16>
    %cst_8 = arith.constant dense<0.000000e+00> : vector<256x384xf32>
    %10 = tpu.matmul %8, %9, %cst_8 {dimension_numbers = #tpu.dot_dimension_numbers<[1], [0], [0], [1], [0, 0, 1, 1], [], []>} : vector<256x512xbf16>, vector<512x384xbf16>, vector<256x384xf32> -> vector<256x384xf32>
    %c0_9 = arith.constant 0 : index
    %c0_10 = arith.constant 0 : index
    %11 = vector.load %arg5[%c0_9, %c0_10] : memref<1x384xf32, #tpu.memory_space<vmem>>, vector<1x384xf32>
    %12 = vector.broadcast %11 : vector<1x384xf32> to vector<256x384xf32>
    %13 = arith.addf %10, %12 : vector<256x384xf32>
    %cst_11 = arith.constant 0.000000e+00 : f32
    %14 = vector.broadcast %cst_11 : f32 to vector<256x384xf32>
    %15 = arith.maximumf %13, %14 : vector<256x384xf32>
    %16 = arith.truncf %15 : vector<256x384xf32> to vector<256x384xbf16>
    %c0_12 = arith.constant 0 : index
    %c0_13 = arith.constant 0 : index
    %17 = vector.load %arg6[%c0_12, %c0_13] : memref<384x128xbf16, #tpu.memory_space<vmem>>, vector<384x128xbf16>
    %cst_14 = arith.constant dense<0.000000e+00> : vector<256x128xf32>
    %18 = tpu.matmul %16, %17, %cst_14 {dimension_numbers = #tpu.dot_dimension_numbers<[1], [0], [0], [1], [0, 0, 1, 1], [], []>} : vector<256x384xbf16>, vector<384x128xbf16>, vector<256x128xf32> -> vector<256x128xf32>
    %c0_15 = arith.constant 0 : index
    %c0_16 = arith.constant 0 : index
    %19 = vector.load %arg7[%c0_15, %c0_16] : memref<1x128xf32, #tpu.memory_space<vmem>>, vector<1x128xf32>
    %20 = vector.broadcast %19 : vector<1x128xf32> to vector<256x128xf32>
    %21 = arith.addf %18, %20 : vector<256x128xf32>
    %c0_17 = arith.constant 0 : index
    %c0_18 = arith.constant 0 : index
    %22 = vector.load %arg8[%c0_17, %c0_18] : memref<256x128xf32, #tpu.memory_space<vmem>>, vector<256x128xf32>
    tpu.vector_store %arg8[%c0_17, %c0_18], %21 {strides = array<i32>} : memref<256x128xf32, #tpu.memory_space<vmem>>, vector<256x128xf32>,
    return
  }
  func.func @transform_0(%arg0: i32) -> (i32, i32) {
    %c0_i32 = arith.constant 0 : i32
    %c0_i32_0 = arith.constant 0 : i32
    return %arg0, %c0_i32 : i32, i32
  }
  func.func @transform_1(%arg0: i32) -> (i32, i32) {
    %c0_i32 = arith.constant 0 : i32
    %c0_i32_0 = arith.constant 0 : i32
    %c0_i32_1 = arith.constant 0 : i32
    return %c0_i32, %c0_i32_0 : i32, i32
  }
  func.func @transform_2(%arg0: i32) -> (i32, i32) {
    %c0_i32 = arith.constant 0 : i32
    %c0_i32_0 = arith.constant 0 : i32
    %c0_i32_1 = arith.constant 0 : i32
    return %c0_i32, %c0_i32_0 : i32, i32
  }
  func.func @transform_3(%arg0: i32) -> (i32, i32) {
    %c0_i32 = arith.constant 0 : i32
    %c0_i32_0 = arith.constant 0 : i32
    %c0_i32_1 = arith.constant 0 : i32
    return %c0_i32, %c0_i32_0 : i32, i32
  }
  func.func @transform_4(%arg0: i32) -> (i32, i32) {
    %c0_i32 = arith.constant 0 : i32
    %c0_i32_0 = arith.constant 0 : i32
    %c0_i32_1 = arith.constant 0 : i32
    return %c0_i32, %c0_i32_0 : i32, i32
  }
  func.func @transform_5(%arg0: i32) -> (i32, i32) {
    %c0_i32 = arith.constant 0 : i32
    %c0_i32_0 = arith.constant 0 : i32
    %c0_i32_1 = arith.constant 0 : i32
    return %c0_i32, %c0_i32_0 : i32, i32
  }
  func.func @transform_6(%arg0: i32) -> (i32, i32) {
    %c0_i32 = arith.constant 0 : i32
    %c0_i32_0 = arith.constant 0 : i32
    %c0_i32_1 = arith.constant 0 : i32
    return %c0_i32, %c0_i32_0 : i32, i32
  }
  func.func @transform_7(%arg0: i32) -> (i32, i32) {
    %c0_i32 = arith.constant 0 : i32
    %c0_i32_0 = arith.constant 0 : i32
    return %arg0, %c0_i32 : i32, i32
  }
}

</mosaic_0001>

<bundles_post_ra>
// kernel: _critic_forward_impl.1
= control target key start
LH: loop header
LB: loop body
LE: loop exit
PB: predicated region body
PF: predicated region fallthrough
CT: control target
= control target key end

     0   :  { %12 = vsyncpa [#allocation3], 0  ;;  %s3993_s24 = smov [#allocation2]   ;;  %s4998_s0 = inlined_call_operand.vmem [shape: bf16[256,128], index: 0, kind: input, shape index: {}]   ;;  %s4999_s1 = inlined_call_operand.vmem [shape: bf16[128,512], index: 1, kind: input, shape index: {}]   ;;  %s5000_s2 = inlined_call_operand.vmem [shape: f32[1,512], index: 2, kind: input, shape index: {}]   ;;  %s5001_s3 = inlined_call_operand.hbm [shape: bf16[512,384], index: 3, kind: input, shape index: {}]   ;;  %s5002_s4 = inlined_call_operand.vmem [shape: f32[1,384], index: 4, kind: input, shape index: {}]   ;;  %s5003_s5 = inlined_call_operand.vmem [shape: bf16[384,128], index: 5, kind: input, shape index: {}]   ;;  %s5004_s6 = inlined_call_operand.vmem [shape: f32[1,128], index: 6, kind: input, shape index: {}]   ;;  %s5005_s7 = inlined_call_operand.vmem [shape: f32[256,128], index: 7, kind: output, shape index: {}]  }
   0x1   :  { %s24_s25 = sshll.u32 %s3993_s24, 4  ;;  %s3969_s28 = scalar_lea.hbm %s5001_s3, 12288  ;;  %s25_s25 = int_to_ptr.vmem [resolvable:$true] %s24_s25 }
   0x2   :  { %p3970_p0 = scmp.ne.s32.totalorder %s5001_s3, %s3969_s28  ;;  %p3973_p1 = scmp.lt.u32.totalorder %s3969_s28, %s5001_s3 }
   0x4   :  { %p3975_p2 = pnand %p3973_p1, %p3970_p0 }
   0x6   :  { %3978 = shalt.err (!%p3975_p2)
}
   0x7   :  { %s3979_s10 = scalar_lea.vmem %s25_s25, 12288  ;;  %p3984_p4 = scmp.lt.s32.totalorder %s25_s25, %s25_s25 }
   0x8   :  { %p3980_p3 = scmp.ne.s32.totalorder %s25_s25, %s3979_s10  ;;  %p3985_p5 = scmp.lt.s32.totalorder %s3979_s10, %s3979_s10 }
   0xa   :  { %p3986_p6 = por %p3985_p5, %p3984_p4 }
   0xc   :  { %p3987_p7 = pnand %p3986_p6, %p3980_p3 }
   0xe   :  { %3990 = shalt.err (!%p3987_p7)
}
   0xf   :  { %s3994_s11 = smov 192   ;;  %s3995_s12 = smov 12  }
  0x10   :  { %30 = dma.hbm_to_vmem [thread:$0]  %s5001_s3, 12288, %s25_s25, [#allocation3], %s3994_s11, %s3994_s11, %s3995_s12  }
  0x11   :  { %3991 = dma.done.wait [#allocation3], 12288  }
  0x12   :  { %3992 = vsyncadd [#allocation3], 4294955008  ;;  %v3996_v0 = vmov 0   ;;  %v3753_v1 = vld [vmem:[%s4999_s1 + $0x4] ss:$16 sps:$4 sm:$0xff]   ;;  %v4131_v24 = vld [vmem:[%s4998_s0 + $0x8] sm:$0xff]  }
  0x13   :  { %415 = vmatprep.mubr.bf16.mxu0 %v3996_v0  ;;  %535 = vmatprep.mubr.bf16.mxu1 %v3996_v0  ;;  %v3755_v2 = vld [vmem:[%s4999_s1] ss:$16 sps:$4 sm:$0xff]   ;;  %v3756_v3 = vld [vmem:[%s4999_s1 + $0x24] ss:$16 sps:$4 sm:$0xff]   ;;  %v3788_v17 = vld [vmem:[%s4999_s1 + $0xc] ss:$16 sps:$4 sm:$0xff]  }
  0x14   :  { %383 = vmatprep.subr.bf16.mxu0 %v3753_v1  ;;  %3605 = vmatprep.subr.bf16.mxu1 %v3753_v1  ;;  %v3758_v4 = vld [vmem:[%s4999_s1 + $0x20] ss:$16 sps:$4 sm:$0xff]   ;;  %v3759_v5 = vld [vmem:[%s4999_s1 + $0x44] ss:$16 sps:$4 sm:$0xff]   ;;  %v3786_v20 = vld [vmem:[%s4999_s1 + $0x8] ss:$16 sps:$4 sm:$0xff]  }
  0x15   :  { %384 = vmatpush1.bf16.msra.mxu0 %v3755_v2  ;;  %3613 = vmatpush1.bf16.msra.mxu1 %v3755_v2  ;;  %v3761_v6 = vld [vmem:[%s4999_s1 + $0x40] ss:$16 sps:$4 sm:$0xff]   ;;  %v3762_v7 = vld [vmem:[%s4999_s1 + $0x64] ss:$16 sps:$4 sm:$0xff]   ;;  %v3792_v21 = vld [vmem:[%s4999_s1 + $0x2c] ss:$16 sps:$4 sm:$0xff]  }
  0x16   :  { %385 = vmatprep.subr.bf16.mxu0 %v3756_v3  ;;  %3606 = vmatprep.subr.bf16.mxu1 %v3756_v3  ;;  %v3764_v8 = vld [vmem:[%s4999_s1 + $0x60] ss:$16 sps:$4 sm:$0xff]   ;;  %v3765_v9 = vld [vmem:[%s4999_s1 + $0x84] ss:$16 sps:$4 sm:$0xff]   ;;  %v3790_v22 = vld [vmem:[%s4999_s1 + $0x28] ss:$16 sps:$4 sm:$0xff]  }
  0x17   :  { %v3767_v10 = vld [vmem:[%s4999_s1 + $0x80] ss:$16 sps:$4 sm:$0xff]   ;;  %v3768_v11 = vld [vmem:[%s4999_s1 + $0xa4] ss:$16 sps:$4 sm:$0xff]   ;;  %v3796_v23 = vld [vmem:[%s4999_s1 + $0x4c] ss:$16 sps:$4 sm:$0xff]  }
  0x18   :  { %v3770_v12 = vld [vmem:[%s4999_s1 + $0xa0] ss:$16 sps:$4 sm:$0xff]   ;;  %v3771_v13 = vld [vmem:[%s4999_s1 + $0xc4] ss:$16 sps:$4 sm:$0xff]   ;;  %v4136_v25 = vld [vmem:[%s4998_s0 + $0x68] sm:$0xff]  }
  0x19   :  { %386 = vmatpush1.bf16.msra.mxu0 %v3758_v4  ;;  %3614 = vmatpush1.bf16.msra.mxu1 %v3758_v4  ;;  %v3773_v14 = vld [vmem:[%s4999_s1 + $0xc0] ss:$16 sps:$4 sm:$0xff]   ;;  %v3774_v15 = vld [vmem:[%s4999_s1 + $0xe4] ss:$16 sps:$4 sm:$0xff]   ;;  %v3794_v26 = vld [vmem:[%s4999_s1 + $0x48] ss:$16 sps:$4 sm:$0xff]  }
  0x1a   :  { %387 = vmatprep.subr.bf16.mxu0 %v3759_v5  ;;  %3607 = vmatprep.subr.bf16.mxu1 %v3759_v5  ;;  %v3776_v16 = vld [vmem:[%s4999_s1 + $0xe0] ss:$16 sps:$4 sm:$0xff]   ;;  %v3800_v27 = vld [vmem:[%s4999_s1 + $0x6c] ss:$16 sps:$4 sm:$0xff]   ;;  %v3798_v30 = vld [vmem:[%s4999_s1 + $0x68] ss:$16 sps:$4 sm:$0xff]  }
  0x1b   :  { %v4105_v18 = vld [vmem:[%s4998_s0] sm:$0xff]   ;;  %v3804_v31 = vld [vmem:[%s4999_s1 + $0x8c] ss:$16 sps:$4 sm:$0xff]   ;;  %v4157_v32 = vld [vmem:[%s4998_s0 + $0x10] sm:$0xff]  }
  0x1c   :  { %v4110_v19 = vld [vmem:[%s4998_s0 + $0x60] sm:$0xff]   ;;  %v3828_v33 = vld [vmem:[#allocation2 + $0x1c] ss:$12 sps:$4 sm:$0xff]   ;;  %v4162_v34 = vld [vmem:[%s4998_s0 + $0x70] sm:$0xff]  }
  0x1d   :  { %388 = vmatpush1.bf16.msra.mxu0 %v3761_v6  ;;  %3615 = vmatpush1.bf16.msra.mxu1 %v3761_v6  ;;  %v3821_v28 = vld [vmem:[#allocation2] ss:$12 sps:$4 sm:$0xff]   ;;  %v3823_v29 = vld [vmem:[#allocation2 + $0x4] ss:$12 sps:$4 sm:$0xff]   ;;  %v3802_v35 = vld [vmem:[%s4999_s1 + $0x88] ss:$16 sps:$4 sm:$0xff]  }
  0x1e   :  { %389 = vmatprep.subr.bf16.mxu0 %v3762_v7  ;;  %3608 = vmatprep.subr.bf16.mxu1 %v3762_v7  ;;  %v3808_v36 = vld [vmem:[%s4999_s1 + $0xac] ss:$16 sps:$4 sm:$0xff]   ;;  %v3826_v37 = vld [vmem:[#allocation2 + $0x18] ss:$12 sps:$4 sm:$0xff]   ;;  %v3831_v38 = vld [vmem:[#allocation2 + $0x34] ss:$12 sps:$4 sm:$0xff]  }
  0x1f   :  { %v3806_v39 = vld [vmem:[%s4999_s1 + $0xa8] ss:$16 sps:$4 sm:$0xff]   ;;  %v3812_v41 = vld [vmem:[%s4999_s1 + $0xcc] ss:$16 sps:$4 sm:$0xff]   ;;  %v3839_v49 = vld [vmem:[#allocation2 + $0x64] ss:$12 sps:$4 sm:$0xff]  }
  0x20   :  { %v4179_v40 = vld [vmem:[%s4998_s0 + $0x18] sm:$0xff]   ;;  %v3832_v48 = vld [vmem:[#allocation2 + $0x48] ss:$12 sps:$4 sm:$0xff]   ;;  %v4206_v51 = vld [vmem:[%s4998_s0 + $0x20] sm:$0xff]  }
  0x21   :  { %390 = vmatpush1.bf16.msra.mxu0 %v3764_v8  ;;  %3616 = vmatpush1.bf16.msra.mxu1 %v3764_v8  ;;  %v3829_v42 = vld [vmem:[#allocation2 + $0x30] ss:$12 sps:$4 sm:$0xff]   ;;  %v3810_v44 = vld [vmem:[%s4999_s1 + $0xc8] ss:$16 sps:$4 sm:$0xff]   ;;  %v3819_v53 = vld [vmem:[#allocation2 + $0xe0] ss:$12 sps:$4 sm:$0xff]  }
  0x22   :  { %391 = vmatprep.subr.bf16.mxu0 %v3765_v9  ;;  %3609 = vmatprep.subr.bf16.mxu1 %v3765_v9  ;;  %v4188_v43 = vld [vmem:[%s4998_s0 + $0x78] sm:$0xff]   ;;  %v3817_v50 = vld [vmem:[#allocation2 + $0xc8] ss:$12 sps:$4 sm:$0xff]   ;;  %v3837_v54 = vld [vmem:[#allocation2 + $0x60] ss:$12 sps:$4 sm:$0xff]  }
  0x23   :  { %v3816_v45 = vld [vmem:[%s4999_s1 + $0xec] ss:$16 sps:$4 sm:$0xff]   ;;  %v3814_v46 = vld [vmem:[%s4999_s1 + $0xe8] ss:$16 sps:$4 sm:$0xff]   ;;  %v3846_v62 = vld [vmem:[#allocation2 + $0x94] ss:$12 sps:$4 sm:$0xff]  }
  0x24   :  { %v3834_v47 = vld [vmem:[#allocation2 + $0x4c] ss:$12 sps:$4 sm:$0xff]   ;;  %v3818_v52 = vld [vmem:[#allocation2 + $0x8] ss:$12 sps:$4 sm:$0xff]   ;;  %v3835_v61 = vld [vmem:[#allocation2 + $0x110] ss:$12 sps:$4 sm:$0xff]  }
  0x25   :  { %392 = vmatpush1.bf16.msra.mxu0 %v3767_v10  ;;  %3617 = vmatpush1.bf16.msra.mxu1 %v3767_v10  ;;  %v3842_v55 = vld [vmem:[#allocation2 + $0x7c] ss:$12 sps:$4 sm:$0xff]   ;;  %v3820_v56 = vld [vmem:[#allocation2 + $0x20] ss:$12 sps:$4 sm:$0xff]   ;;  %v3824_v57 = vld [vmem:[#allocation2 + $0xf8] ss:$12 sps:$4 sm:$0xff]  }
  0x26   :  { %393 = vmatprep.subr.bf16.mxu0 %v3768_v11  ;;  %3610 = vmatprep.subr.bf16.mxu1 %v3768_v11  ;;  %v4215_v58 = vld [vmem:[%s4998_s0 + $0x28] sm:$0xff]   ;;  %v3840_v59 = vld [vmem:[#allocation2 + $0x78] ss:$12 sps:$4 sm:$0xff]   ;;  %v3844_v63 = vld [vmem:[#allocation2 + $0x90] ss:$12 sps:$4 sm:$0xff]  }
  0x27   :  { %v3825_v60 = vld [vmem:[#allocation2 + $0x38] ss:$12 sps:$4 sm:$0xff]   ;;  %v3836_v2 = vld [vmem:[#allocation2 + $0x50] ss:$12 sps:$4 sm:$0xff]   ;;  %v3843_v3 = vld [vmem:[#allocation2 + $0x128] ss:$12 sps:$4 sm:$0xff]  }
  0x28   :  { %v3850_v1 = vld [vmem:[#allocation2 + $0xac] ss:$12 sps:$4 sm:$0xff]   ;;  %v3848_v4 = vld [vmem:[#allocation2 + $0xa8] ss:$12 sps:$4 sm:$0xff]   ;;  %v3853_v7 = vld [vmem:[#allocation2 + $0xc4] ss:$12 sps:$4 sm:$0xff]  }
  0x29   :  { %394 = vmatpush1.bf16.msra.mxu0 %v3770_v12  ;;  %3618 = vmatpush1.bf16.msra.mxu1 %v3770_v12  ;;  %v4224_v5 = vld [vmem:[%s4998_s0 + $0x30] sm:$0xff]   ;;  %v3851_v8 = vld [vmem:[#allocation2 + $0xc0] ss:$12 sps:$4 sm:$0xff]   ;;  %v3858_v10 = vld [vmem:[#allocation2 + $0xdc] ss:$12 sps:$4 sm:$0xff]  }
  0x2a   :  { %395 = vmatprep.subr.bf16.mxu0 %v3771_v13  ;;  %3611 = vmatprep.subr.bf16.mxu1 %v3771_v13  ;;  %v3847_v6 = vld [vmem:[#allocation2 + $0x68] ss:$12 sps:$4 sm:$0xff]   ;;  %v3854_v9 = vld [vmem:[#allocation2 + $0x140] ss:$12 sps:$4 sm:$0xff]   ;;  %v3856_v12 = vld [vmem:[#allocation2 + $0xd8] ss:$12 sps:$4 sm:$0xff]  }
  0x2b   :  { %v3855_v11 = vld [vmem:[#allocation2 + $0x80] ss:$12 sps:$4 sm:$0xff]   ;;  %v3865_v13 = vld [vmem:[#allocation2 + $0x158] ss:$12 sps:$4 sm:$0xff]  }
  0x2d   :  { %396 = vmatpush1.bf16.msra.mxu0 %v3773_v14  ;;  %3619 = vmatpush1.bf16.msra.mxu1 %v3773_v14  ;;  %v3784_v14 = vld [vmem:[%s4998_s0 + $0x38] sm:$0xff]  }
  0x2e   :  { %397 = vmatprep.subr.bf16.mxu0 %v3774_v15  ;;  %3612 = vmatprep.subr.bf16.mxu1 %v3774_v15  ;;  %v3861_v15 = vld [vmem:[#allocation2 + $0xf4] ss:$12 sps:$4 sm:$0xff]  }
  0x31   :  { %398 = vmatpush1.bf16.msra.mxu0 %v3776_v16  ;;  %3620 = vmatpush1.bf16.msra.mxu1 %v3776_v16  ;;  %v3866_v16 = vld [vmem:[#allocation2 + $0x98] ss:$12 sps:$4 sm:$0xff]  }
  0x32   :  { %576 = vmatprep.subr.bf16.mxu1 %v3788_v17  ;;  %1618 = vmatprep.subr.bf16.mxu0 %v3823_v29  ;;  %v3859_v17 = vld [vmem:[#allocation2 + $0xf0] ss:$12 sps:$4 sm:$0xff]   ;;  %v3797_v29 = vld [vmem:[%s4998_s0 + $0x48] sm:$0xff]  }
  0x34   :  { %416 = vmatmul.mubr.bf16.vlgmr.msra.gmra.mrb[0].mxu0 %v4105_v18  ;;  %536 = vmatmul.mubr.bf16.vlgmr.msra.gmra.mrb[0].mxu1 %v4110_v19 }
  0x35   :  { %425 = vmatprep.mubr.bf16.mxu0 %v3996_v0  ;;  %577 = vmatpush1.bf16.msra.mxu1 %v3786_v20  ;;  %v3864_v20 = vld [vmem:[#allocation2 + $0x10c] ss:$12 sps:$4 sm:$0xff]  }
  0x36   :  { %578 = vmatprep.subr.bf16.mxu1 %v3792_v21  ;;  %545 = vmatprep.mubr.bf16.mxu1 %v3996_v0  ;;  %v3877_v21 = vld [vmem:[#allocation2 + $0xb0] ss:$12 sps:$4 sm:$0xff]  }
  0x37   :  { %1619 = vmatpush1.bf16.msra.mxu0 %v3821_v28  ;;  %v3870_v28 = vld [vmem:[#allocation2 + $0x138] ss:$12 sps:$4 sm:$0xff]  }
  0x38   :  { %1620 = vmatprep.subr.bf16.mxu0 %v3828_v33  ;;  %v3813_v33 = vld [vmem:[%s4998_s0 + $0x58] sm:$0xff]  }
  0x39   :  { %579 = vmatpush1.bf16.msra.mxu1 %v3790_v22  ;;  %v3862_v22 = vld [vmem:[#allocation2 + $0x108] ss:$12 sps:$4 sm:$0xff]  }
  0x3a   :  { %580 = vmatprep.subr.bf16.mxu1 %v3796_v23  ;;  %v3789_v23 = vld [vmem:[%s4998_s0 + $0x40] sm:$0xff]  }
  0x3b   :  { %1621 = vmatpush1.bf16.msra.mxu0 %v3826_v37  ;;  %v3883_v37 = vld [vmem:[#allocation2 + $0x184] ss:$12 sps:$4 sm:$0xff]  }
  0x3c   :  { %426 = vmatmul.mubr.bf16.gmra.mrb[4].mxu0 %v4131_v24  ;;  %546 = vmatmul.mubr.bf16.gmra.mrb[4].mxu1 %v4136_v25 }
  0x3d   :  { %435 = vmatprep.mubr.bf16.mxu0 %v3996_v0  ;;  %581 = vmatpush1.bf16.msra.mxu1 %v3794_v26  ;;  %v3867_v26 = vld [vmem:[#allocation2 + $0x120] ss:$12 sps:$4 sm:$0xff]  }
  0x3e   :  { %582 = vmatprep.subr.bf16.mxu1 %v3800_v27  ;;  %555 = vmatprep.mubr.bf16.mxu1 %v3996_v0  ;;  %v3872_v27 = vld [vmem:[#allocation2 + $0x13c] ss:$12 sps:$4 sm:$0xff]  }
  0x3f   :  { %1622 = vmatprep.subr.bf16.mxu0 %v3831_v38  ;;  %v3884_v38 = vld [vmem:[#allocation2 + $0x248] ss:$12 sps:$4 sm:$0xff]  }
  0x40   :  { %1623 = vmatpush1.bf16.msra.mxu0 %v3829_v42 }
  0x41   :  { %583 = vmatpush1.bf16.msra.mxu1 %v3798_v30  ;;  %1624 = vmatprep.subr.bf16.mxu0 %v3834_v47  ;;  %v3876_v30 = vld [vmem:[#allocation2 + $0x154] ss:$12 sps:$4 sm:$0xff]  }
  0x42   :  { %584 = vmatprep.subr.bf16.mxu1 %v3804_v31  ;;  %v3874_v31 = vld [vmem:[#allocation2 + $0x150] ss:$12 sps:$4 sm:$0xff]  }
  0x44   :  { %436 = vmatmul.mubr.bf16.gmra.mrb[8].mxu0 %v4157_v32  ;;  %556 = vmatmul.mubr.bf16.gmra.mrb[8].mxu1 %v4162_v34 }
  0x45   :  { %445 = vmatprep.mubr.bf16.mxu0 %v3996_v0  ;;  %585 = vmatpush1.bf16.msra.mxu1 %v3802_v35  ;;  %v3880_v35 = vld [vmem:[#allocation2 + $0x16c] ss:$12 sps:$4 sm:$0xff]  }
  0x46   :  { %586 = vmatprep.subr.bf16.mxu1 %v3808_v36  ;;  %565 = vmatprep.mubr.bf16.mxu1 %v3996_v0  ;;  %v3878_v36 = vld [vmem:[#allocation2 + $0x168] ss:$12 sps:$4 sm:$0xff]  }
  0x47   :  { %1625 = vmatpush1.bf16.msra.mxu0 %v3832_v48 }
  0x48   :  { %1626 = vmatprep.subr.bf16.mxu0 %v3839_v49 }
  0x49   :  { %587 = vmatpush1.bf16.msra.mxu1 %v3806_v39  ;;  %v107_v39 = vlaneseq }
  0x4a   :  { %588 = vmatprep.subr.bf16.mxu1 %v3812_v41 }
  0x4b   :  { %1627 = vmatpush1.bf16.msra.mxu0 %v3837_v54 }
  0x4c   :  { %446 = vmatmul.mubr.bf16.gmra.mrb[12].mxu0 %v4179_v40  ;;  %566 = vmatmul.mubr.bf16.gmra.mrb[12].mxu1 %v4188_v43 }
  0x4d   :  { %455 = vmatprep.mubr.bf16.mxu0 %v3996_v0  ;;  %589 = vmatpush1.bf16.msra.mxu1 %v3810_v44 }
  0x4e   :  { %590 = vmatprep.subr.bf16.mxu1 %v3816_v45  ;;  %608 = vmatprep.mubr.bf16.mxu1 %v3996_v0 }
  0x4f   :  { %1628 = vmatprep.subr.bf16.mxu0 %v3842_v55 }
  0x50   :  { %1629 = vmatpush1.bf16.msra.mxu0 %v3840_v59 }
  0x51   :  { %591 = vmatpush1.bf16.msra.mxu1 %v3814_v46  ;;  %1630 = vmatprep.subr.bf16.mxu0 %v3846_v62 }
  0x52   :  { %3197 = vmatprep.subr.bf16.mxu1 %v3817_v50 }
  0x54   :  { %456 = vmatmul.mubr.bf16.gmra.mrb[16].mxu0 %v4206_v51  ;;  %609 = vmatmul.mubr.bf16.vlgmr.msra.gmra.mrb[16].mxu1 %v4105_v18  ;;  %v3873_v18 = vld [vmem:[#allocation2 + $0x170] ss:$12 sps:$4 sm:$0xff]  }
  0x55   :  { %465 = vmatprep.mubr.bf16.mxu0 %v3996_v0  ;;  %3198 = vmatpush3.bf16.msra.mxu1 %v3818_v52 }
  0x56   :  { %618 = vmatprep.mubr.bf16.mxu1 %v3996_v0  ;;  %3199 = vmatprep.subr.bf16.mxu1 %v3819_v53 }
  0x57   :  { %1631 = vmatpush1.bf16.msra.mxu0 %v3844_v63 }
  0x58   :  { %1632 = vmatprep.subr.bf16.mxu0 %v3850_v1 }
  0x59   :  { %3200 = vmatpush3.bf16.msra.mxu1 %v3820_v56 }
  0x5a   :  { %3201 = vmatprep.subr.bf16.mxu1 %v3824_v57 }
  0x5b   :  { %1633 = vmatpush1.bf16.msra.mxu0 %v3848_v4 }
  0x5c   :  { %466 = vmatmul.mubr.bf16.gmra.mrb[20].mxu0 %v4215_v58  ;;  %619 = vmatmul.mubr.bf16.gmra.mrb[20].mxu1 %v4131_v24  ;;  %v3869_v24 = vld [vmem:[#allocation2 + $0x124] ss:$12 sps:$4 sm:$0xff]  }
  0x5d   :  { %475 = vmatprep.mubr.bf16.mxu0 %v3996_v0  ;;  %628 = vmatprep.mubr.bf16.mxu1 %v3996_v0 }
  0x5e   :  { %3202 = vmatpush3.bf16.msra.mxu1 %v3825_v60  ;;  %1634 = vmatprep.subr.bf16.mxu0 %v3853_v7  ;;  %v3881_v7 = vld [vmem:[#allocation2 + $0x180] ss:$12 sps:$4 sm:$0xff]  }
  0x5f   :  { %3203 = vmatprep.subr.bf16.mxu1 %v3835_v61  ;;  %1635 = vmatpush1.bf16.msra.mxu0 %v3851_v8  ;;  %v3885_v8 = vld [vmem:[#allocation2 + $0x188] ss:$12 sps:$4 sm:$0xff]  }
  0x60   :  { %1636 = vmatprep.subr.bf16.mxu0 %v3858_v10 }
  0x62   :  { %3204 = vmatpush3.bf16.msra.mxu1 %v3836_v2 }
  0x63   :  { %3205 = vmatprep.subr.bf16.mxu1 %v3843_v3  ;;  %1637 = vmatpush1.bf16.msra.mxu0 %v3856_v12 }
  0x64   :  { %476 = vmatmul.mubr.bf16.gmra.mrb[24].mxu0 %v4224_v5  ;;  %629 = vmatmul.mubr.bf16.gmra.mrb[24].mxu1 %v4157_v32  ;;  %v3805_v32 = vld [vmem:[%s4998_s0 + $0x50] sm:$0xff]  }
  0x65   :  { %485 = vmatprep.mubr.bf16.mxu0 %v3996_v0  ;;  %638 = vmatprep.mubr.bf16.mxu1 %v3996_v0 }
  0x66   :  { %3206 = vmatpush3.bf16.msra.mxu1 %v3847_v6  ;;  %1638 = vmatprep.subr.bf16.mxu0 %v3861_v15 }
  0x67   :  { %3207 = vmatprep.subr.bf16.mxu1 %v3854_v9  ;;  %1639 = vmatpush1.bf16.msra.mxu0 %v3859_v17 }
  0x68   :  { %1640 = vmatprep.subr.bf16.mxu0 %v3864_v20 }
  0x6a   :  { %3208 = vmatpush3.bf16.msra.mxu1 %v3855_v11 }
  0x6b   :  { %3209 = vmatprep.subr.bf16.mxu1 %v3865_v13  ;;  %1641 = vmatpush1.bf16.msra.mxu0 %v3862_v22  ;;  %v3888_v13 = vld [vmem:[#allocation2 + $0x19c] ss:$12 sps:$4 sm:$0xff]  }
  0x6c   :  { %486 = vmatmul.mubr.bf16.gmra.mrb[28].mxu0 %v3784_v14  ;;  %639 = vmatmul.mubr.bf16.gmra.mrb[28].mxu1 %v4179_v40  ;;  %v4269_v40 = vshrl.u32 %v107_v39, 7 }
  0x6d   :  { %495 = vmatprep.mubr.bf16.mxu0 %v3996_v0  ;;  %648 = vmatprep.mubr.bf16.mxu1 %v3996_v0 }
  0x6e   :  { %3210 = vmatpush3.bf16.msra.mxu1 %v3866_v16  ;;  %1642 = vmatprep.subr.bf16.mxu0 %v3869_v24  ;;  %v109_v41 = vsub.s32 0, %v4269_v40  ;;  %v3886_v24 = vld [vmem:[#allocation2 + $0x198] ss:$12 sps:$4 sm:$0xff]  }
  0x6f   :  { %3211 = vmatprep.subr.bf16.mxu1 %v3873_v18  ;;  %1643 = vmatpush1.bf16.msra.mxu0 %v3867_v26 }
  0x70   :  { %1644 = vmatprep.subr.bf16.mxu0 %v3872_v27 }
  0x72   :  { %3212 = vmatpush3.bf16.msra.mxu1 %v3877_v21 }
  0x73   :  { %1645 = vmatpush1.bf16.msra.mxu0 %v3870_v28  ;;  %3309 = vmatprep.subr.bf16.mxu1 %v3884_v38 }
  0x74   :  { %496 = vmatmul.mubr.bf16.gmra.mrb[32].mxu0 %v3789_v23  ;;  %649 = vmatmul.mubr.bf16.gmra.mrb[32].mxu1 %v4206_v51 }
  0x75   :  { %505 = vmatprep.mubr.bf16.mxu0 %v3996_v0  ;;  %658 = vmatprep.mubr.bf16.mxu1 %v3996_v0 }
  0x76   :  { %1646 = vmatprep.subr.bf16.mxu0 %v3876_v30  ;;  %v3891_v30 = vld [vmem:[#allocation2 + $0x1b4] ss:$12 sps:$4 sm:$0xff]  }
  0x77   :  { %1647 = vmatpush1.bf16.msra.mxu0 %v3874_v31  ;;  %v3893_v31 = vld [vmem:[#allocation2 + $0x1a0] ss:$12 sps:$4 sm:$0xff]  }
  0x78   :  { %1648 = vmatprep.subr.bf16.mxu0 %v3880_v35 }
  0x7b   :  { %1649 = vmatpush1.bf16.msra.mxu0 %v3878_v36 }
  0x7c   :  { %506 = vmatmul.mubr.bf16.gmra.mrb[36].mxu0 %v3797_v29  ;;  %659 = vmatmul.mubr.bf16.gmra.mrb[36].mxu1 %v4215_v58 }
  0x7d   :  { %515 = vmatprep.mubr.bf16.mxu0 %v3996_v0  ;;  %668 = vmatprep.mubr.bf16.mxu1 %v3996_v0 }
  0x7e   :  { %1811 = vmatprep.subr.bf16.mxu0 %v3883_v37  ;;  %v3900_v37 = vld [vmem:[#allocation2 + $0x278] ss:$12 sps:$4 sm:$0xff]  }
  0x84   :  { %516 = vmatmul.mubr.bf16.gmra.mrb[40].mxu0 %v3805_v32  ;;  %669 = vmatmul.mubr.bf16.gmra.mrb[40].mxu1 %v4224_v5 }
  0x85   :  { %525 = vmatprep.mubr.bf16.mxu0 %v3996_v0  ;;  %678 = vmatprep.mubr.bf16.mxu1 %v3996_v0 }
  0x8c   :  { %526 = vmatmul.mubr.bf16.gmra.mrb[44].mxu0 %v3813_v33  ;;  %679 = vmatmul.mubr.bf16.gmra.mrb[44].mxu1 %v3784_v14  ;;  %v3892_v14 = vld [vmem:[#allocation2 + $0x260] ss:$12 sps:$4 sm:$0xff]  }
  0x8d   :  { %688 = vmatprep.mubr.bf16.mxu1 %v3996_v0 }
  0x94   :  { %689 = vmatmul.mubr.bf16.gmra.mrb[48].mxu1 %v3789_v23 }
  0x95   :  { %698 = vmatprep.mubr.bf16.mxu1 %v3996_v0 }
  0x9c   :  { %699 = vmatmul.mubr.bf16.gmra.mrb[52].mxu1 %v3797_v29 }
  0x9d   :  { %708 = vmatprep.mubr.bf16.mxu1 %v3996_v0 }
  0xa4   :  { %709 = vmatmul.mubr.bf16.gmra.mrb[56].mxu1 %v3805_v32 }
  0xa5   :  { %718 = vmatprep.mubr.bf16.mxu1 %v3996_v0 }
  0xac   :  { %719 = vmatmul.mubr.bf16.gmra.mrb[60].mxu1 %v3813_v33 }
  0xad   :  { %728 = vmatprep.mubr.bf16.mxu1 %v3996_v0 }
  0xb4   :  { %729 = vmatmul.mubr.bf16.gmra.mrb[64].mxu1 %v4110_v19  ;;  %v4275_v19 = vld [vmem:[%s5000_s2] sm:$0xf] }
  0xb5   :  { %738 = vmatprep.mubr.bf16.mxu1 %v3996_v0 }
  0xbc   :  { %739 = vmatmul.mubr.bf16.gmra.mrb[68].mxu1 %v4136_v25  ;;  %v113_v25 = vsub.s32 1, %v4269_v40 }
  0xbd   :  { %748 = vmatprep.mubr.bf16.mxu1 %v3996_v0 }
  0xc4   :  { %749 = vmatmul.mubr.bf16.gmra.mrb[72].mxu1 %v4162_v34  ;;  %v4281_v34 = vrot.slane %v4275_v19, %v109_v41 }
  0xc5   :  { %758 = vmatprep.mubr.bf16.mxu1 %v3996_v0  ;;  %v4286_v0 = vrot.slane %v4275_v19, %v113_v25 }
  0xcc   :  { %759 = vmatmul.mubr.bf16.gmra.mrb[76].mxu1 %v4188_v43 }
 0x107   :  { %v417_v42 = vpop.f32.mrb[0].mxu0  ;;  %v537_v43 = vpop.f32.mrb[0].mxu1 }
 0x108   :  { %v418_v44 = vadd.f32 %v417_v42, %v4281_v34  ;;  %v419_v45 = vpop.f32.mrb[1].mxu0  ;;  %v538_v46 = vadd.f32 %v537_v43, %v4281_v34  ;;  %v539_v47 = vpop.f32.mrb[1].mxu1 }
 0x109   :  { %v420_v48 = vadd.f32 %v419_v45, %v4286_v0  ;;  %v421_v49 = vpop.f32.mrb[2].mxu0  ;;  %v540_v50 = vadd.f32 %v539_v47, %v4286_v0  ;;  %v541_v51 = vpop.f32.mrb[2].mxu1 }
 0x10a   :  { %v422_v52 = vadd.f32 %v421_v49, %v4281_v34  ;;  %v423_v53 = vpop.f32.mrb[3].mxu0  ;;  %v865_v54 = vmax.f32 %v538_v46, 0.0  ;;  %v542_v55 = vadd.f32 %v541_v51, %v4281_v34  ;;  %v543_v56 = vpop.f32.mrb[3].mxu1  ;;  %v769_v60 = vmax.f32 %v418_v44, 0.0  ;;  %v3901_v49 = vld [vmem:[#allocation2 + $0x1b8] ss:$12 sps:$4 sm:$0xff]  }
 0x10b   :  { %v424_v57 = vadd.f32 %v423_v53, %v4286_v0  ;;  %v866_v58 = vmax.f32 %v540_v50, 0.0  ;;  %v544_v59 = vadd.f32 %v543_v56, %v4286_v0  ;;  %v770_v63 = vmax.f32 %v420_v48, 0.0  ;;  %v3889_v48 = vld [vmem:[#allocation2 + $0x1b0] ss:$12 sps:$4 sm:$0xff]  }
 0x10c   :  { %v773_v61 = vmax.f32 %v422_v52, 0.0  ;;  %v869_v62 = vmax.f32 %v542_v55, 0.0  ;;  %v3908_v55 = vld [vmem:[#allocation2 + $0x290] ss:$12 sps:$4 sm:$0xff]  }
 0x10d   :  { %v774_v1 = vmax.f32 %v424_v57, 0.0  ;;  %v870_v2 = vmax.f32 %v544_v59, 0.0 }
 0x10e   :  { %v897_v3 = vpack.c.bf16 %v773_v61, %v769_v60  ;;  %v4296_v4 = vpack.c.bf16 %v869_v62, %v865_v54  ;;  %v3896_v54 = vld [vmem:[#allocation2 + $0x1cc] ss:$12 sps:$4 sm:$0xff]  }
 0x10f   :  { %v898_v5 = vpack.c.bf16 %v774_v1, %v770_v63  ;;  %v427_v6 = vpop.f32.mrb[4].mxu0  ;;  %v4298_v9 = vpack.c.bf16 %v870_v2, %v866_v58  ;;  %v547_v10 = vpop.f32.mrb[4].mxu1  ;;  %v3894_v1 = vld [vmem:[#allocation2 + $0x1c8] ss:$12 sps:$4 sm:$0xff]  }
 0x110   :  { %v428_v11 = vadd.f32 %v427_v6, %v4281_v34  ;;  %v429_v12 = vpop.f32.mrb[5].mxu0  ;;  %v548_v15 = vadd.f32 %v547_v10, %v4281_v34  ;;  %v549_v16 = vpop.f32.mrb[5].mxu1 }
 0x111   :  { %v430_v17 = vadd.f32 %v429_v12, %v4286_v0  ;;  %v431_v18 = vpop.f32.mrb[6].mxu0  ;;  %1650 = vmatprep.mubr.bf16.mxu0 %v898_v5  ;;  %2036 = vmatprep.mubr.bf16.mxu1 %v898_v5  ;;  %v550_v20 = vadd.f32 %v549_v16, %v4286_v0  ;;  %v551_v21 = vpop.f32.mrb[6].mxu1 }
 0x112   :  { %v432_v22 = vadd.f32 %v431_v18, %v4281_v34  ;;  %v433_v23 = vpop.f32.mrb[7].mxu0  ;;  %1651 = vmatmul.mubr.bf16.vlgmr.msra.gmra.mrb[48].mxu0 %v897_v3  ;;  %2037 = vmatmul.mubr.bf16.vlgmr.msra.gmra.mrb[80].mxu1 %v897_v3  ;;  %v873_v26 = vmax.f32 %v548_v15, 0.0  ;;  %v552_v27 = vadd.f32 %v551_v21, %v4281_v34  ;;  %v553_v28 = vpop.f32.mrb[7].mxu1  ;;  %v777_v35 = vmax.f32 %v428_v11, 0.0  ;;  %v3897_v21 = vld [vmem:[#allocation2 + $0x1e0] ss:$12 sps:$4 sm:$0xff]  }
 0x113   :  { %v434_v29 = vadd.f32 %v433_v23, %v4286_v0  ;;  %1812 = vmatpush1.bf16.msra.mxu0 %v3881_v7  ;;  %3310 = vmatpush3.bf16.msra.mxu1 %v3885_v8  ;;  %v874_v32 = vmax.f32 %v550_v20, 0.0  ;;  %v554_v33 = vadd.f32 %v553_v28, %v4286_v0  ;;  %v778_v39 = vmax.f32 %v430_v17, 0.0  ;;  %v3899_v7 = vld [vmem:[#allocation2 + $0x1e4] ss:$12 sps:$4 sm:$0xff]  }
 0x114   :  { %v781_v36 = vmax.f32 %v432_v22, 0.0  ;;  %1813 = vmatprep.subr.bf16.mxu0 %v3888_v13  ;;  %3311 = vmatprep.subr.bf16.mxu1 %v3892_v14  ;;  %v877_v38 = vmax.f32 %v552_v27, 0.0  ;;  %v3909_v8 = vld [vmem:[#allocation2 + $0x1d0] ss:$12 sps:$4 sm:$0xff]   ;;  %v3916_v14 = vld [vmem:[#allocation2 + $0x2a8] ss:$12 sps:$4 sm:$0xff]  }
 0x115   :  { %v782_v42 = vmax.f32 %v434_v29, 0.0  ;;  %v878_v43 = vmax.f32 %v554_v33, 0.0  ;;  %v3917_v27 = vld [vmem:[#allocation2 + $0x1e8] ss:$12 sps:$4 sm:$0xff]  }
 0x116   :  { %v901_v44 = vpack.c.bf16 %v781_v36, %v777_v35  ;;  %v4308_v45 = vpack.c.bf16 %v877_v38, %v873_v26  ;;  %v3904_v26 = vld [vmem:[#allocation2 + $0x1fc] ss:$12 sps:$4 sm:$0xff]   ;;  %v3924_v35 = vld [vmem:[#allocation2 + $0x2c0] ss:$12 sps:$4 sm:$0xff]   ;;  %v117_v36 = vsub.s32 2, %v4269_v40 }
 0x117   :  { %v902_v46 = vpack.c.bf16 %v782_v42, %v778_v39  ;;  %v437_v47 = vpop.f32.mrb[8].mxu0  ;;  %1814 = vmatpush1.bf16.msra.mxu0 %v3886_v24  ;;  %3312 = vmatpush3.bf16.msra.mxu1 %v3893_v31  ;;  %v4310_v50 = vpack.c.bf16 %v878_v43, %v874_v32  ;;  %v557_v51 = vpop.f32.mrb[8].mxu1  ;;  %v121_v43 = vsub.s32 3, %v4269_v40 }
 0x118   :  { %v438_v52 = vadd.f32 %v437_v47, %v4281_v34  ;;  %v439_v53 = vpop.f32.mrb[9].mxu0  ;;  %1815 = vmatprep.subr.bf16.mxu0 %v3891_v30  ;;  %3313 = vmatprep.subr.bf16.mxu1 %v3900_v37  ;;  %v558_v56 = vadd.f32 %v557_v51, %v4281_v34  ;;  %v559_v57 = vpop.f32.mrb[9].mxu1  ;;  %v3902_v47 = vld [vmem:[#allocation2 + $0x1f8] ss:$12 sps:$4 sm:$0xff]  }
 0x119   :  { %v440_v58 = vadd.f32 %v439_v53, %v4286_v0  ;;  %v441_v59 = vpop.f32.mrb[10].mxu0  ;;  %1660 = vmatprep.mubr.bf16.mxu0 %v902_v46  ;;  %2044 = vmatprep.mubr.bf16.mxu1 %v902_v46  ;;  %v560_v60 = vadd.f32 %v559_v57, %v4286_v0  ;;  %v561_v61 = vpop.f32.mrb[10].mxu1  ;;  %v3907_v53 = vld [vmem:[#allocation2 + $0x214] ss:$12 sps:$4 sm:$0xff]  }
 0x11a   :  { %v442_v62 = vadd.f32 %v441_v59, %v4281_v34  ;;  %v443_v63 = vpop.f32.mrb[11].mxu0  ;;  %1661 = vmatmul.mubr.bf16.gmra.mrb[52].mxu0 %v901_v44  ;;  %2045 = vmatmul.mubr.bf16.gmra.mrb[84].mxu1 %v901_v44  ;;  %v881_v2 = vmax.f32 %v558_v56, 0.0  ;;  %v562_v3 = vadd.f32 %v561_v61, %v4281_v34  ;;  %v563_v5 = vpop.f32.mrb[11].mxu1  ;;  %v785_v12 = vmax.f32 %v438_v52, 0.0  ;;  %v3925_v56 = vld [vmem:[#allocation2 + $0x200] ss:$12 sps:$4 sm:$0xff]  }
 0x11b   :  { %v444_v6 = vadd.f32 %v443_v63, %v4286_v0  ;;  %1816 = vmatpush1.bf16.msra.mxu0 %v3889_v48  ;;  %3314 = vmatpush3.bf16.msra.mxu1 %v3901_v49  ;;  %v882_v10 = vmax.f32 %v560_v60, 0.0  ;;  %v564_v11 = vadd.f32 %v563_v5, %v4286_v0  ;;  %v786_v16 = vmax.f32 %v440_v58, 0.0  ;;  %v3932_v61 = vld [vmem:[#allocation2 + $0x2d8] ss:$12 sps:$4 sm:$0xff]  }
 0x11c   :  { %v789_v13 = vmax.f32 %v442_v62, 0.0  ;;  %1817 = vmatprep.subr.bf16.mxu0 %v3896_v54  ;;  %3315 = vmatprep.subr.bf16.mxu1 %v3908_v55  ;;  %v885_v15 = vmax.f32 %v562_v3, 0.0  ;;  %v4337_v60 = vrot.slane %v4275_v19, %v117_v36 }
 0x11d   :  { %v790_v17 = vmax.f32 %v444_v6, 0.0  ;;  %v886_v18 = vmax.f32 %v564_v11, 0.0 }
 0x11e   :  { %v905_v20 = vpack.c.bf16 %v789_v13, %v785_v12  ;;  %v4320_v22 = vpack.c.bf16 %v885_v15, %v881_v2  ;;  %v4340_v2 = vrot.slane %v4275_v19, %v121_v43  ;;  %v3933_v12 = vld [vmem:[#allocation2 + $0x218] ss:$12 sps:$4 sm:$0xff]  }
 0x11f   :  { %v906_v23 = vpack.c.bf16 %v790_v17, %v786_v16  ;;  %v447_v24 = vpop.f32.mrb[12].mxu0  ;;  %1818 = vmatpush1.bf16.msra.mxu0 %v3894_v1  ;;  %3316 = vmatpush3.bf16.msra.mxu1 %v3909_v8  ;;  %v4322_v28 = vpack.c.bf16 %v886_v18, %v882_v10  ;;  %v567_v29 = vpop.f32.mrb[12].mxu1  ;;  %v3905_v8 = vld [vmem:[#allocation2 + $0x210] ss:$12 sps:$4 sm:$0xff]   ;;  %v3912_v15 = vld [vmem:[#allocation2 + $0x22c] ss:$12 sps:$4 sm:$0xff]  }
 0x120   :  { %v448_v30 = vadd.f32 %v447_v24, %v4281_v34  ;;  %v449_v31 = vpop.f32.mrb[13].mxu0  ;;  %1819 = vmatprep.subr.bf16.mxu0 %v3899_v7  ;;  %3317 = vmatprep.subr.bf16.mxu1 %v3916_v14  ;;  %v568_v32 = vadd.f32 %v567_v29, %v4281_v34  ;;  %v569_v33 = vpop.f32.mrb[13].mxu1  ;;  %v3940_v17 = vld [vmem:[#allocation2 + $0x2f0] ss:$12 sps:$4 sm:$0xff]  }
 0x121   :  { %v450_v37 = vadd.f32 %v449_v31, %v4286_v0  ;;  %v451_v38 = vpop.f32.mrb[14].mxu0  ;;  %1670 = vmatprep.mubr.bf16.mxu0 %v906_v23  ;;  %2052 = vmatprep.mubr.bf16.mxu1 %v906_v23  ;;  %v570_v39 = vadd.f32 %v569_v33, %v4286_v0  ;;  %v571_v42 = vpop.f32.mrb[14].mxu1 }
 0x122   :  { %v452_v44 = vadd.f32 %v451_v38, %v4281_v34  ;;  %v453_v46 = vpop.f32.mrb[15].mxu0  ;;  %1671 = vmatmul.mubr.bf16.gmra.mrb[56].mxu0 %v905_v20  ;;  %2053 = vmatmul.mubr.bf16.gmra.mrb[88].mxu1 %v905_v20  ;;  %v889_v48 = vmax.f32 %v568_v32, 0.0  ;;  %v572_v49 = vadd.f32 %v571_v42, %v4281_v34  ;;  %v573_v51 = vpop.f32.mrb[15].mxu1  ;;  %v793_v57 = vmax.f32 %v448_v30, 0.0  ;;  %v3910_v32 = vld [vmem:[#allocation2 + $0x228] ss:$12 sps:$4 sm:$0xff]  }
 0x123   :  { %v454_v52 = vadd.f32 %v453_v46, %v4286_v0  ;;  %1820 = vmatpush1.bf16.msra.mxu0 %v3897_v21  ;;  %3318 = vmatpush3.bf16.msra.mxu1 %v3917_v27  ;;  %v890_v54 = vmax.f32 %v570_v39, 0.0  ;;  %v574_v55 = vadd.f32 %v573_v51, %v4286_v0  ;;  %v794_v62 = vmax.f32 %v450_v37, 0.0  ;;  %v3941_v37 = vld [vmem:[#allocation2 + $0x230] ss:$12 sps:$4 sm:$0xff]  }
 0x124   :  { %v797_v58 = vmax.f32 %v452_v44, 0.0  ;;  %1821 = vmatprep.subr.bf16.mxu0 %v3904_v26  ;;  %v893_v59 = vmax.f32 %v572_v49, 0.0  ;;  %3319 = vmatprep.subr.bf16.mxu1 %v3924_v35  ;;  %v3915_v42 = vld [vmem:[#allocation2 + $0x244] ss:$12 sps:$4 sm:$0xff]  }
 0x125   :  { %v798_v63 = vmax.f32 %v454_v52, 0.0  ;;  %v894_v1 = vmax.f32 %v574_v55, 0.0 }
 0x126   :  { %v909_v3 = vpack.c.bf16 %v797_v58, %v793_v57  ;;  %v4342_v5 = vpack.c.bf16 %v893_v59, %v889_v48  ;;  %v3920_v58 = vld [vmem:[#allocation2 + $0x25c] ss:$12 sps:$4 sm:$0xff]  }
 0x127   :  { %v910_v6 = vpack.c.bf16 %v798_v63, %v794_v62  ;;  %v457_v7 = vpop.f32.mrb[16].mxu0  ;;  %1822 = vmatpush1.bf16.msra.mxu0 %v3902_v47  ;;  %v4344_v10 = vpack.c.bf16 %v894_v1, %v890_v54  ;;  %v610_v11 = vpop.f32.mrb[16].mxu1  ;;  %3320 = vmatpush3.bf16.msra.mxu1 %v3925_v56 }
 0x128   :  { %v458_v13 = vadd.f32 %v457_v7, %v4281_v34  ;;  %v459_v14 = vpop.f32.mrb[17].mxu0  ;;  %1823 = vmatprep.subr.bf16.mxu0 %v3907_v53  ;;  %v611_v19 = vadd.f32 %v610_v11, %v4337_v60  ;;  %v612_v16 = vpop.f32.mrb[17].mxu1  ;;  %3321 = vmatprep.subr.bf16.mxu1 %v3932_v61  ;;  %v3913_v53 = vld [vmem:[#allocation2 + $0x240] ss:$12 sps:$4 sm:$0xff]  }
 0x129   :  { %v460_v18 = vadd.f32 %v459_v14, %v4286_v0  ;;  %v461_v20 = vpop.f32.mrb[18].mxu0  ;;  %1680 = vmatprep.mubr.bf16.mxu0 %v910_v6  ;;  %2060 = vmatprep.mubr.bf16.mxu1 %v910_v6  ;;  %v613_v21 = vadd.f32 %v612_v16, %v4340_v2  ;;  %v614_v23 = vpop.f32.mrb[18].mxu1  ;;  %v3918_v14 = vld [vmem:[#allocation2 + $0x258] ss:$12 sps:$4 sm:$0xff]  }
 0x12a   :  { %v462_v24 = vadd.f32 %v461_v20, %v4281_v34  ;;  %v463_v26 = vpop.f32.mrb[19].mxu0  ;;  %1681 = vmatmul.mubr.bf16.gmra.mrb[60].mxu0 %v909_v3  ;;  %2061 = vmatmul.mubr.bf16.gmra.mrb[92].mxu1 %v909_v3  ;;  %v771_v27 = vmax.f32 %v611_v19, 0.0  ;;  %v615_v29 = vadd.f32 %v614_v23, %v4337_v60  ;;  %v616_v30 = vpop.f32.mrb[19].mxu1  ;;  %v801_v38 = vmax.f32 %v458_v13, 0.0 }
 0x12b   :  { %v464_v31 = vadd.f32 %v463_v26, %v4286_v0  ;;  %1824 = vmatpush1.bf16.msra.mxu0 %v3905_v8  ;;  %v772_v33 = vmax.f32 %v613_v21, 0.0  ;;  %v617_v35 = vadd.f32 %v616_v30, %v4340_v2  ;;  %3322 = vmatpush3.bf16.msra.mxu1 %v3933_v12  ;;  %v802_v44 = vmax.f32 %v460_v18, 0.0  ;;  %v3923_v18 = vld [vmem:[#allocation2 + $0x274] ss:$12 sps:$4 sm:$0xff]  }
 0x12c   :  { %v805_v39 = vmax.f32 %v462_v24, 0.0  ;;  %1825 = vmatprep.subr.bf16.mxu0 %v3912_v15  ;;  %v775_v43 = vmax.f32 %v615_v29, 0.0  ;;  %3323 = vmatprep.subr.bf16.mxu1 %v3940_v17 }
 0x12d   :  { %v806_v46 = vmax.f32 %v464_v31, 0.0  ;;  %v776_v47 = vmax.f32 %v617_v35, 0.0  ;;  %v3921_v31 = vld [vmem:[#allocation2 + $0x270] ss:$12 sps:$4 sm:$0xff]  }
 0x12e   :  { %v913_v48 = vpack.c.bf16 %v805_v39, %v801_v38  ;;  %v4354_v49 = vpack.c.bf16 %v775_v43, %v771_v27  ;;  %v3928_v38 = vld [vmem:[#allocation2 + $0x28c] ss:$12 sps:$4 sm:$0xff]  }
 0x12f   :  { %v914_v51 = vpack.c.bf16 %v806_v46, %v802_v44  ;;  %v467_v52 = vpop.f32.mrb[20].mxu0  ;;  %1826 = vmatpush1.bf16.msra.mxu0 %v3910_v32  ;;  %v4356_v54 = vpack.c.bf16 %v776_v47, %v772_v33  ;;  %v620_v55 = vpop.f32.mrb[20].mxu1  ;;  %3324 = vmatpush3.bf16.msra.mxu1 %v3941_v37 }
 0x130   :  { %v468_v56 = vadd.f32 %v467_v52, %v4281_v34  ;;  %v469_v57 = vpop.f32.mrb[21].mxu0  ;;  %1827 = vmatprep.subr.bf16.mxu0 %v3915_v42  ;;  %v621_v59 = vadd.f32 %v620_v55, %v4337_v60  ;;  %v622_v61 = vpop.f32.mrb[21].mxu1 }
 0x131   :  { %v470_v62 = vadd.f32 %v469_v57, %v4286_v0  ;;  %v471_v63 = vpop.f32.mrb[22].mxu0  ;;  %1690 = vmatprep.mubr.bf16.mxu0 %v914_v51  ;;  %2068 = vmatprep.mubr.bf16.mxu1 %v914_v51  ;;  %v623_v1 = vadd.f32 %v622_v61, %v4340_v2  ;;  %v624_v3 = vpop.f32.mrb[22].mxu1  ;;  %v3926_v57 = vld [vmem:[#allocation2 + $0x288] ss:$12 sps:$4 sm:$0xff]  }
 0x132   :  { %v472_v6 = vadd.f32 %v471_v63, %v4281_v34  ;;  %v473_v7 = vpop.f32.mrb[23].mxu0  ;;  %1691 = vmatmul.mubr.bf16.gmra.mrb[64].mxu0 %v913_v48  ;;  %2069 = vmatmul.mubr.bf16.gmra.mrb[96].mxu1 %v913_v48  ;;  %v779_v8 = vmax.f32 %v621_v59, 0.0  ;;  %v625_v11 = vadd.f32 %v624_v3, %v4337_v60  ;;  %v626_v12 = vpop.f32.mrb[23].mxu1  ;;  %v809_v16 = vmax.f32 %v468_v56, 0.0  ;;  %v3931_v63 = vld [vmem:[#allocation2 + $0x2a4] ss:$12 sps:$4 sm:$0xff]  }
 0x133   :  { %v474_v13 = vadd.f32 %v473_v7, %v4286_v0  ;;  %1828 = vmatpush1.bf16.msra.mxu0 %v3913_v53  ;;  %v780_v15 = vmax.f32 %v623_v1, 0.0  ;;  %v627_v19 = vadd.f32 %v626_v12, %v4340_v2  ;;  %v810_v21 = vmax.f32 %v470_v62, 0.0 }
 0x134   :  { %v813_v17 = vmax.f32 %v472_v6, 0.0  ;;  %1829 = vmatprep.subr.bf16.mxu0 %v3920_v58  ;;  %v783_v20 = vmax.f32 %v625_v11, 0.0 }
 0x135   :  { %v814_v23 = vmax.f32 %v474_v13, 0.0  ;;  %v784_v24 = vmax.f32 %v627_v19, 0.0 }
 0x136   :  { %v917_v26 = vpack.c.bf16 %v813_v17, %v809_v16  ;;  %v4366_v27 = vpack.c.bf16 %v783_v20, %v779_v8 }
 0x137   :  { %v918_v29 = vpack.c.bf16 %v814_v23, %v810_v21  ;;  %v477_v30 = vpop.f32.mrb[24].mxu0  ;;  %1830 = vmatpush1.bf16.msra.mxu0 %v3918_v14  ;;  %v4368_v32 = vpack.c.bf16 %v784_v24, %v780_v15  ;;  %v630_v33 = vpop.f32.mrb[24].mxu1  ;;  %v3929_v14 = vld [vmem:[#allocation2 + $0x2a0] ss:$12 sps:$4 sm:$0xff]  }
 0x138   :  { %v478_v35 = vadd.f32 %v477_v30, %v4281_v34  ;;  %v479_v37 = vpop.f32.mrb[25].mxu0  ;;  %1831 = vmatprep.subr.bf16.mxu0 %v3923_v18  ;;  %v631_v39 = vadd.f32 %v630_v33, %v4337_v60  ;;  %v632_v42 = vpop.f32.mrb[25].mxu1  ;;  %v3936_v18 = vld [vmem:[#allocation2 + $0x2bc] ss:$12 sps:$4 sm:$0xff]  }
 0x139   :  { %v480_v43 = vadd.f32 %v479_v37, %v4286_v0  ;;  %v481_v44 = vpop.f32.mrb[26].mxu0  ;;  %1700 = vmatprep.mubr.bf16.mxu0 %v918_v29  ;;  %2076 = vmatprep.mubr.bf16.mxu1 %v918_v29  ;;  %v633_v46 = vadd.f32 %v632_v42, %v4340_v2  ;;  %v634_v47 = vpop.f32.mrb[26].mxu1 }
 0x13a   :  { %v482_v48 = vadd.f32 %v481_v44, %v4281_v34  ;;  %v483_v51 = vpop.f32.mrb[27].mxu0  ;;  %1701 = vmatmul.mubr.bf16.gmra.mrb[68].mxu0 %v917_v26  ;;  %2077 = vmatmul.mubr.bf16.gmra.mrb[100].mxu1 %v917_v26  ;;  %v787_v52 = vmax.f32 %v631_v39, 0.0  ;;  %v635_v53 = vadd.f32 %v634_v47, %v4337_v60  ;;  %v636_v55 = vpop.f32.mrb[27].mxu1  ;;  %v817_v61 = vmax.f32 %v478_v35, 0.0  ;;  %v3934_v39 = vld [vmem:[#allocation2 + $0x2b8] ss:$12 sps:$4 sm:$0xff]  }
 0x13b   :  { %v484_v56 = vadd.f32 %v483_v51, %v4286_v0  ;;  %1832 = vmatpush1.bf16.msra.mxu0 %v3921_v31  ;;  %v788_v58 = vmax.f32 %v633_v46, 0.0  ;;  %v637_v59 = vadd.f32 %v636_v55, %v4340_v2  ;;  %v818_v3 = vmax.f32 %v480_v43, 0.0 }
 0x13c   :  { %v821_v62 = vmax.f32 %v482_v48, 0.0  ;;  %1833 = vmatprep.subr.bf16.mxu0 %v3928_v38  ;;  %v791_v1 = vmax.f32 %v635_v53, 0.0  ;;  %v3939_v48 = vld [vmem:[#allocation2 + $0x2d4] ss:$12 sps:$4 sm:$0xff]  }
 0x13d   :  { %v822_v6 = vmax.f32 %v484_v56, 0.0  ;;  %v792_v7 = vmax.f32 %v637_v59, 0.0 }
 0x13e   :  { %v921_v8 = vpack.c.bf16 %v821_v62, %v817_v61  ;;  %v4378_v11 = vpack.c.bf16 %v791_v1, %v787_v52  ;;  %v3937_v61 = vld [vmem:[#allocation2 + $0x2d0] ss:$12 sps:$4 sm:$0xff]  }
 0x13f   :  { %v922_v12 = vpack.c.bf16 %v822_v6, %v818_v3  ;;  %v487_v13 = vpop.f32.mrb[28].mxu0  ;;  %1834 = vmatpush1.bf16.msra.mxu0 %v3926_v57  ;;  %v4380_v15 = vpack.c.bf16 %v792_v7, %v788_v58  ;;  %v640_v19 = vpop.f32.mrb[28].mxu1  ;;  %v3944_v7 = vld [vmem:[#allocation2 + $0x2ec] ss:$12 sps:$4 sm:$0xff]  }
 0x140   :  { %v488_v16 = vadd.f32 %v487_v13, %v4281_v34  ;;  %v489_v17 = vpop.f32.mrb[29].mxu0  ;;  %1835 = vmatprep.subr.bf16.mxu0 %v3931_v63  ;;  %v641_v20 = vadd.f32 %v640_v19, %v4337_v60  ;;  %v642_v21 = vpop.f32.mrb[29].mxu1 }
 0x141   :  { %v490_v23 = vadd.f32 %v489_v17, %v4286_v0  ;;  %v491_v24 = vpop.f32.mrb[30].mxu0  ;;  %1710 = vmatprep.mubr.bf16.mxu0 %v922_v12  ;;  %2084 = vmatprep.mubr.bf16.mxu1 %v922_v12  ;;  %v643_v26 = vadd.f32 %v642_v21, %v4340_v2  ;;  %v644_v29 = vpop.f32.mrb[30].mxu1 }
 0x142   :  { %v492_v30 = vadd.f32 %v491_v24, %v4281_v34  ;;  %v493_v31 = vpop.f32.mrb[31].mxu0  ;;  %1711 = vmatmul.mubr.bf16.gmra.mrb[72].mxu0 %v921_v8  ;;  %2085 = vmatmul.mubr.bf16.gmra.mrb[104].mxu1 %v921_v8  ;;  %v795_v33 = vmax.f32 %v641_v20, 0.0  ;;  %v645_v35 = vadd.f32 %v644_v29, %v4337_v60  ;;  %v646_v37 = vpop.f32.mrb[31].mxu1  ;;  %v825_v44 = vmax.f32 %v488_v16, 0.0 }
 0x143   :  { %v494_v38 = vadd.f32 %v493_v31, %v4286_v0  ;;  %1836 = vmatpush1.bf16.msra.mxu0 %v3929_v14  ;;  %v796_v42 = vmax.f32 %v643_v26, 0.0  ;;  %v647_v43 = vadd.f32 %v646_v37, %v4340_v2  ;;  %v826_v51 = vmax.f32 %v490_v23, 0.0  ;;  %v3942_v26 = vld [vmem:[#allocation2 + $0x2e8] ss:$12 sps:$4 sm:$0xff]  }
 0x144   :  { %v829_v46 = vmax.f32 %v492_v30, 0.0  ;;  %1837 = vmatprep.subr.bf16.mxu0 %v3936_v18  ;;  %v799_v47 = vmax.f32 %v645_v35, 0.0 }
 0x145   :  { %v830_v52 = vmax.f32 %v494_v38, 0.0  ;;  %v800_v53 = vmax.f32 %v647_v43, 0.0 }
 0x146   :  { %v925_v55 = vpack.c.bf16 %v829_v46, %v825_v44  ;;  %v4390_v56 = vpack.c.bf16 %v799_v47, %v795_v33 }
 0x147   :  { %v926_v57 = vpack.c.bf16 %v830_v52, %v826_v51  ;;  %v497_v58 = vpop.f32.mrb[32].mxu0  ;;  %1838 = vmatpush1.bf16.msra.mxu0 %v3934_v39  ;;  %v4392_v59 = vpack.c.bf16 %v800_v53, %v796_v42  ;;  %v650_v62 = vpop.f32.mrb[32].mxu1 }
 0x148   :  { %v498_v63 = vadd.f32 %v497_v58, %v4281_v34  ;;  %v499_v1 = vpop.f32.mrb[33].mxu0  ;;  %1839 = vmatprep.subr.bf16.mxu0 %v3939_v48  ;;  %v651_v3 = vadd.f32 %v650_v62, %v4337_v60  ;;  %v652_v6 = vpop.f32.mrb[33].mxu1 }
 0x149   :  { %v500_v8 = vadd.f32 %v499_v1, %v4286_v0  ;;  %v501_v12 = vpop.f32.mrb[34].mxu0  ;;  %1720 = vmatprep.mubr.bf16.mxu0 %v926_v57  ;;  %2092 = vmatprep.mubr.bf16.mxu1 %v926_v57  ;;  %v653_v13 = vadd.f32 %v652_v6, %v4340_v2  ;;  %v654_v14 = vpop.f32.mrb[34].mxu1 }
 0x14a   :  { %v502_v19 = vadd.f32 %v501_v12, %v4281_v34  ;;  %v503_v16 = vpop.f32.mrb[35].mxu0  ;;  %1721 = vmatmul.mubr.bf16.gmra.mrb[76].mxu0 %v925_v55  ;;  %2093 = vmatmul.mubr.bf16.gmra.mrb[108].mxu1 %v925_v55  ;;  %v803_v17 = vmax.f32 %v651_v3, 0.0  ;;  %v655_v18 = vadd.f32 %v654_v14, %v4337_v60  ;;  %v656_v20 = vpop.f32.mrb[35].mxu1  ;;  %v833_v29 = vmax.f32 %v498_v63, 0.0 }
 0x14b   :  { %v504_v21 = vadd.f32 %v503_v16, %v4286_v0  ;;  %1840 = vmatpush1.bf16.msra.mxu0 %v3937_v61  ;;  %v804_v23 = vmax.f32 %v653_v13, 0.0  ;;  %v657_v24 = vadd.f32 %v656_v20, %v4340_v2  ;;  %v834_v33 = vmax.f32 %v500_v8, 0.0 }
 0x14c   :  { %v837_v30 = vmax.f32 %v502_v19, 0.0  ;;  %v807_v31 = vmax.f32 %v655_v18, 0.0  ;;  %1841 = vmatprep.subr.bf16.mxu0 %v3944_v7 }
 0x14d   :  { %v838_v35 = vmax.f32 %v504_v21, 0.0  ;;  %v808_v37 = vmax.f32 %v657_v24, 0.0 }
 0x14e   :  { %v929_v38 = vpack.c.bf16 %v837_v30, %v833_v29  ;;  %v4402_v39 = vpack.c.bf16 %v807_v31, %v803_v17 }
 0x14f   :  { %v930_v42 = vpack.c.bf16 %v838_v35, %v834_v33  ;;  %v507_v43 = vpop.f32.mrb[36].mxu0  ;;  %v4404_v44 = vpack.c.bf16 %v808_v37, %v804_v23  ;;  %1842 = vmatpush1.bf16.msra.mxu0 %v3942_v26  ;;  %v660_v46 = vpop.f32.mrb[36].mxu1 }
 0x150   :  { %v508_v47 = vadd.f32 %v507_v43, %v4281_v34  ;;  %v509_v48 = vpop.f32.mrb[37].mxu0  ;;  %v661_v51 = vadd.f32 %v660_v46, %v4337_v60  ;;  %v662_v52 = vpop.f32.mrb[37].mxu1 }
 0x151   :  { %v510_v53 = vadd.f32 %v509_v48, %v4286_v0  ;;  %v511_v55 = vpop.f32.mrb[38].mxu0  ;;  %1730 = vmatprep.mubr.bf16.mxu0 %v930_v42  ;;  %2100 = vmatprep.mubr.bf16.mxu1 %v930_v42  ;;  %v663_v57 = vadd.f32 %v662_v52, %v4340_v2  ;;  %v664_v58 = vpop.f32.mrb[38].mxu1 }
 0x152   :  { %v512_v61 = vadd.f32 %v511_v55, %v4281_v34  ;;  %v513_v62 = vpop.f32.mrb[39].mxu0  ;;  %1731 = vmatmul.mubr.bf16.gmra.mrb[80].mxu0 %v929_v38  ;;  %2101 = vmatmul.mubr.bf16.gmra.mrb[112].mxu1 %v929_v38  ;;  %v811_v63 = vmax.f32 %v661_v51, 0.0  ;;  %v665_v1 = vadd.f32 %v664_v58, %v4337_v60  ;;  %v666_v3 = vpop.f32.mrb[39].mxu1  ;;  %v841_v12 = vmax.f32 %v508_v47, 0.0 }
 0x153   :  { %v514_v6 = vadd.f32 %v513_v62, %v4286_v0  ;;  %v812_v7 = vmax.f32 %v663_v57, 0.0  ;;  %v667_v8 = vadd.f32 %v666_v3, %v4340_v2  ;;  %v842_v19 = vmax.f32 %v510_v53, 0.0 }
 0x154   :  { %v845_v13 = vmax.f32 %v512_v61, 0.0  ;;  %v815_v14 = vmax.f32 %v665_v1, 0.0 }
 0x155   :  { %v846_v16 = vmax.f32 %v514_v6, 0.0  ;;  %v816_v17 = vmax.f32 %v667_v8, 0.0 }
 0x156   :  { %v933_v18 = vpack.c.bf16 %v845_v13, %v841_v12  ;;  %v4414_v20 = vpack.c.bf16 %v815_v14, %v811_v63 }
 0x157   :  { %v934_v21 = vpack.c.bf16 %v846_v16, %v842_v19  ;;  %v517_v23 = vpop.f32.mrb[40].mxu0  ;;  %v4416_v24 = vpack.c.bf16 %v816_v17, %v812_v7  ;;  %v670_v26 = vpop.f32.mrb[40].mxu1 }
 0x158   :  { %v518_v29 = vadd.f32 %v517_v23, %v4281_v34  ;;  %v519_v30 = vpop.f32.mrb[41].mxu0  ;;  %v671_v31 = vadd.f32 %v670_v26, %v4337_v60  ;;  %v672_v33 = vpop.f32.mrb[41].mxu1 }
 0x159   :  { %v520_v35 = vadd.f32 %v519_v30, %v4286_v0  ;;  %v521_v37 = vpop.f32.mrb[42].mxu0  ;;  %1740 = vmatprep.mubr.bf16.mxu0 %v934_v21  ;;  %2108 = vmatprep.mubr.bf16.mxu1 %v934_v21  ;;  %v673_v38 = vadd.f32 %v672_v33, %v4340_v2  ;;  %v674_v42 = vpop.f32.mrb[42].mxu1 }
 0x15a   :  { %v522_v43 = vadd.f32 %v521_v37, %v4281_v34  ;;  %v523_v46 = vpop.f32.mrb[43].mxu0  ;;  %1741 = vmatmul.mubr.bf16.gmra.mrb[84].mxu0 %v933_v18  ;;  %2109 = vmatmul.mubr.bf16.gmra.mrb[116].mxu1 %v933_v18  ;;  %v819_v47 = vmax.f32 %v671_v31, 0.0  ;;  %v675_v48 = vadd.f32 %v674_v42, %v4337_v60  ;;  %v676_v51 = vpop.f32.mrb[43].mxu1  ;;  %v849_v57 = vmax.f32 %v518_v29, 0.0 }
 0x15b   :  { %v524_v52 = vadd.f32 %v523_v46, %v4286_v0  ;;  %v820_v53 = vmax.f32 %v673_v38, 0.0  ;;  %v677_v55 = vadd.f32 %v676_v51, %v4340_v2  ;;  %v850_v62 = vmax.f32 %v520_v35, 0.0 }
 0x15c   :  { %v853_v58 = vmax.f32 %v522_v43, 0.0  ;;  %v823_v61 = vmax.f32 %v675_v48, 0.0 }
 0x15d   :  { %v854_v63 = vmax.f32 %v524_v52, 0.0  ;;  %v824_v1 = vmax.f32 %v677_v55, 0.0 }
 0x15e   :  { %v937_v3 = vpack.c.bf16 %v853_v58, %v849_v57  ;;  %v4426_v6 = vpack.c.bf16 %v823_v61, %v819_v47 }
 0x15f   :  { %v938_v7 = vpack.c.bf16 %v854_v63, %v850_v62  ;;  %v527_v8 = vpop.f32.mrb[44].mxu0  ;;  %v4428_v12 = vpack.c.bf16 %v824_v1, %v820_v53  ;;  %v680_v13 = vpop.f32.mrb[44].mxu1 }
 0x160   :  { %v528_v14 = vadd.f32 %v527_v8, %v4281_v34  ;;  %v529_v19 = vpop.f32.mrb[45].mxu0  ;;  %v681_v16 = vadd.f32 %v680_v13, %v4337_v60  ;;  %v682_v17 = vpop.f32.mrb[45].mxu1 }
 0x161   :  { %v530_v18 = vadd.f32 %v529_v19, %v4286_v0  ;;  %v531_v21 = vpop.f32.mrb[46].mxu0  ;;  %1750 = vmatprep.mubr.bf16.mxu0 %v938_v7  ;;  %2116 = vmatprep.mubr.bf16.mxu1 %v938_v7  ;;  %v683_v23 = vadd.f32 %v682_v17, %v4340_v2  ;;  %v684_v26 = vpop.f32.mrb[46].mxu1 }
 0x162   :  { %v532_v29 = vadd.f32 %v531_v21, %v4281_v34  ;;  %v533_v30 = vpop.f32.mrb[47].mxu0  ;;  %1751 = vmatmul.mubr.bf16.gmra.mrb[88].mxu0 %v937_v3  ;;  %2117 = vmatmul.mubr.bf16.gmra.mrb[120].mxu1 %v937_v3  ;;  %v827_v31 = vmax.f32 %v681_v16, 0.0  ;;  %v685_v33 = vadd.f32 %v684_v26, %v4337_v60  ;;  %v686_v35 = vpop.f32.mrb[47].mxu1  ;;  %v857_v43 = vmax.f32 %v528_v14, 0.0 }
 0x163   :  { %v534_v37 = vadd.f32 %v533_v30, %v4286_v0  ;;  %v828_v38 = vmax.f32 %v683_v23, 0.0  ;;  %v687_v42 = vadd.f32 %v686_v35, %v4340_v2  ;;  %v858_v48 = vmax.f32 %v530_v18, 0.0 }
 0x164   :  { %v861_v46 = vmax.f32 %v532_v29, 0.0  ;;  %v831_v47 = vmax.f32 %v685_v33, 0.0 }
 0x165   :  { %v862_v51 = vmax.f32 %v534_v37, 0.0  ;;  %v832_v52 = vmax.f32 %v687_v42, 0.0 }
 0x166   :  { %v941_v53 = vpack.c.bf16 %v861_v46, %v857_v43  ;;  %v4438_v34 = vpack.c.bf16 %v831_v47, %v827_v31 }
 0x167   :  { %v942_v55 = vpack.c.bf16 %v862_v51, %v858_v48  ;;  %v4440_v57 = vpack.c.bf16 %v832_v52, %v828_v38  ;;  %v690_v58 = vpop.f32.mrb[48].mxu1 }
 0x168   :  { %v691_v61 = vadd.f32 %v690_v58, %v4337_v60  ;;  %v692_v62 = vpop.f32.mrb[49].mxu1 }
 0x169   :  { %1760 = vmatprep.mubr.bf16.mxu0 %v942_v55  ;;  %2124 = vmatprep.mubr.bf16.mxu1 %v942_v55  ;;  %v693_v0 = vadd.f32 %v692_v62, %v4340_v2  ;;  %v694_v63 = vpop.f32.mrb[50].mxu1 }
 0x16a   :  { %1761 = vmatmul.mubr.bf16.gmra.mrb[92].mxu0 %v941_v53  ;;  %2125 = vmatmul.mubr.bf16.gmra.mrb[124].mxu1 %v941_v53  ;;  %v835_v1 = vmax.f32 %v691_v61, 0.0  ;;  %v695_v3 = vadd.f32 %v694_v63, %v4337_v60  ;;  %v696_v7 = vpop.f32.mrb[51].mxu1 }
 0x16b   :  { %1770 = vmatprep.mubr.bf16.mxu0 %v4298_v9  ;;  %2132 = vmatprep.mubr.bf16.mxu1 %v4298_v9  ;;  %v836_v8 = vmax.f32 %v693_v0, 0.0  ;;  %v697_v13 = vadd.f32 %v696_v7, %v4340_v2  ;;  %v3945_v9 = vld [vmem:[%s5003_s5 + $0x40] sm:$0xff]  }
 0x16c   :  { %v839_v14 = vmax.f32 %v695_v3, 0.0  ;;  %3421 = vmatprep.subr.bf16.mxu0 %v3945_v9 }
 0x16d   :  { %v840_v19 = vmax.f32 %v697_v13, 0.0 }
 0x16e   :  { %v4448_v16 = vpack.c.bf16 %v839_v14, %v835_v1 }
 0x16f   :  { %v4450_v17 = vpack.c.bf16 %v840_v19, %v836_v8  ;;  %v700_v18 = vpop.f32.mrb[52].mxu1 }
 0x170   :  { %v701_v21 = vadd.f32 %v700_v18, %v4337_v60  ;;  %v702_v23 = vpop.f32.mrb[53].mxu1 }
 0x171   :  { %v703_v26 = vadd.f32 %v702_v23, %v4340_v2  ;;  %v704_v29 = vpop.f32.mrb[54].mxu1 }
 0x172   :  { %1771 = vmatmul.mubr.bf16.gmra.mrb[96].mxu0 %v4296_v4  ;;  %2133 = vmatmul.mubr.bf16.gmra.mrb[128].mxu1 %v4296_v4  ;;  %v843_v30 = vmax.f32 %v701_v21, 0.0  ;;  %v705_v31 = vadd.f32 %v704_v29, %v4337_v60  ;;  %v706_v33 = vpop.f32.mrb[55].mxu1 }
 0x173   :  { %1780 = vmatprep.mubr.bf16.mxu0 %v4310_v50  ;;  %2140 = vmatprep.mubr.bf16.mxu1 %v4310_v50  ;;  %v844_v35 = vmax.f32 %v703_v26, 0.0  ;;  %v707_v37 = vadd.f32 %v706_v33, %v4340_v2 }
 0x174   :  { %v847_v38 = vmax.f32 %v705_v31, 0.0 }
 0x175   :  { %v848_v42 = vmax.f32 %v707_v37, 0.0 }
 0x176   :  { %v4463_v43 = vpack.c.bf16 %v847_v38, %v843_v30 }
 0x177   :  { %v4465_v46 = vpack.c.bf16 %v848_v42, %v844_v35  ;;  %v710_v47 = vpop.f32.mrb[56].mxu1 }
 0x178   :  { %v711_v4 = vadd.f32 %v710_v47, %v4337_v60  ;;  %v712_v48 = vpop.f32.mrb[57].mxu1 }
 0x179   :  { %v713_v51 = vadd.f32 %v712_v48, %v4340_v2  ;;  %v714_v52 = vpop.f32.mrb[58].mxu1 }
 0x17a   :  { %1781 = vmatmul.mubr.bf16.gmra.mrb[100].mxu0 %v4308_v45  ;;  %2141 = vmatmul.mubr.bf16.gmra.mrb[132].mxu1 %v4308_v45  ;;  %v851_v50 = vmax.f32 %v711_v4, 0.0  ;;  %v715_v53 = vadd.f32 %v714_v52, %v4337_v60  ;;  %v716_v55 = vpop.f32.mrb[59].mxu1 }
 0x17b   :  { %1790 = vmatprep.mubr.bf16.mxu0 %v4322_v28  ;;  %2148 = vmatprep.mubr.bf16.mxu1 %v4322_v28  ;;  %v852_v58 = vmax.f32 %v713_v51, 0.0  ;;  %v717_v61 = vadd.f32 %v716_v55, %v4340_v2  ;;  %v3946_v55 = vld [vmem:[%s5003_s5] sm:$0xff]  }
 0x17c   :  { %v855_v62 = vmax.f32 %v715_v53, 0.0 }
 0x17d   :  { %v856_v0 = vmax.f32 %v717_v61, 0.0  ;;  %v3947_v61 = vld [vmem:[%s5003_s5 + $0x48] sm:$0xff]  }
 0x17e   :  { %v4475_v63 = vpack.c.bf16 %v855_v62, %v851_v50 }
 0x17f   :  { %v4477_v1 = vpack.c.bf16 %v856_v0, %v852_v58  ;;  %v720_v3 = vpop.f32.mrb[60].mxu1 }
 0x180   :  { %v721_v45 = vadd.f32 %v720_v3, %v4337_v60  ;;  %v722_v7 = vpop.f32.mrb[61].mxu1 }
 0x181   :  { %v723_v8 = vadd.f32 %v722_v7, %v4340_v2  ;;  %v724_v13 = vpop.f32.mrb[62].mxu1 }
 0x182   :  { %1791 = vmatmul.mubr.bf16.gmra.mrb[104].mxu0 %v4320_v22  ;;  %2149 = vmatmul.mubr.bf16.gmra.mrb[136].mxu1 %v4320_v22  ;;  %v859_v28 = vmax.f32 %v721_v45, 0.0  ;;  %v725_v14 = vadd.f32 %v724_v13, %v4337_v60  ;;  %v726_v19 = vpop.f32.mrb[63].mxu1  ;;  %v3948_v13 = vld [vmem:[%s5003_s5 + $0x8] sm:$0xff]  }
 0x183   :  { %1800 = vmatprep.mubr.bf16.mxu0 %v4344_v10  ;;  %2156 = vmatprep.mubr.bf16.mxu1 %v4344_v10  ;;  %v860_v18 = vmax.f32 %v723_v8, 0.0  ;;  %v727_v21 = vadd.f32 %v726_v19, %v4340_v2 }
 0x184   :  { %v863_v23 = vmax.f32 %v725_v14, 0.0 }
 0x185   :  { %v864_v26 = vmax.f32 %v727_v21, 0.0 }
 0x186   :  { %v4487_v29 = vpack.c.bf16 %v863_v23, %v859_v28  ;;  %v3950_v23 = vld [vmem:[%s5003_s5 + $0x10] sm:$0xff]  }
 0x187   :  { %v4489_v9 = vpack.c.bf16 %v864_v26, %v860_v18  ;;  %v730_v30 = vpop.f32.mrb[64].mxu1 }
 0x188   :  { %v731_v22 = vadd.f32 %v730_v30, %v4337_v60  ;;  %v732_v31 = vpop.f32.mrb[65].mxu1 }
 0x189   :  { %v733_v33 = vadd.f32 %v732_v31, %v4340_v2  ;;  %v734_v35 = vpop.f32.mrb[66].mxu1 }
 0x18a   :  { %1801 = vmatmul.mubr.bf16.gmra.mrb[108].mxu0 %v4342_v5  ;;  %2157 = vmatmul.mubr.bf16.gmra.mrb[140].mxu1 %v4342_v5  ;;  %v867_v10 = vmax.f32 %v731_v22, 0.0  ;;  %v735_v37 = vadd.f32 %v734_v35, %v4337_v60  ;;  %v736_v38 = vpop.f32.mrb[67].mxu1 }
 0x18b   :  { %1843 = vmatprep.mubr.bf16.mxu0 %v4356_v54  ;;  %2197 = vmatprep.mubr.bf16.mxu1 %v4356_v54  ;;  %v868_v42 = vmax.f32 %v733_v33, 0.0  ;;  %v737_v47 = vadd.f32 %v736_v38, %v4340_v2 }
 0x18c   :  { %v871_v4 = vmax.f32 %v735_v37, 0.0 }
 0x18d   :  { %v872_v48 = vmax.f32 %v737_v47, 0.0 }
 0x18e   :  { %v4499_v51 = vpack.c.bf16 %v871_v4, %v867_v10 }
 0x18f   :  { %v4501_v52 = vpack.c.bf16 %v872_v48, %v868_v42  ;;  %v740_v50 = vpop.f32.mrb[68].mxu1 }
 0x190   :  { %v741_v5 = vadd.f32 %v740_v50, %v4337_v60  ;;  %v742_v53 = vpop.f32.mrb[69].mxu1 }
 0x191   :  { %v743_v58 = vadd.f32 %v742_v53, %v4340_v2  ;;  %v744_v54 = vpop.f32.mrb[70].mxu1 }
 0x192   :  { %1844 = vmatmul.mubr.bf16.vlgmr.msra.gmra.mrb[48].mxu0 %v4354_v49  ;;  %2198 = vmatmul.mubr.bf16.vlgmr.msra.gmra.mrb[144].mxu1 %v4354_v49  ;;  %v875_v62 = vmax.f32 %v741_v5, 0.0  ;;  %v745_v0 = vadd.f32 %v744_v54, %v4337_v60  ;;  %v746_v3 = vpop.f32.mrb[71].mxu1  ;;  %v3949_v49 = vld [vmem:[%s5003_s5 + $0x50] sm:$0xff]  }
 0x193   :  { %1853 = vmatprep.mubr.bf16.mxu0 %v4368_v32  ;;  %2205 = vmatprep.mubr.bf16.mxu1 %v4368_v32  ;;  %v876_v45 = vmax.f32 %v743_v58, 0.0  ;;  %v747_v7 = vadd.f32 %v746_v3, %v4340_v2 }
 0x194   :  { %v879_v8 = vmax.f32 %v745_v0, 0.0  ;;  %3422 = vmatpush3.bf16.msra.mxu0 %v3946_v55 }
 0x195   :  { %v880_v28 = vmax.f32 %v747_v7, 0.0  ;;  %3423 = vmatprep.subr.bf16.mxu0 %v3947_v61  ;;  %v3966_v7 = vld [vmem:[%s5003_s5 + $0xa8] sm:$0xff]  }
 0x196   :  { %v4523_v14 = vpack.c.bf16 %v879_v8, %v875_v62  ;;  %v3952_v62 = vld [vmem:[%s5003_s5 + $0x18] sm:$0xff]  }
 0x197   :  { %v4525_v19 = vpack.c.bf16 %v880_v28, %v876_v45  ;;  %v750_v32 = vpop.f32.mrb[72].mxu1 }
 0x198   :  { %v751_v18 = vadd.f32 %v750_v32, %v4337_v60  ;;  %v752_v21 = vpop.f32.mrb[73].mxu1  ;;  %3424 = vmatpush3.bf16.msra.mxu0 %v3948_v13  ;;  %v3967_v32 = vld [vmem:[%s5003_s5 + $0xb0] sm:$0xff]  }
 0x199   :  { %v753_v26 = vadd.f32 %v752_v21, %v4340_v2  ;;  %v754_v30 = vpop.f32.mrb[74].mxu1  ;;  %3425 = vmatprep.subr.bf16.mxu0 %v3949_v49 }
 0x19a   :  { %1854 = vmatmul.mubr.bf16.gmra.mrb[52].mxu0 %v4366_v27  ;;  %2206 = vmatmul.mubr.bf16.gmra.mrb[148].mxu1 %v4366_v27  ;;  %v883_v22 = vmax.f32 %v751_v18, 0.0  ;;  %v755_v31 = vadd.f32 %v754_v30, %v4337_v60  ;;  %v756_v33 = vpop.f32.mrb[75].mxu1 }
 0x19b   :  { %1863 = vmatprep.mubr.bf16.mxu0 %v4380_v15  ;;  %2213 = vmatprep.mubr.bf16.mxu1 %v4380_v15  ;;  %v884_v35 = vmax.f32 %v753_v26, 0.0  ;;  %v757_v10 = vadd.f32 %v756_v33, %v4340_v2  ;;  %v3951_v15 = vld [vmem:[%s5003_s5 + $0x58] sm:$0xff]  }
 0x19c   :  { %v887_v37 = vmax.f32 %v755_v31, 0.0  ;;  %3426 = vmatpush3.bf16.msra.mxu0 %v3950_v23 }
 0x19d   :  { %v888_v38 = vmax.f32 %v757_v10, 0.0  ;;  %3427 = vmatprep.subr.bf16.mxu0 %v3951_v15 }
 0x19e   :  { %v4538_v42 = vpack.c.bf16 %v887_v37, %v883_v22 }
 0x19f   :  { %v4540_v47 = vpack.c.bf16 %v888_v38, %v884_v35  ;;  %v760_v4 = vpop.f32.mrb[76].mxu1 }
 0x1a0   :  { %v761_v27 = vadd.f32 %v760_v4, %v4337_v60  ;;  %v762_v48 = vpop.f32.mrb[77].mxu1  ;;  %3428 = vmatpush3.bf16.msra.mxu0 %v3952_v62 }
 0x1a1   :  { %v763_v50 = vadd.f32 %v762_v48, %v4340_v2  ;;  %v764_v5 = vpop.f32.mrb[78].mxu1 }
 0x1a2   :  { %1864 = vmatmul.mubr.bf16.gmra.mrb[56].mxu0 %v4378_v11  ;;  %2214 = vmatmul.mubr.bf16.gmra.mrb[152].mxu1 %v4378_v11  ;;  %v891_v53 = vmax.f32 %v761_v27, 0.0  ;;  %v765_v55 = vadd.f32 %v764_v5, %v4337_v60  ;;  %v766_v58 = vpop.f32.mrb[79].mxu1  ;;  %v3953_v60 = vld [vmem:[%s5003_s5 + $0x60] sm:$0xff]  }
 0x1a3   :  { %1873 = vmatprep.mubr.bf16.mxu0 %v4392_v59  ;;  %2221 = vmatprep.mubr.bf16.mxu1 %v4392_v59  ;;  %v892_v54 = vmax.f32 %v763_v50, 0.0  ;;  %v767_v61 = vadd.f32 %v766_v58, %v4340_v2  ;;  %v3954_v2 = vld [vmem:[%s5003_s5 + $0x20] sm:$0xff]   ;;  %v3956_v59 = vld [vmem:[%s5003_s5 + $0x68] sm:$0xff]  }
 0x1a4   :  { %v895_v0 = vmax.f32 %v765_v55, 0.0  ;;  %3429 = vmatprep.subr.bf16.mxu0 %v3953_v60 }
 0x1a5   :  { %v896_v3 = vmax.f32 %v767_v61, 0.0  ;;  %3430 = vmatpush3.bf16.msra.mxu0 %v3954_v2 }
 0x1a6   :  { %v4556_v11 = vpack.c.bf16 %v895_v0, %v891_v53  ;;  %3431 = vmatprep.subr.bf16.mxu0 %v3956_v59 }
 0x1a7   :  { %v4558_v45 = vpack.c.bf16 %v896_v3, %v892_v54 }
 0x1aa   :  { %1874 = vmatmul.mubr.bf16.gmra.mrb[60].mxu0 %v4390_v56  ;;  %2222 = vmatmul.mubr.bf16.gmra.mrb[156].mxu1 %v4390_v56  ;;  %v3955_v56 = vld [vmem:[%s5003_s5 + $0x80] sm:$0xff]  }
 0x1ab   :  { %1883 = vmatprep.mubr.bf16.mxu0 %v4404_v44  ;;  %2229 = vmatprep.mubr.bf16.mxu1 %v4404_v44  ;;  %v3958_v44 = vld [vmem:[%s5003_s5 + $0x88] sm:$0xff]  }
 0x1ac   :  { %3557 = vmatprep.subr.bf16.mxu1 %v3955_v56 }
 0x1ad   :  { %3558 = vmatpush3.bf16.msra.mxu1 %v3955_v56 }
 0x1ae   :  { %3559 = vmatprep.subr.bf16.mxu1 %v3958_v44 }
 0x1b1   :  { %3560 = vmatpush3.bf16.msra.mxu1 %v3958_v44 }
 0x1b2   :  { %1884 = vmatmul.mubr.bf16.gmra.mrb[64].mxu0 %v4402_v39  ;;  %2230 = vmatmul.mubr.bf16.gmra.mrb[160].mxu1 %v4402_v39  ;;  %v3957_v39 = vld [vmem:[%s5003_s5 + $0x28] sm:$0xff]  }
 0x1b3   :  { %1893 = vmatprep.mubr.bf16.mxu0 %v4416_v24  ;;  %2237 = vmatprep.mubr.bf16.mxu1 %v4416_v24  ;;  %v3960_v24 = vld [vmem:[%s5003_s5 + $0x30] sm:$0xff]  }
 0x1b4   :  { %3432 = vmatpush3.bf16.msra.mxu0 %v3957_v39 }
 0x1ba   :  { %1894 = vmatmul.mubr.bf16.gmra.mrb[68].mxu0 %v4414_v20  ;;  %2238 = vmatmul.mubr.bf16.gmra.mrb[164].mxu1 %v4414_v20  ;;  %v3959_v20 = vld [vmem:[%s5003_s5 + $0x70] sm:$0xff]  }
 0x1bb   :  { %1903 = vmatprep.mubr.bf16.mxu0 %v4428_v12  ;;  %2245 = vmatprep.mubr.bf16.mxu1 %v4428_v12  ;;  %v3962_v12 = vld [vmem:[%s5003_s5 + $0x78] sm:$0xff]  }
 0x1bc   :  { %3433 = vmatprep.subr.bf16.mxu0 %v3959_v20 }
 0x1bd   :  { %3434 = vmatpush3.bf16.msra.mxu0 %v3960_v24 }
 0x1be   :  { %3435 = vmatprep.subr.bf16.mxu0 %v3962_v12 }
 0x1c2   :  { %1904 = vmatmul.mubr.bf16.gmra.mrb[72].mxu0 %v4426_v6  ;;  %2246 = vmatmul.mubr.bf16.gmra.mrb[168].mxu1 %v4426_v6  ;;  %v3961_v6 = vld [vmem:[%s5003_s5 + $0x90] sm:$0xff]  }
 0x1c3   :  { %1913 = vmatprep.mubr.bf16.mxu0 %v4440_v57  ;;  %2253 = vmatprep.mubr.bf16.mxu1 %v4440_v57  ;;  %v3964_v57 = vld [vmem:[%s5003_s5 + $0x98] sm:$0xff]  }
 0x1c4   :  { %3561 = vmatprep.subr.bf16.mxu1 %v3961_v6 }
 0x1c5   :  { %3562 = vmatpush3.bf16.msra.mxu1 %v3961_v6 }
 0x1c6   :  { %3563 = vmatprep.subr.bf16.mxu1 %v3964_v57 }
 0x1c9   :  { %3564 = vmatpush3.bf16.msra.mxu1 %v3964_v57 }
 0x1ca   :  { %1914 = vmatmul.mubr.bf16.gmra.mrb[76].mxu0 %v4438_v34  ;;  %2254 = vmatmul.mubr.bf16.gmra.mrb[172].mxu1 %v4438_v34  ;;  %v3963_v34 = vld [vmem:[%s5003_s5 + $0x38] sm:$0xff]  }
 0x1cb   :  { %1923 = vmatprep.mubr.bf16.mxu0 %v4450_v17  ;;  %2261 = vmatprep.mubr.bf16.mxu1 %v4450_v17 }
 0x1cc   :  { %3436 = vmatpush3.bf16.msra.mxu0 %v3963_v34 }
 0x1d2   :  { %1924 = vmatmul.mubr.bf16.gmra.mrb[80].mxu0 %v4448_v16  ;;  %2262 = vmatmul.mubr.bf16.gmra.mrb[176].mxu1 %v4448_v16 }
 0x1d3   :  { %1933 = vmatprep.mubr.bf16.mxu0 %v4465_v46  ;;  %2269 = vmatprep.mubr.bf16.mxu1 %v4465_v46 }
 0x1da   :  { %1934 = vmatmul.mubr.bf16.gmra.mrb[84].mxu0 %v4463_v43  ;;  %2270 = vmatmul.mubr.bf16.gmra.mrb[180].mxu1 %v4463_v43 }
 0x1db   :  { %1943 = vmatprep.mubr.bf16.mxu0 %v4477_v1  ;;  %2277 = vmatprep.mubr.bf16.mxu1 %v4477_v1 }
 0x1e2   :  { %1944 = vmatmul.mubr.bf16.gmra.mrb[88].mxu0 %v4475_v63  ;;  %2278 = vmatmul.mubr.bf16.gmra.mrb[184].mxu1 %v4475_v63  ;;  %v3965_v63 = vld [vmem:[%s5003_s5 + $0xa0] sm:$0xff]  }
 0x1e3   :  { %1953 = vmatprep.mubr.bf16.mxu0 %v4489_v9  ;;  %2285 = vmatprep.mubr.bf16.mxu1 %v4489_v9 }
 0x1e4   :  { %3565 = vmatprep.subr.bf16.mxu1 %v3965_v63 }
 0x1e5   :  { %v3213_v16 = vpop.f32.mrb[80].mxu1  ;;  %3566 = vmatpush3.bf16.msra.mxu1 %v3965_v63 }
 0x1e6   :  { %v3214_v17 = vpop.f32.mrb[81].mxu1  ;;  %3567 = vmatprep.subr.bf16.mxu1 %v3966_v7 }
 0x1e7   :  { %v4628_v43 = vadd.f32 %v3214_v17, %v3213_v16  ;;  %v3216_v46 = vpop.f32.mrb[82].mxu1 }
 0x1e8   :  { %v3217_v1 = vpop.f32.mrb[83].mxu1 }
 0x1e9   :  { %v4633_v9 = vadd.f32 %v3217_v1, %v3216_v46  ;;  %3568 = vmatpush3.bf16.msra.mxu1 %v3966_v7 }
 0x1ea   :  { %1954 = vmatmul.mubr.bf16.gmra.mrb[92].mxu0 %v4487_v29  ;;  %2286 = vmatmul.mubr.bf16.gmra.mrb[188].mxu1 %v4487_v29 }
 0x1eb   :  { %1963 = vmatprep.mubr.bf16.mxu0 %v4501_v52  ;;  %2293 = vmatprep.mubr.bf16.mxu1 %v4501_v52  ;;  %v3968_v52 = vld [vmem:[%s5003_s5 + $0xb8] sm:$0xff]  }
 0x1ec   :  { %3569 = vmatprep.subr.bf16.mxu1 %v3967_v32 }
 0x1ed   :  { %v3219_v8 = vpop.f32.mrb[84].mxu1  ;;  %3570 = vmatpush3.bf16.msra.mxu1 %v3967_v32 }
 0x1ee   :  { %v3220_v13 = vpop.f32.mrb[85].mxu1  ;;  %3571 = vmatprep.subr.bf16.mxu1 %v3968_v52 }
 0x1ef   :  { %v4642_v28 = vadd.f32 %v3220_v13, %v3219_v8  ;;  %v3222_v49 = vpop.f32.mrb[86].mxu1 }
 0x1f0   :  { %v3223_v29 = vpop.f32.mrb[87].mxu1 }
 0x1f1   :  { %v4647_v18 = vadd.f32 %v3223_v29, %v3222_v49  ;;  %3572 = vmatpush3.bf16.msra.mxu1 %v3968_v52 }
 0x1f2   :  { %1964 = vmatmul.mubr.bf16.gmra.mrb[96].mxu0 %v4499_v51  ;;  %2294 = vmatmul.mubr.bf16.gmra.mrb[192].mxu1 %v4499_v51 }
 0x1f3   :  { %1973 = vmatprep.mubr.bf16.mxu0 %v4525_v19  ;;  %2301 = vmatprep.mubr.bf16.mxu1 %v4525_v19 }
 0x1f5   :  { %v3225_v21 = vpop.f32.mrb[88].mxu1 }
 0x1f6   :  { %v3226_v23 = vpop.f32.mrb[89].mxu1 }
 0x1f7   :  { %v4656_v26 = vadd.f32 %v3226_v23, %v3225_v21  ;;  %v3228_v30 = vpop.f32.mrb[90].mxu1 }
 0x1f8   :  { %v3229_v22 = vpop.f32.mrb[91].mxu1 }
 0x1f9   :  { %v4658_v31 = vadd.f32 %v3229_v22, %v3228_v30 }
 0x1fa   :  { %1974 = vmatmul.mubr.bf16.gmra.mrb[100].mxu0 %v4523_v14  ;;  %2302 = vmatmul.mubr.bf16.gmra.mrb[196].mxu1 %v4523_v14 }
 0x1fb   :  { %1983 = vmatprep.mubr.bf16.mxu0 %v4540_v47  ;;  %2309 = vmatprep.mubr.bf16.mxu1 %v4540_v47 }
 0x1fd   :  { %v3231_v51 = vpop.f32.mrb[92].mxu1 }
 0x1fe   :  { %v3232_v19 = vpop.f32.mrb[93].mxu1 }
 0x1ff   :  { %v4664_v33 = vadd.f32 %v3232_v19, %v3231_v51  ;;  %v3234_v35 = vpop.f32.mrb[94].mxu1 }
 0x200   :  { %v3235_v10 = vpop.f32.mrb[95].mxu1 }
 0x201   :  { %v4666_v37 = vadd.f32 %v3235_v10, %v3234_v35 }
 0x202   :  { %1984 = vmatmul.mubr.bf16.gmra.mrb[104].mxu0 %v4538_v42  ;;  %2310 = vmatmul.mubr.bf16.gmra.mrb[200].mxu1 %v4538_v42 }
 0x203   :  { %1993 = vmatprep.mubr.bf16.mxu0 %v4558_v45  ;;  %2317 = vmatprep.mubr.bf16.mxu1 %v4558_v45 }
 0x205   :  { %v3237_v14 = vpop.f32.mrb[96].mxu1 }
 0x206   :  { %v3238_v38 = vpop.f32.mrb[97].mxu1 }
 0x207   :  { %v4672_v4 = vadd.f32 %v3238_v38, %v3237_v14  ;;  %v3240_v47 = vpop.f32.mrb[98].mxu1 }
 0x208   :  { %v3241_v27 = vpop.f32.mrb[99].mxu1 }
 0x209   :  { %v4674_v48 = vadd.f32 %v3241_v27, %v3240_v47 }
 0x20a   :  { %1994 = vmatmul.mubr.bf16.gmra.mrb[108].mxu0 %v4556_v11  ;;  %2318 = vmatmul.mubr.bf16.gmra.mrb[204].mxu1 %v4556_v11 }
 0x20d   :  { %v3243_v50 = vpop.f32.mrb[100].mxu1 }
 0x20e   :  { %v3244_v5 = vpop.f32.mrb[101].mxu1 }
 0x20f   :  { %v4678_v15 = vadd.f32 %v3244_v5, %v3243_v50  ;;  %v3246_v42 = vpop.f32.mrb[102].mxu1 }
 0x210   :  { %v3247_v53 = vpop.f32.mrb[103].mxu1 }
 0x211   :  { %v4680_v55 = vadd.f32 %v3247_v53, %v3246_v42 }
 0x215   :  { %v3249_v58 = vpop.f32.mrb[104].mxu1 }
 0x216   :  { %v3250_v54 = vpop.f32.mrb[105].mxu1 }
 0x217   :  { %v4682_v61 = vadd.f32 %v3250_v54, %v3249_v58  ;;  %v3252_v62 = vpop.f32.mrb[106].mxu1 }
 0x218   :  { %v3253_v0 = vpop.f32.mrb[107].mxu1 }
 0x219   :  { %v4684_v3 = vadd.f32 %v3253_v0, %v3252_v62 }
 0x21d   :  { %v3255_v45 = vpop.f32.mrb[108].mxu1 }
 0x21e   :  { %v3256_v60 = vpop.f32.mrb[109].mxu1 }
 0x21f   :  { %v4686_v2 = vadd.f32 %v3256_v60, %v3255_v45  ;;  %v3258_v11 = vpop.f32.mrb[110].mxu1 }
 0x220   :  { %v3259_v56 = vpop.f32.mrb[111].mxu1 }
 0x221   :  { %v4688_v59 = vadd.f32 %v3259_v56, %v3258_v11 }
 0x225   :  { %v3261_v39 = vpop.f32.mrb[112].mxu1 }
 0x226   :  { %v3262_v44 = vpop.f32.mrb[113].mxu1 }
 0x227   :  { %v4690_v20 = vadd.f32 %v3262_v44, %v3261_v39  ;;  %v3264_v24 = vpop.f32.mrb[114].mxu1 }
 0x228   :  { %v3265_v6 = vpop.f32.mrb[115].mxu1 }
 0x229   :  { %v4692_v12 = vadd.f32 %v3265_v6, %v3264_v24  ;;  %v1089_v24 = vld [vmem:[%s5002_s4] sm:$0x7] }
 0x22d   :  { %v3267_v34 = vpop.f32.mrb[116].mxu1 }
 0x22e   :  { %v3268_v57 = vpop.f32.mrb[117].mxu1 }
 0x22f   :  { %v4694_v16 = vadd.f32 %v3268_v57, %v3267_v34  ;;  %v3270_v17 = vpop.f32.mrb[118].mxu1  ;;  %v4727_v57 = vrot.slane %v1089_v24, %v109_v41 }
 0x230   :  { %v3271_v46 = vpop.f32.mrb[119].mxu1 }
 0x231   :  { %v4696_v63 = vadd.f32 %v3271_v46, %v3270_v17  ;;  %v4731_v17 = vrot.slane %v1089_v24, %v117_v36  ;;  %v4735_v46 = vrot.slane %v1089_v24, %v113_v25 }
 0x233   :  { %v2042_v25 = vadd.f32 %v4633_v9, %v4731_v17  ;;  %v2047_v9 = vadd.f32 %v4642_v28, %v4731_v17 }
 0x235   :  { %v3273_v1 = vpop.f32.mrb[120].mxu1 }
 0x236   :  { %v3274_v7 = vpop.f32.mrb[121].mxu1 }
 0x237   :  { %v4698_v8 = vadd.f32 %v3274_v7, %v3273_v1  ;;  %v3276_v13 = vpop.f32.mrb[122].mxu1 }
 0x238   :  { %v3277_v49 = vpop.f32.mrb[123].mxu1 }
 0x239   :  { %v4700_v32 = vadd.f32 %v3277_v49, %v3276_v13 }
 0x23d   :  { %v3279_v29 = vpop.f32.mrb[124].mxu1 }
 0x23e   :  { %v3280_v52 = vpop.f32.mrb[125].mxu1 }
 0x23f   :  { %v4702_v21 = vadd.f32 %v3280_v52, %v3279_v29  ;;  %v3282_v23 = vpop.f32.mrb[126].mxu1  ;;  %v2039_v52 = vadd.f32 %v4628_v43, %v4731_v17 }
 0x240   :  { %v3283_v30 = vpop.f32.mrb[127].mxu1 }
 0x241   :  { %v4704_v22 = vadd.f32 %v3283_v30, %v3282_v23 }
 0x245   :  { %v3285_v51 = vpop.f32.mrb[128].mxu1 }
 0x246   :  { %v3286_v19 = vpop.f32.mrb[129].mxu1 }
 0x247   :  { %v4706_v35 = vadd.f32 %v3286_v19, %v3285_v51  ;;  %v3288_v10 = vpop.f32.mrb[130].mxu1 }
 0x248   :  { %v3289_v14 = vpop.f32.mrb[131].mxu1 }
 0x249   :  { %v4708_v38 = vadd.f32 %v3289_v14, %v3288_v10 }
 0x24d   :  { %v3291_v47 = vpop.f32.mrb[132].mxu1 }
 0x24e   :  { %v3292_v27 = vpop.f32.mrb[133].mxu1 }
 0x24f   :  { %v4710_v50 = vadd.f32 %v3292_v27, %v3291_v47  ;;  %v3294_v5 = vpop.f32.mrb[134].mxu1 }
 0x250   :  { %v3295_v42 = vpop.f32.mrb[135].mxu1 }
 0x251   :  { %v4712_v53 = vadd.f32 %v3295_v42, %v3294_v5 }
 0x255   :  { %v3297_v58 = vpop.f32.mrb[136].mxu1 }
 0x256   :  { %v3298_v54 = vpop.f32.mrb[137].mxu1 }
 0x257   :  { %v4714_v62 = vadd.f32 %v3298_v54, %v3297_v58  ;;  %v3300_v0 = vpop.f32.mrb[138].mxu1 }
 0x258   :  { %v3301_v45 = vpop.f32.mrb[139].mxu1 }
 0x259   :  { %v4716_v60 = vadd.f32 %v3301_v45, %v3300_v0 }
 0x25d   :  { %v3303_v11 = vpop.f32.mrb[140].mxu1 }
 0x25e   :  { %v3304_v56 = vpop.f32.mrb[141].mxu1 }
 0x25f   :  { %v4718_v39 = vadd.f32 %v3304_v56, %v3303_v11  ;;  %v3306_v44 = vpop.f32.mrb[142].mxu1 }
 0x260   :  { %v3307_v6 = vpop.f32.mrb[143].mxu1 }
 0x261   :  { %v4723_v34 = vadd.f32 %v3307_v6, %v3306_v44 }
 0x265   :  { %v1845_v1 = vpop.f32.mrb[48].mxu0  ;;  %v3325_v7 = vpop.f32.mrb[144].mxu1 }
 0x266   :  { %v3621_v13 = vadd.f32 %v1845_v1, %v4727_v57  ;;  %v1847_v49 = vpop.f32.mrb[49].mxu0  ;;  %v3326_v29 = vpop.f32.mrb[145].mxu1 }
 0x267   :  { %v3622_v41 = vadd.f32 %v1847_v49, %v4735_v46  ;;  %v3327_v23 = vadd.f32 %v3326_v29, %v3325_v7  ;;  %v1849_v30 = vpop.f32.mrb[50].mxu0  ;;  %v3328_v51 = vpop.f32.mrb[146].mxu1 }
 0x268   :  { %v3623_v36 = vadd.f32 %v1849_v30, %v4727_v57  ;;  %v1851_v19 = vpop.f32.mrb[51].mxu0  ;;  %v3329_v40 = vpop.f32.mrb[147].mxu1  ;;  %v2326_v27 = vmax.f32 %v3621_v13, 0.0 }
 0x269   :  { %v2200_v10 = vadd.f32 %v3327_v23, %v2039_v52  ;;  %v3624_v14 = vadd.f32 %v1851_v19, %v4735_v46  ;;  %v3330_v47 = vadd.f32 %v3329_v40, %v3328_v51  ;;  %v2327_v42 = vmax.f32 %v3622_v41, 0.0 }
 0x26a   :  { %v2329_v5 = vmax.f32 %v3623_v36, 0.0  ;;  %v2050_v51 = vadd.f32 %v4647_v18, %v4731_v17 }
 0x26b   :  { %v2330_v43 = vmax.f32 %v3624_v14, 0.0  ;;  %v2203_v58 = vadd.f32 %v3330_v47, %v2042_v25  ;;  %v2328_v0 = vmax.f32 %v2200_v10, 0.0 }
 0x26c   :  { %v2422_v54 = vpack.c.bf16 %v2329_v5, %v2326_v27 }
 0x26d   :  { %v2423_v45 = vpack.c.bf16 %v2330_v43, %v2327_v42  ;;  %v2331_v11 = vmax.f32 %v2203_v58, 0.0  ;;  %v1855_v56 = vpop.f32.mrb[52].mxu0  ;;  %v3331_v44 = vpop.f32.mrb[148].mxu1 }
 0x26e   :  { %v3625_v24 = vadd.f32 %v1855_v56, %v4727_v57  ;;  %v1857_v6 = vpop.f32.mrb[53].mxu0  ;;  %v3332_v1 = vpop.f32.mrb[149].mxu1 }
 0x26f   :  { %v3626_v7 = vadd.f32 %v1857_v6, %v4735_v46  ;;  %v3333_v13 = vadd.f32 %v3332_v1, %v3331_v44  ;;  %v1859_v49 = vpop.f32.mrb[54].mxu0  ;;  %v3334_v29 = vpop.f32.mrb[150].mxu1  ;;  %2701 = vmatprep.mubr.bf16.mxu0 %v2423_v45  ;;  %v2424_v52 = vpack.c.bf16 %v2331_v11, %v2328_v0  ;;  %v2055_v11 = vadd.f32 %v4656_v26, %v4731_v17 }
 0x270   :  { %v3627_v41 = vadd.f32 %v1859_v49, %v4727_v57  ;;  %v1861_v23 = vpop.f32.mrb[55].mxu0  ;;  %v3335_v30 = vpop.f32.mrb[151].mxu1  ;;  %2702 = vmatmul.mubr.bf16.vlgmr.msra.gmra.mrb[112].mxu0 %v2422_v54  ;;  %v2332_v28 = vmax.f32 %v3625_v24, 0.0  ;;  %v2058_v49 = vadd.f32 %v4658_v31, %v4731_v17 }
 0x271   :  { %v2208_v36 = vadd.f32 %v3333_v13, %v2047_v9  ;;  %v3628_v19 = vadd.f32 %v1861_v23, %v4735_v46  ;;  %v3336_v40 = vadd.f32 %v3335_v30, %v3334_v29  ;;  %3573 = vmatprep.mubr.bf16.mxu1 %v2424_v52  ;;  %v2333_v10 = vmax.f32 %v3626_v7, 0.0 }
 0x272   :  { %v2335_v25 = vmax.f32 %v3627_v41, 0.0 }
 0x273   :  { %v2336_v14 = vmax.f32 %v3628_v19, 0.0  ;;  %v2211_v47 = vadd.f32 %v3336_v40, %v2050_v51  ;;  %v2334_v5 = vmax.f32 %v2208_v36, 0.0 }
 0x274   :  { %v2425_v27 = vpack.c.bf16 %v2335_v25, %v2332_v28 }
 0x275   :  { %v2426_v42 = vpack.c.bf16 %v2336_v14, %v2333_v10  ;;  %v2337_v43 = vmax.f32 %v2211_v47, 0.0  ;;  %v1865_v58 = vpop.f32.mrb[56].mxu0  ;;  %v3337_v0 = vpop.f32.mrb[152].mxu1 }
 0x276   :  { %v3629_v54 = vadd.f32 %v1865_v58, %v4727_v57  ;;  %v1867_v45 = vpop.f32.mrb[57].mxu0  ;;  %v3338_v18 = vpop.f32.mrb[153].mxu1 }
 0x277   :  { %v2427_v56 = vpack.c.bf16 %v2337_v43, %v2334_v5  ;;  %v3630_v44 = vadd.f32 %v1867_v45, %v4735_v46  ;;  %v3339_v24 = vadd.f32 %v3338_v18, %v3337_v0  ;;  %v1869_v6 = vpop.f32.mrb[58].mxu0  ;;  %v3340_v1 = vpop.f32.mrb[154].mxu1  ;;  %2709 = vmatprep.mubr.bf16.mxu0 %v2426_v42  ;;  %v2063_v5 = vadd.f32 %v4664_v33, %v4731_v17 }
 0x278   :  { %v3631_v9 = vadd.f32 %v1869_v6, %v4727_v57  ;;  %v1871_v7 = vpop.f32.mrb[59].mxu0  ;;  %v3341_v13 = vpop.f32.mrb[155].mxu1  ;;  %2710 = vmatmul.mubr.bf16.gmra.mrb[116].mxu0 %v2425_v27  ;;  %v2338_v26 = vmax.f32 %v3629_v54, 0.0 }
 0x279   :  { %v2216_v29 = vadd.f32 %v3339_v24, %v2055_v11  ;;  %v3632_v52 = vadd.f32 %v1871_v7, %v4735_v46  ;;  %v3342_v41 = vadd.f32 %v3341_v13, %v3340_v1  ;;  %3574 = vmatmul.mubr.bf16.vlgmr.msra.gmra.mrb[208].mxu1 %v2427_v56  ;;  %v2339_v30 = vmax.f32 %v3630_v44, 0.0 }
 0x27a   :  { %v2341_v23 = vmax.f32 %v3631_v9, 0.0  ;;  %v2066_v56 = vadd.f32 %v4666_v37, %v4731_v17 }
 0x27b   :  { %v2342_v51 = vmax.f32 %v3632_v52, 0.0  ;;  %v2219_v36 = vadd.f32 %v3342_v41, %v2058_v49  ;;  %v2340_v40 = vmax.f32 %v2216_v29, 0.0 }
 0x27c   :  { %v2428_v19 = vpack.c.bf16 %v2341_v23, %v2338_v26 }
 0x27d   :  { %v2429_v28 = vpack.c.bf16 %v2342_v51, %v2339_v30  ;;  %v2343_v25 = vmax.f32 %v2219_v36, 0.0  ;;  %v1875_v10 = vpop.f32.mrb[60].mxu0  ;;  %v3343_v14 = vpop.f32.mrb[156].mxu1  ;;  %v2071_v36 = vadd.f32 %v4672_v4, %v4731_v17 }
 0x27e   :  { %v3633_v47 = vadd.f32 %v1875_v10, %v4727_v57  ;;  %v1877_v27 = vpop.f32.mrb[61].mxu0  ;;  %v3344_v31 = vpop.f32.mrb[157].mxu1 }
 0x27f   :  { %v3634_v42 = vadd.f32 %v1877_v27, %v4735_v46  ;;  %v3345_v43 = vadd.f32 %v3344_v31, %v3343_v14  ;;  %v1879_v58 = vpop.f32.mrb[62].mxu0  ;;  %v3346_v0 = vpop.f32.mrb[158].mxu1  ;;  %2717 = vmatprep.mubr.bf16.mxu0 %v2429_v28  ;;  %v2430_v54 = vpack.c.bf16 %v2343_v25, %v2340_v40  ;;  %v2074_v31 = vadd.f32 %v4674_v48, %v4731_v17 }
 0x280   :  { %v3635_v45 = vadd.f32 %v1879_v58, %v4727_v57  ;;  %v1881_v18 = vpop.f32.mrb[63].mxu0  ;;  %v3347_v11 = vpop.f32.mrb[159].mxu1  ;;  %2718 = vmatmul.mubr.bf16.gmra.mrb[120].mxu0 %v2428_v19  ;;  %v2344_v33 = vmax.f32 %v3633_v47, 0.0 }
 0x281   :  { %v2224_v44 = vadd.f32 %v3345_v43, %v2063_v5  ;;  %v3636_v24 = vadd.f32 %v1881_v18, %v4735_v46  ;;  %v3348_v6 = vadd.f32 %v3347_v11, %v3346_v0  ;;  %3577 = vmatprep.mubr.bf16.mxu1 %v2430_v54  ;;  %v2345_v9 = vmax.f32 %v3634_v42, 0.0 }
 0x282   :  { %v2347_v1 = vmax.f32 %v3635_v45, 0.0 }
 0x283   :  { %v2348_v7 = vmax.f32 %v3636_v24, 0.0  ;;  %v2227_v13 = vadd.f32 %v3348_v6, %v2066_v56  ;;  %v2346_v29 = vmax.f32 %v2224_v44, 0.0 }
 0x284   :  { %v2431_v49 = vpack.c.bf16 %v2347_v1, %v2344_v33 }
 0x285   :  { %v2432_v52 = vpack.c.bf16 %v2348_v7, %v2345_v9  ;;  %v2349_v41 = vmax.f32 %v2227_v13, 0.0  ;;  %v1885_v26 = vpop.f32.mrb[64].mxu0  ;;  %v3349_v23 = vpop.f32.mrb[160].mxu1  ;;  %v2079_v9 = vadd.f32 %v4678_v15, %v4731_v17 }
 0x286   :  { %v3637_v30 = vadd.f32 %v1885_v26, %v4727_v57  ;;  %v1887_v51 = vpop.f32.mrb[65].mxu0  ;;  %v3350_v37 = vpop.f32.mrb[161].mxu1 }
 0x287   :  { %v3638_v19 = vadd.f32 %v1887_v51, %v4735_v46  ;;  %v3351_v40 = vadd.f32 %v3350_v37, %v3349_v23  ;;  %v1889_v28 = vpop.f32.mrb[66].mxu0  ;;  %v3352_v25 = vpop.f32.mrb[162].mxu1  ;;  %2725 = vmatprep.mubr.bf16.mxu0 %v2432_v52  ;;  %v2433_v10 = vpack.c.bf16 %v2349_v41, %v2346_v29 }
 0x288   :  { %v3639_v14 = vadd.f32 %v1889_v28, %v4727_v57  ;;  %v1891_v47 = vpop.f32.mrb[67].mxu0  ;;  %v3353_v27 = vpop.f32.mrb[163].mxu1  ;;  %2726 = vmatmul.mubr.bf16.gmra.mrb[124].mxu0 %v2431_v49  ;;  %v2350_v4 = vmax.f32 %v3637_v30, 0.0  ;;  %v2082_v30 = vadd.f32 %v4680_v55, %v4731_v17 }
 0x289   :  { %v2232_v5 = vadd.f32 %v3351_v40, %v2071_v36  ;;  %v3640_v42 = vadd.f32 %v1891_v47, %v4735_v46  ;;  %v3354_v43 = vadd.f32 %v3353_v27, %v3352_v25  ;;  %3578 = vmatmul.mubr.bf16.gmra.mrb[212].mxu1 %v2433_v10  ;;  %v2351_v0 = vmax.f32 %v3638_v19, 0.0 }
 0x28a   :  { %v2353_v58 = vmax.f32 %v3639_v14, 0.0 }
 0x28b   :  { %v2354_v54 = vmax.f32 %v3640_v42, 0.0  ;;  %v2235_v45 = vadd.f32 %v3354_v43, %v2074_v31  ;;  %v2352_v11 = vmax.f32 %v2232_v5, 0.0 }
 0x28c   :  { %v2434_v18 = vpack.c.bf16 %v2353_v58, %v2350_v4  ;;  %v2087_v4 = vadd.f32 %v4682_v61, %v4731_v17 }
 0x28d   :  { %v2435_v56 = vpack.c.bf16 %v2354_v54, %v2351_v0  ;;  %v2355_v44 = vmax.f32 %v2235_v45, 0.0  ;;  %v1895_v24 = vpop.f32.mrb[68].mxu0  ;;  %v3355_v6 = vpop.f32.mrb[164].mxu1 }
 0x28e   :  { %v3641_v33 = vadd.f32 %v1895_v24, %v4727_v57  ;;  %v1897_v1 = vpop.f32.mrb[69].mxu0  ;;  %v3356_v48 = vpop.f32.mrb[165].mxu1  ;;  %v2090_v24 = vadd.f32 %v4684_v3, %v4731_v17 }
 0x28f   :  { %v3642_v7 = vadd.f32 %v1897_v1, %v4735_v46  ;;  %v3357_v13 = vadd.f32 %v3356_v48, %v3355_v6  ;;  %v1899_v49 = vpop.f32.mrb[70].mxu0  ;;  %v3358_v29 = vpop.f32.mrb[166].mxu1  ;;  %2733 = vmatprep.mubr.bf16.mxu0 %v2435_v56  ;;  %v2436_v52 = vpack.c.bf16 %v2355_v44, %v2352_v11 }
 0x290   :  { %v3643_v41 = vadd.f32 %v1899_v49, %v4727_v57  ;;  %v1901_v26 = vpop.f32.mrb[71].mxu0  ;;  %v3359_v23 = vpop.f32.mrb[167].mxu1  ;;  %2734 = vmatmul.mubr.bf16.gmra.mrb[128].mxu0 %v2434_v18  ;;  %v2356_v15 = vmax.f32 %v3641_v33, 0.0 }
 0x291   :  { %v2240_v51 = vadd.f32 %v3357_v13, %v2079_v9  ;;  %v3644_v37 = vadd.f32 %v1901_v26, %v4735_v46  ;;  %v3360_v36 = vadd.f32 %v3359_v23, %v3358_v29  ;;  %3581 = vmatprep.mubr.bf16.mxu1 %v2436_v52  ;;  %v2357_v40 = vmax.f32 %v3642_v7, 0.0 }
 0x292   :  { %v2359_v19 = vmax.f32 %v3643_v41, 0.0 }
 0x293   :  { %v2360_v28 = vmax.f32 %v3644_v37, 0.0  ;;  %v2243_v25 = vadd.f32 %v3360_v36, %v2082_v30  ;;  %v2358_v14 = vmax.f32 %v2240_v51, 0.0  ;;  %v2095_v37 = vadd.f32 %v4686_v2, %v4731_v17 }
 0x294   :  { %v2437_v10 = vpack.c.bf16 %v2359_v19, %v2356_v15 }
 0x295   :  { %v2438_v47 = vpack.c.bf16 %v2360_v28, %v2357_v40  ;;  %v2361_v27 = vmax.f32 %v2243_v25, 0.0  ;;  %v1905_v31 = vpop.f32.mrb[72].mxu0  ;;  %v3361_v5 = vpop.f32.mrb[168].mxu1 }
 0x296   :  { %v3645_v42 = vadd.f32 %v1905_v31, %v4727_v57  ;;  %v1907_v43 = vpop.f32.mrb[73].mxu0  ;;  %v3362_v55 = vpop.f32.mrb[169].mxu1 }
 0x297   :  { %v3646_v58 = vadd.f32 %v1907_v43, %v4735_v46  ;;  %v3363_v0 = vadd.f32 %v3362_v55, %v3361_v5  ;;  %v1909_v54 = vpop.f32.mrb[74].mxu0  ;;  %v3364_v45 = vpop.f32.mrb[170].mxu1  ;;  %2741 = vmatprep.mubr.bf16.mxu0 %v2438_v47  ;;  %v2439_v18 = vpack.c.bf16 %v2361_v27, %v2358_v14  ;;  %v2098_v47 = vadd.f32 %v4688_v59, %v4731_v17 }
 0x298   :  { %v3647_v11 = vadd.f32 %v1909_v54, %v4727_v57  ;;  %v1911_v56 = vpop.f32.mrb[75].mxu0  ;;  %v3365_v44 = vpop.f32.mrb[171].mxu1  ;;  %2742 = vmatmul.mubr.bf16.gmra.mrb[132].mxu0 %v2437_v10  ;;  %v2362_v61 = vmax.f32 %v3645_v42, 0.0 }
 0x299   :  { %v2248_v6 = vadd.f32 %v3363_v0, %v2087_v4  ;;  %v3648_v33 = vadd.f32 %v1911_v56, %v4735_v46  ;;  %v3366_v1 = vadd.f32 %v3365_v44, %v3364_v45  ;;  %3582 = vmatmul.mubr.bf16.gmra.mrb[216].mxu1 %v2439_v18  ;;  %v2363_v9 = vmax.f32 %v3646_v58, 0.0 }
 0x29a   :  { %v2365_v48 = vmax.f32 %v3647_v11, 0.0 }
 0x29b   :  { %v2366_v7 = vmax.f32 %v3648_v33, 0.0  ;;  %v2251_v13 = vadd.f32 %v3366_v1, %v2090_v24  ;;  %v2364_v29 = vmax.f32 %v2248_v6, 0.0  ;;  %v2103_v24 = vadd.f32 %v4690_v20, %v4731_v17 }
 0x29c   :  { %v2440_v49 = vpack.c.bf16 %v2365_v48, %v2362_v61 }
 0x29d   :  { %v2441_v52 = vpack.c.bf16 %v2366_v7, %v2363_v9  ;;  %v2367_v41 = vmax.f32 %v2251_v13, 0.0  ;;  %v1915_v26 = vpop.f32.mrb[76].mxu0  ;;  %v3367_v23 = vpop.f32.mrb[172].mxu1 }
 0x29e   :  { %v3649_v30 = vadd.f32 %v1915_v26, %v4727_v57  ;;  %v1917_v51 = vpop.f32.mrb[77].mxu0  ;;  %v3368_v3 = vpop.f32.mrb[173].mxu1 }
 0x29f   :  { %v3650_v36 = vadd.f32 %v1917_v51, %v4735_v46  ;;  %v3369_v15 = vadd.f32 %v3368_v3, %v3367_v23  ;;  %v1919_v19 = vpop.f32.mrb[78].mxu0  ;;  %v3370_v40 = vpop.f32.mrb[174].mxu1  ;;  %2749 = vmatprep.mubr.bf16.mxu0 %v2441_v52  ;;  %v2442_v28 = vpack.c.bf16 %v2367_v41, %v2364_v29 }
 0x2a0   :  { %v3651_v25 = vadd.f32 %v1919_v19, %v4727_v57  ;;  %v1921_v10 = vpop.f32.mrb[79].mxu0  ;;  %v3371_v14 = vpop.f32.mrb[175].mxu1  ;;  %2750 = vmatmul.mubr.bf16.gmra.mrb[136].mxu0 %v2440_v49  ;;  %v2368_v2 = vmax.f32 %v3649_v30, 0.0  ;;  %v2106_v49 = vadd.f32 %v4692_v12, %v4731_v17 }
 0x2a1   :  { %v2256_v27 = vadd.f32 %v3369_v15, %v2095_v37  ;;  %v3652_v31 = vadd.f32 %v1921_v10, %v4735_v46  ;;  %v3372_v5 = vadd.f32 %v3371_v14, %v3370_v40  ;;  %3585 = vmatprep.mubr.bf16.mxu1 %v2442_v28  ;;  %v2369_v43 = vmax.f32 %v3650_v36, 0.0 }
 0x2a2   :  { %v2371_v42 = vmax.f32 %v3651_v25, 0.0  ;;  %v2111_v10 = vadd.f32 %v4694_v16, %v4731_v17 }
 0x2a3   :  { %v2372_v55 = vmax.f32 %v3652_v31, 0.0  ;;  %v2259_v4 = vadd.f32 %v3372_v5, %v2098_v47  ;;  %v2370_v0 = vmax.f32 %v2256_v27, 0.0 }
 0x2a4   :  { %v2443_v58 = vpack.c.bf16 %v2371_v42, %v2368_v2 }
 0x2a5   :  { %v2444_v54 = vpack.c.bf16 %v2372_v55, %v2369_v43  ;;  %v2373_v45 = vmax.f32 %v2259_v4, 0.0  ;;  %v1925_v18 = vpop.f32.mrb[80].mxu0  ;;  %v3373_v11 = vpop.f32.mrb[176].mxu1  ;;  %v2114_v55 = vadd.f32 %v4696_v63, %v4731_v17 }
 0x2a6   :  { %v3653_v56 = vadd.f32 %v1925_v18, %v4727_v57  ;;  %v1927_v44 = vpop.f32.mrb[81].mxu0  ;;  %v3374_v59 = vpop.f32.mrb[177].mxu1 }
 0x2a7   :  { %v3654_v6 = vadd.f32 %v1927_v44, %v4735_v46  ;;  %v3375_v33 = vadd.f32 %v3374_v59, %v3373_v11  ;;  %v1929_v1 = vpop.f32.mrb[82].mxu0  ;;  %v3376_v61 = vpop.f32.mrb[178].mxu1  ;;  %2757 = vmatprep.mubr.bf16.mxu0 %v2444_v54  ;;  %v2445_v48 = vpack.c.bf16 %v2373_v45, %v2370_v0 }
 0x2a8   :  { %v3655_v9 = vadd.f32 %v1929_v1, %v4727_v57  ;;  %v1931_v7 = vpop.f32.mrb[83].mxu0  ;;  %v3377_v13 = vpop.f32.mrb[179].mxu1  ;;  %2758 = vmatmul.mubr.bf16.gmra.mrb[140].mxu0 %v2443_v58  ;;  %v2374_v20 = vmax.f32 %v3653_v56, 0.0 }
 0x2a9   :  { %v2264_v29 = vadd.f32 %v3375_v33, %v2103_v24  ;;  %v3656_v52 = vadd.f32 %v1931_v7, %v4735_v46  ;;  %v3378_v41 = vadd.f32 %v3377_v13, %v3376_v61  ;;  %3586 = vmatmul.mubr.bf16.gmra.mrb[220].mxu1 %v2445_v48  ;;  %v2375_v23 = vmax.f32 %v3654_v6, 0.0 }
 0x2aa   :  { %v2377_v26 = vmax.f32 %v3655_v9, 0.0  ;;  %v2119_v48 = vadd.f32 %v4698_v8, %v4731_v17 }
 0x2ab   :  { %v2378_v30 = vmax.f32 %v3656_v52, 0.0  ;;  %v2267_v51 = vadd.f32 %v3378_v41, %v2106_v49  ;;  %v2376_v37 = vmax.f32 %v2264_v29, 0.0 }
 0x2ac   :  { %v2446_v3 = vpack.c.bf16 %v2377_v26, %v2374_v20  ;;  %v2122_v26 = vadd.f32 %v4700_v32, %v4731_v17 }
 0x2ad   :  { %v2447_v36 = vpack.c.bf16 %v2378_v30, %v2375_v23  ;;  %v2379_v15 = vmax.f32 %v2267_v51, 0.0  ;;  %v1935_v19 = vpop.f32.mrb[84].mxu0  ;;  %v3379_v40 = vpop.f32.mrb[180].mxu1 }
 0x2ae   :  { %v3657_v28 = vadd.f32 %v1935_v19, %v4727_v57  ;;  %v1937_v25 = vpop.f32.mrb[85].mxu0  ;;  %v3380_v12 = vpop.f32.mrb[181].mxu1 }
 0x2af   :  { %v3658_v14 = vadd.f32 %v1937_v25, %v4735_v46  ;;  %v3381_v47 = vadd.f32 %v3380_v12, %v3379_v40  ;;  %v1939_v27 = vpop.f32.mrb[86].mxu0  ;;  %v3382_v31 = vpop.f32.mrb[182].mxu1  ;;  %2765 = vmatprep.mubr.bf16.mxu0 %v2447_v36  ;;  %v2448_v5 = vpack.c.bf16 %v2379_v15, %v2376_v37 }
 0x2b0   :  { %v3659_v2 = vadd.f32 %v1939_v27, %v4727_v57  ;;  %v1941_v42 = vpop.f32.mrb[87].mxu0  ;;  %v3383_v43 = vpop.f32.mrb[183].mxu1  ;;  %2766 = vmatmul.mubr.bf16.gmra.mrb[144].mxu0 %v2446_v3  ;;  %v2380_v16 = vmax.f32 %v3657_v28, 0.0  ;;  %v2127_v27 = vadd.f32 %v4702_v21, %v4731_v17 }
 0x2b1   :  { %v2272_v4 = vadd.f32 %v3381_v47, %v2111_v10  ;;  %v3660_v58 = vadd.f32 %v1941_v42, %v4735_v46  ;;  %v3384_v0 = vadd.f32 %v3383_v43, %v3382_v31  ;;  %3589 = vmatprep.mubr.bf16.mxu1 %v2448_v5  ;;  %v2381_v45 = vmax.f32 %v3658_v14, 0.0 }
 0x2b2   :  { %v2383_v54 = vmax.f32 %v3659_v2, 0.0 }
 0x2b3   :  { %v2384_v18 = vmax.f32 %v3660_v58, 0.0  ;;  %v2275_v11 = vadd.f32 %v3384_v0, %v2114_v55  ;;  %v2382_v44 = vmax.f32 %v2272_v4, 0.0  ;;  %v2130_v0 = vadd.f32 %v4704_v22, %v4731_v17 }
 0x2b4   :  { %v2449_v56 = vpack.c.bf16 %v2383_v54, %v2380_v16 }
 0x2b5   :  { %v2450_v59 = vpack.c.bf16 %v2384_v18, %v2381_v45  ;;  %v2385_v24 = vmax.f32 %v2275_v11, 0.0  ;;  %v1945_v6 = vpop.f32.mrb[88].mxu0  ;;  %v3385_v33 = vpop.f32.mrb[184].mxu1 }
 0x2b6   :  { %v3661_v1 = vadd.f32 %v1945_v6, %v4727_v57  ;;  %v1947_v61 = vpop.f32.mrb[89].mxu0  ;;  %v3386_v63 = vpop.f32.mrb[185].mxu1 }
 0x2b7   :  { %v3662_v9 = vadd.f32 %v1947_v61, %v4735_v46  ;;  %v3387_v7 = vadd.f32 %v3386_v63, %v3385_v33  ;;  %v1949_v13 = vpop.f32.mrb[90].mxu0  ;;  %v3388_v49 = vpop.f32.mrb[186].mxu1  ;;  %2773 = vmatprep.mubr.bf16.mxu0 %v2450_v59  ;;  %v2451_v29 = vpack.c.bf16 %v2385_v24, %v2382_v44 }
 0x2b8   :  { %v3663_v52 = vadd.f32 %v1949_v13, %v4727_v57  ;;  %v1951_v41 = vpop.f32.mrb[91].mxu0  ;;  %v3389_v20 = vpop.f32.mrb[187].mxu1  ;;  %2774 = vmatmul.mubr.bf16.gmra.mrb[148].mxu0 %v2449_v56  ;;  %v2386_v8 = vmax.f32 %v3661_v1, 0.0 }
 0x2b9   :  { %v2280_v23 = vadd.f32 %v3387_v7, %v2119_v48  ;;  %v3664_v30 = vadd.f32 %v1951_v41, %v4735_v46  ;;  %v3390_v51 = vadd.f32 %v3389_v20, %v3388_v49  ;;  %3590 = vmatmul.mubr.bf16.gmra.mrb[224].mxu1 %v2451_v29  ;;  %v2387_v37 = vmax.f32 %v3662_v9, 0.0 }
 0x2ba   :  { %v2389_v3 = vmax.f32 %v3663_v52, 0.0  ;;  %v2135_v9 = vadd.f32 %v4706_v35, %v4731_v17 }
 0x2bb   :  { %v2390_v36 = vmax.f32 %v3664_v30, 0.0  ;;  %v2283_v15 = vadd.f32 %v3390_v51, %v2122_v26  ;;  %v2388_v40 = vmax.f32 %v2280_v23, 0.0  ;;  %v2138_v23 = vadd.f32 %v4708_v38, %v4731_v17 }
 0x2bc   :  { %v2452_v19 = vpack.c.bf16 %v2389_v3, %v2386_v8 }
 0x2bd   :  { %v2453_v28 = vpack.c.bf16 %v2390_v36, %v2387_v37  ;;  %v2391_v25 = vmax.f32 %v2283_v15, 0.0  ;;  %v1955_v12 = vpop.f32.mrb[92].mxu0  ;;  %v3391_v10 = vpop.f32.mrb[188].mxu1 }
 0x2be   :  { %v3665_v14 = vadd.f32 %v1955_v12, %v4727_v57  ;;  %v1957_v47 = vpop.f32.mrb[93].mxu0  ;;  %v3392_v32 = vpop.f32.mrb[189].mxu1 }
 0x2bf   :  { %v3666_v31 = vadd.f32 %v1957_v47, %v4735_v46  ;;  %v3393_v5 = vadd.f32 %v3392_v32, %v3391_v10  ;;  %v1959_v2 = vpop.f32.mrb[94].mxu0  ;;  %v3394_v42 = vpop.f32.mrb[190].mxu1  ;;  %2781 = vmatprep.mubr.bf16.mxu0 %v2453_v28  ;;  %v2454_v43 = vpack.c.bf16 %v2391_v25, %v2388_v40  ;;  %v2143_v32 = vadd.f32 %v4710_v50, %v4731_v17 }
 0x2c0   :  { %v3667_v55 = vadd.f32 %v1959_v2, %v4727_v57  ;;  %v1961_v4 = vpop.f32.mrb[95].mxu0  ;;  %v3395_v58 = vpop.f32.mrb[191].mxu1  ;;  %2782 = vmatmul.mubr.bf16.gmra.mrb[152].mxu0 %v2452_v19  ;;  %v2392_v21 = vmax.f32 %v3665_v14, 0.0 }
 0x2c1   :  { %v2288_v16 = vadd.f32 %v3393_v5, %v2127_v27  ;;  %v3668_v54 = vadd.f32 %v1961_v4, %v4735_v46  ;;  %v3396_v45 = vadd.f32 %v3395_v58, %v3394_v42  ;;  %3593 = vmatprep.mubr.bf16.mxu1 %v2454_v43  ;;  %v2393_v11 = vmax.f32 %v3666_v31, 0.0 }
 0x2c2   :  { %v2395_v18 = vmax.f32 %v3667_v55, 0.0  ;;  %v2146_v58 = vadd.f32 %v4712_v53, %v4731_v17 }
 0x2c3   :  { %v2396_v56 = vmax.f32 %v3668_v54, 0.0  ;;  %v2291_v44 = vadd.f32 %v3396_v45, %v2130_v0  ;;  %v2394_v24 = vmax.f32 %v2288_v16, 0.0 }
 0x2c4   :  { %v2455_v59 = vpack.c.bf16 %v2395_v18, %v2392_v21 }
 0x2c5   :  { %v2456_v6 = vpack.c.bf16 %v2396_v56, %v2393_v11  ;;  %v2397_v33 = vmax.f32 %v2291_v44, 0.0  ;;  %v1965_v1 = vpop.f32.mrb[96].mxu0  ;;  %v3397_v61 = vpop.f32.mrb[192].mxu1 }
 0x2c6   :  { %v3669_v63 = vadd.f32 %v1965_v1, %v4727_v57  ;;  %v1967_v48 = vpop.f32.mrb[97].mxu0  ;;  %v3398_v22 = vpop.f32.mrb[193].mxu1 }
 0x2c7   :  { %v3670_v7 = vadd.f32 %v1967_v48, %v4735_v46  ;;  %v3399_v13 = vadd.f32 %v3398_v22, %v3397_v61  ;;  %v1969_v49 = vpop.f32.mrb[98].mxu0  ;;  %v3400_v29 = vpop.f32.mrb[194].mxu1  ;;  %2789 = vmatprep.mubr.bf16.mxu0 %v2456_v6  ;;  %v2457_v52 = vpack.c.bf16 %v2397_v33, %v2394_v24 }
 0x2c8   :  { %v3671_v41 = vadd.f32 %v1969_v49, %v4727_v57  ;;  %v1971_v20 = vpop.f32.mrb[99].mxu0  ;;  %v3401_v26 = vpop.f32.mrb[195].mxu1  ;;  %2790 = vmatmul.mubr.bf16.gmra.mrb[156].mxu0 %v2455_v59  ;;  %v2398_v35 = vmax.f32 %v3669_v63, 0.0  ;;  %v2151_v63 = vadd.f32 %v4714_v62, %v4731_v17 }
 0x2c9   :  { %v2296_v30 = vadd.f32 %v3399_v13, %v2135_v9  ;;  %v3672_v51 = vadd.f32 %v1971_v20, %v4735_v46  ;;  %v3402_v8 = vadd.f32 %v3401_v26, %v3400_v29  ;;  %3594 = vmatmul.mubr.bf16.gmra.mrb[228].mxu1 %v2457_v52  ;;  %v2399_v37 = vmax.f32 %v3670_v7, 0.0 }
 0x2ca   :  { %v2401_v3 = vmax.f32 %v3671_v41, 0.0  ;;  %v2154_v41 = vadd.f32 %v4716_v60, %v4731_v17 }
 0x2cb   :  { %v2402_v36 = vmax.f32 %v3672_v51, 0.0  ;;  %v2299_v15 = vadd.f32 %v3402_v8, %v2138_v23  ;;  %v2400_v40 = vmax.f32 %v2296_v30, 0.0 }
 0x2cc   :  { %v2458_v19 = vpack.c.bf16 %v2401_v3, %v2398_v35 }
 0x2cd   :  { %v2459_v28 = vpack.c.bf16 %v2402_v36, %v2399_v37  ;;  %v2403_v25 = vmax.f32 %v2299_v15, 0.0  ;;  %v1975_v12 = vpop.f32.mrb[100].mxu0  ;;  %v3403_v10 = vpop.f32.mrb[196].mxu1 }
 0x2ce   :  { %v3673_v14 = vadd.f32 %v1975_v12, %v4727_v57  ;;  %v1977_v47 = vpop.f32.mrb[101].mxu0  ;;  %v3404_v38 = vpop.f32.mrb[197].mxu1  ;;  %v2159_v12 = vadd.f32 %v4718_v39, %v4731_v17 }
 0x2cf   :  { %v3674_v27 = vadd.f32 %v1977_v47, %v4735_v46  ;;  %v3405_v31 = vadd.f32 %v3404_v38, %v3403_v10  ;;  %v1979_v5 = vpop.f32.mrb[102].mxu0  ;;  %v3406_v2 = vpop.f32.mrb[198].mxu1  ;;  %2797 = vmatprep.mubr.bf16.mxu0 %v2459_v28  ;;  %v2460_v42 = vpack.c.bf16 %v2403_v25, %v2400_v40 }
 0x2d0   :  { %v3675_v43 = vadd.f32 %v1979_v5, %v4727_v57  ;;  %v1981_v55 = vpop.f32.mrb[103].mxu0  ;;  %v3407_v4 = vpop.f32.mrb[199].mxu1  ;;  %2798 = vmatmul.mubr.bf16.gmra.mrb[160].mxu0 %v2458_v19  ;;  %v2404_v50 = vmax.f32 %v3673_v14, 0.0 }
 0x2d1   :  { %v2304_v0 = vadd.f32 %v3405_v31, %v2143_v32  ;;  %v3676_v16 = vadd.f32 %v1981_v55, %v4735_v46  ;;  %v3408_v54 = vadd.f32 %v3407_v4, %v3406_v2  ;;  %3597 = vmatprep.mubr.bf16.mxu1 %v2460_v42  ;;  %v2405_v21 = vmax.f32 %v3674_v27, 0.0 }
 0x2d2   :  { %v2407_v45 = vmax.f32 %v3675_v43, 0.0  ;;  %v2162_v2 = vadd.f32 %v4723_v34, %v4731_v17 }
 0x2d3   :  { %v2408_v18 = vmax.f32 %v3676_v16, 0.0  ;;  %v2307_v11 = vadd.f32 %v3408_v54, %v2146_v58  ;;  %v2406_v44 = vmax.f32 %v2304_v0, 0.0 }
 0x2d4   :  { %v2461_v56 = vpack.c.bf16 %v2407_v45, %v2404_v50 }
 0x2d5   :  { %v2462_v59 = vpack.c.bf16 %v2408_v18, %v2405_v21  ;;  %v2409_v24 = vmax.f32 %v2307_v11, 0.0  ;;  %v1985_v6 = vpop.f32.mrb[104].mxu0  ;;  %v3409_v33 = vpop.f32.mrb[200].mxu1 }
 0x2d6   :  { %v3677_v1 = vadd.f32 %v1985_v6, %v4727_v57  ;;  %v1987_v61 = vpop.f32.mrb[105].mxu0  ;;  %v3410_v53 = vpop.f32.mrb[201].mxu1 }
 0x2d7   :  { %v3678_v48 = vadd.f32 %v1987_v61, %v4735_v46  ;;  %v3411_v22 = vadd.f32 %v3410_v53, %v3409_v33  ;;  %v1989_v9 = vpop.f32.mrb[106].mxu0  ;;  %v3412_v7 = vpop.f32.mrb[202].mxu1  ;;  %2805 = vmatprep.mubr.bf16.mxu0 %v2462_v59  ;;  %v2463_v13 = vpack.c.bf16 %v2409_v24, %v2406_v44  ;;  %v4868_v44 = vld [vmem:[%s5004_s6] ss:$0 sm:$0xff] }
 0x2d8   :  { %v3679_v49 = vadd.f32 %v1989_v9, %v4727_v57  ;;  %v1991_v29 = vpop.f32.mrb[107].mxu0  ;;  %v3413_v52 = vpop.f32.mrb[203].mxu1  ;;  %2806 = vmatmul.mubr.bf16.gmra.mrb[164].mxu0 %v2461_v56  ;;  %v2410_v62 = vmax.f32 %v3677_v1, 0.0 }
 0x2d9   :  { %v2312_v20 = vadd.f32 %v3411_v22, %v2151_v63  ;;  %v3680_v26 = vadd.f32 %v1991_v29, %v4735_v46  ;;  %v3414_v23 = vadd.f32 %v3413_v52, %v3412_v7  ;;  %3598 = vmatmul.mubr.bf16.gmra.mrb[232].mxu1 %v2463_v13  ;;  %v2411_v51 = vmax.f32 %v3678_v48, 0.0 }
 0x2da   :  { %v2413_v30 = vmax.f32 %v3679_v49, 0.0 }
 0x2db   :  { %v2414_v8 = vmax.f32 %v3680_v26, 0.0  ;;  %v2315_v35 = vadd.f32 %v3414_v23, %v2154_v41  ;;  %v2412_v37 = vmax.f32 %v2312_v20, 0.0 }
 0x2dc   :  { %v2464_v3 = vpack.c.bf16 %v2413_v30, %v2410_v62 }
 0x2dd   :  { %v2465_v36 = vpack.c.bf16 %v2414_v8, %v2411_v51  ;;  %v2415_v15 = vmax.f32 %v2315_v35, 0.0  ;;  %v1995_v19 = vpop.f32.mrb[108].mxu0  ;;  %v3415_v40 = vpop.f32.mrb[204].mxu1 }
 0x2de   :  { %v3681_v28 = vadd.f32 %v1995_v19, %v4727_v57  ;;  %v1997_v25 = vpop.f32.mrb[109].mxu0  ;;  %v3416_v60 = vpop.f32.mrb[205].mxu1 }
 0x2df   :  { %v3682_v10 = vadd.f32 %v1997_v25, %v4735_v46  ;;  %v3417_v14 = vadd.f32 %v3416_v60, %v3415_v40  ;;  %v1999_v47 = vpop.f32.mrb[110].mxu0  ;;  %v3418_v38 = vpop.f32.mrb[206].mxu1  ;;  %2813 = vmatprep.mubr.bf16.mxu0 %v2465_v36  ;;  %v2466_v32 = vpack.c.bf16 %v2415_v15, %v2412_v37 }
 0x2e0   :  { %v3683_v27 = vadd.f32 %v1999_v47, %v4727_v57  ;;  %v2001_v31 = vpop.f32.mrb[111].mxu0  ;;  %v3419_v5 = vpop.f32.mrb[207].mxu1  ;;  %2814 = vmatmul.mubr.bf16.gmra.mrb[168].mxu0 %v2464_v3  ;;  %v2416_v39 = vmax.f32 %v3681_v28, 0.0 }
 0x2e1   :  { %v2320_v42 = vadd.f32 %v3417_v14, %v2159_v12  ;;  %v3684_v43 = vadd.f32 %v2001_v31, %v4735_v46  ;;  %v3420_v55 = vadd.f32 %v3419_v5, %v3418_v38  ;;  %3601 = vmatprep.mubr.bf16.mxu1 %v2466_v32  ;;  %v2417_v58 = vmax.f32 %v3682_v10, 0.0 }
 0x2e2   :  { %v2419_v4 = vmax.f32 %v3683_v27, 0.0 }
 0x2e3   :  { %v2420_v0 = vmax.f32 %v3684_v43, 0.0  ;;  %v2323_v16 = vadd.f32 %v3420_v55, %v2162_v2  ;;  %v2418_v50 = vmax.f32 %v2320_v42, 0.0 }
 0x2e4   :  { %v2467_v54 = vpack.c.bf16 %v2419_v4, %v2416_v39 }
 0x2e5   :  { %v2468_v45 = vpack.c.bf16 %v2420_v0, %v2417_v58  ;;  %v2421_v57 = vmax.f32 %v2323_v16, 0.0 }
 0x2e7   :  { %2821 = vmatprep.mubr.bf16.mxu0 %v2468_v45  ;;  %v2469_v21 = vpack.c.bf16 %v2421_v57, %v2418_v50 }
 0x2e8   :  { %2822 = vmatmul.mubr.bf16.gmra.mrb[172].mxu0 %v2467_v54 }
 0x2e9   :  { %3602 = vmatmul.mubr.bf16.gmra.mrb[236].mxu1 %v2469_v21 }
 0x343   :  { %v3437_v18 = vpop.f32.mrb[112].mxu0 }
 0x344   :  { %v3438_v34 = vpop.f32.mrb[113].mxu0 }
 0x345   :  { %v3439_v17 = vadd.f32 %v3438_v34, %v3437_v18  ;;  %v3440_v11 = vpop.f32.mrb[114].mxu0 }
 0x346   :  { %v3441_v46 = vpop.f32.mrb[115].mxu0 }
 0x347   :  { %v3442_v56 = vadd.f32 %v3441_v46, %v3440_v11  ;;  %v2704_v33 = vadd.f32 %v3439_v17, %v4868_v44 }
 0x349   :  { %v2707_v9 = vadd.f32 %v3442_v56, %v4868_v44 }
 0x34b   :  { %v3443_v59 = vpop.f32.mrb[116].mxu0 }
 0x34c   :  { %v3444_v24 = vpop.f32.mrb[117].mxu0  ;;  %v3575_v6 = vpop.f32.mrb[208].mxu1 }
 0x34d   :  { %v3445_v1 = vadd.f32 %v3444_v24, %v3443_v59  ;;  %v3446_v61 = vpop.f32.mrb[118].mxu0  ;;  %v2864_v53 = vpop.f32.mrb[209].mxu1 }
 0x34e   :  { %v2865_v63 = vadd.f32 %v2864_v53, %v2704_v33  ;;  %v3447_v48 = vpop.f32.mrb[119].mxu0  ;;  %v3576_v22 = vpop.f32.mrb[210].mxu1 }
 0x34f   :  { %v2712_v7 = vadd.f32 %v3445_v1, %v4868_v44  ;;  %v3448_v13 = vadd.f32 %v3447_v48, %v3446_v61  ;;  %v2867_v49 = vpop.f32.mrb[211].mxu1 }
 0x350   :  { %2991 = vst [vmem:[%s5005_s7] sm:$0xff] %v2865_v63  ;;  %v2868_v29 = vadd.f32 %v2867_v49, %v2707_v9 }
 0x351   :  { %v2873_v52 = vadd.f32 %v3575_v6, %v2712_v7  ;;  %v2715_v41 = vadd.f32 %v3448_v13, %v4868_v44 }
 0x352   :  { %2992 = vst [vmem:[%s5005_s7 + $0x8] sm:$0xff] %v2868_v29 }
 0x353   :  { %2993 = vst [vmem:[%s5005_s7 + $0x10] sm:$0xff] %v2873_v52  ;;  %v2876_v20 = vadd.f32 %v3576_v22, %v2715_v41  ;;  %v3449_v26 = vpop.f32.mrb[120].mxu0 }
 0x354   :  { %v3450_v23 = vpop.f32.mrb[121].mxu0 }
 0x355   :  { %2994 = vst [vmem:[%s5005_s7 + $0x18] sm:$0xff] %v2876_v20  ;;  %v3451_v62 = vadd.f32 %v3450_v23, %v3449_v26  ;;  %v3452_v30 = vpop.f32.mrb[122].mxu0 }
 0x356   :  { %v3453_v51 = vpop.f32.mrb[123].mxu0 }
 0x357   :  { %v3454_v8 = vadd.f32 %v3453_v51, %v3452_v30  ;;  %v2720_v36 = vadd.f32 %v3451_v62, %v4868_v44 }
 0x359   :  { %v2723_v12 = vadd.f32 %v3454_v8, %v4868_v44 }
 0x35b   :  { %v3455_v35 = vpop.f32.mrb[124].mxu0 }
 0x35c   :  { %v3456_v3 = vpop.f32.mrb[125].mxu0  ;;  %v3579_v37 = vpop.f32.mrb[212].mxu1 }
 0x35d   :  { %v3457_v15 = vadd.f32 %v3456_v3, %v3455_v35  ;;  %v3458_v19 = vpop.f32.mrb[126].mxu0  ;;  %v2880_v40 = vpop.f32.mrb[213].mxu1 }
 0x35e   :  { %v2881_v28 = vadd.f32 %v2880_v40, %v2720_v36  ;;  %v3459_v25 = vpop.f32.mrb[127].mxu0  ;;  %v3580_v60 = vpop.f32.mrb[214].mxu1 }
 0x35f   :  { %v2728_v10 = vadd.f32 %v3457_v15, %v4868_v44  ;;  %v3460_v14 = vadd.f32 %v3459_v25, %v3458_v19  ;;  %v2883_v47 = vpop.f32.mrb[215].mxu1 }
 0x360   :  { %2995 = vst [vmem:[%s5005_s7 + $0x20] sm:$0xff] %v2881_v28  ;;  %v2884_v38 = vadd.f32 %v2883_v47, %v2723_v12 }
 0x361   :  { %v2889_v32 = vadd.f32 %v3579_v37, %v2728_v10  ;;  %v2731_v27 = vadd.f32 %v3460_v14, %v4868_v44 }
 0x362   :  { %2996 = vst [vmem:[%s5005_s7 + $0x28] sm:$0xff] %v2884_v38 }
 0x363   :  { %2997 = vst [vmem:[%s5005_s7 + $0x30] sm:$0xff] %v2889_v32  ;;  %v2892_v31 = vadd.f32 %v3580_v60, %v2731_v27  ;;  %v3461_v5 = vpop.f32.mrb[128].mxu0 }
 0x364   :  { %v3462_v2 = vpop.f32.mrb[129].mxu0 }
 0x365   :  { %2998 = vst [vmem:[%s5005_s7 + $0x38] sm:$0xff] %v2892_v31  ;;  %v3463_v42 = vadd.f32 %v3462_v2, %v3461_v5  ;;  %v3464_v43 = vpop.f32.mrb[130].mxu0 }
 0x366   :  { %v3465_v55 = vpop.f32.mrb[131].mxu0 }
 0x367   :  { %v3466_v39 = vadd.f32 %v3465_v55, %v3464_v43  ;;  %v2736_v16 = vadd.f32 %v3463_v42, %v4868_v44 }
 0x369   :  { %v2739_v34 = vadd.f32 %v3466_v39, %v4868_v44 }
 0x36b   :  { %v3467_v4 = vpop.f32.mrb[132].mxu0 }
 0x36c   :  { %v3468_v58 = vpop.f32.mrb[133].mxu0  ;;  %v3583_v0 = vpop.f32.mrb[216].mxu1 }
 0x36d   :  { %v3469_v54 = vadd.f32 %v3468_v58, %v3467_v4  ;;  %v3470_v50 = vpop.f32.mrb[134].mxu0  ;;  %v2896_v45 = vpop.f32.mrb[217].mxu1 }
 0x36e   :  { %v2897_v57 = vadd.f32 %v2896_v45, %v2736_v16  ;;  %v3471_v21 = vpop.f32.mrb[135].mxu0  ;;  %v3584_v18 = vpop.f32.mrb[218].mxu1 }
 0x36f   :  { %v2744_v17 = vadd.f32 %v3469_v54, %v4868_v44  ;;  %v3472_v11 = vadd.f32 %v3471_v21, %v3470_v50  ;;  %v2899_v46 = vpop.f32.mrb[219].mxu1 }
 0x370   :  { %2999 = vst [vmem:[%s5005_s7 + $0x40] sm:$0xff] %v2897_v57  ;;  %v2900_v56 = vadd.f32 %v2899_v46, %v2739_v34 }
 0x371   :  { %v2905_v59 = vadd.f32 %v3583_v0, %v2744_v17  ;;  %v2747_v24 = vadd.f32 %v3472_v11, %v4868_v44 }
 0x372   :  { %3000 = vst [vmem:[%s5005_s7 + $0x48] sm:$0xff] %v2900_v56 }
 0x373   :  { %3001 = vst [vmem:[%s5005_s7 + $0x50] sm:$0xff] %v2905_v59  ;;  %v2908_v6 = vadd.f32 %v3584_v18, %v2747_v24  ;;  %v3473_v33 = vpop.f32.mrb[136].mxu0 }
 0x374   :  { %v3474_v1 = vpop.f32.mrb[137].mxu0 }
 0x375   :  { %3002 = vst [vmem:[%s5005_s7 + $0x58] sm:$0xff] %v2908_v6  ;;  %v3475_v61 = vadd.f32 %v3474_v1, %v3473_v33  ;;  %v3476_v53 = vpop.f32.mrb[138].mxu0 }
 0x376   :  { %v3477_v63 = vpop.f32.mrb[139].mxu0 }
 0x377   :  { %v3478_v48 = vadd.f32 %v3477_v63, %v3476_v53  ;;  %v2752_v13 = vadd.f32 %v3475_v61, %v4868_v44 }
 0x379   :  { %v2755_v23 = vadd.f32 %v3478_v48, %v4868_v44 }
 0x37b   :  { %v3479_v22 = vpop.f32.mrb[140].mxu0 }
 0x37c   :  { %v3480_v9 = vpop.f32.mrb[141].mxu0  ;;  %v3587_v7 = vpop.f32.mrb[220].mxu1 }
 0x37d   :  { %v3481_v49 = vadd.f32 %v3480_v9, %v3479_v22  ;;  %v3482_v29 = vpop.f32.mrb[142].mxu0  ;;  %v2912_v52 = vpop.f32.mrb[221].mxu1 }
 0x37e   :  { %v2913_v41 = vadd.f32 %v2912_v52, %v2752_v13  ;;  %v3483_v20 = vpop.f32.mrb[143].mxu0  ;;  %v3588_v26 = vpop.f32.mrb[222].mxu1 }
 0x37f   :  { %v2760_v62 = vadd.f32 %v3481_v49, %v4868_v44  ;;  %v3484_v30 = vadd.f32 %v3483_v20, %v3482_v29  ;;  %v2915_v51 = vpop.f32.mrb[223].mxu1 }
 0x380   :  { %3003 = vst [vmem:[%s5005_s7 + $0x60] sm:$0xff] %v2913_v41  ;;  %v2916_v8 = vadd.f32 %v2915_v51, %v2755_v23 }
 0x381   :  { %v2921_v35 = vadd.f32 %v3587_v7, %v2760_v62  ;;  %v2763_v3 = vadd.f32 %v3484_v30, %v4868_v44 }
 0x382   :  { %3004 = vst [vmem:[%s5005_s7 + $0x68] sm:$0xff] %v2916_v8 }
 0x383   :  { %3005 = vst [vmem:[%s5005_s7 + $0x70] sm:$0xff] %v2921_v35  ;;  %v2924_v37 = vadd.f32 %v3588_v26, %v2763_v3  ;;  %v3485_v36 = vpop.f32.mrb[144].mxu0 }
 0x384   :  { %v3486_v15 = vpop.f32.mrb[145].mxu0 }
 0x385   :  { %3006 = vst [vmem:[%s5005_s7 + $0x78] sm:$0xff] %v2924_v37  ;;  %v3487_v19 = vadd.f32 %v3486_v15, %v3485_v36  ;;  %v3488_v40 = vpop.f32.mrb[146].mxu0 }
 0x386   :  { %v3489_v28 = vpop.f32.mrb[147].mxu0 }
 0x387   :  { %v3490_v25 = vadd.f32 %v3489_v28, %v3488_v40  ;;  %v2768_v14 = vadd.f32 %v3487_v19, %v4868_v44 }
 0x389   :  { %v2771_v2 = vadd.f32 %v3490_v25, %v4868_v44 }
 0x38b   :  { %v3491_v60 = vpop.f32.mrb[148].mxu0 }
 0x38c   :  { %v3492_v12 = vpop.f32.mrb[149].mxu0  ;;  %v3591_v10 = vpop.f32.mrb[224].mxu1 }
 0x38d   :  { %v3493_v47 = vadd.f32 %v3492_v12, %v3491_v60  ;;  %v3494_v38 = vpop.f32.mrb[150].mxu0  ;;  %v2928_v32 = vpop.f32.mrb[225].mxu1 }
 0x38e   :  { %v2929_v27 = vadd.f32 %v2928_v32, %v2768_v14  ;;  %v3495_v31 = vpop.f32.mrb[151].mxu0  ;;  %v3592_v5 = vpop.f32.mrb[226].mxu1 }
 0x38f   :  { %v2776_v42 = vadd.f32 %v3493_v47, %v4868_v44  ;;  %v3496_v43 = vadd.f32 %v3495_v31, %v3494_v38  ;;  %v2931_v55 = vpop.f32.mrb[227].mxu1 }
 0x390   :  { %3007 = vst [vmem:[%s5005_s7 + $0x80] sm:$0xff] %v2929_v27  ;;  %v2932_v39 = vadd.f32 %v2931_v55, %v2771_v2 }
 0x391   :  { %v2937_v4 = vadd.f32 %v3591_v10, %v2776_v42  ;;  %v2779_v58 = vadd.f32 %v3496_v43, %v4868_v44 }
 0x392   :  { %3008 = vst [vmem:[%s5005_s7 + $0x88] sm:$0xff] %v2932_v39 }
 0x393   :  { %3009 = vst [vmem:[%s5005_s7 + $0x90] sm:$0xff] %v2937_v4  ;;  %v2940_v0 = vadd.f32 %v3592_v5, %v2779_v58  ;;  %v3497_v16 = vpop.f32.mrb[152].mxu0 }
 0x394   :  { %v3498_v54 = vpop.f32.mrb[153].mxu0 }
 0x395   :  { %3010 = vst [vmem:[%s5005_s7 + $0x98] sm:$0xff] %v2940_v0  ;;  %v3499_v50 = vadd.f32 %v3498_v54, %v3497_v16  ;;  %v3500_v45 = vpop.f32.mrb[154].mxu0 }
 0x396   :  { %v3501_v57 = vpop.f32.mrb[155].mxu0 }
 0x397   :  { %v3502_v21 = vadd.f32 %v3501_v57, %v3500_v45  ;;  %v2784_v11 = vadd.f32 %v3499_v50, %v4868_v44 }
 0x399   :  { %v2787_v1 = vadd.f32 %v3502_v21, %v4868_v44 }
 0x39b   :  { %v3503_v18 = vpop.f32.mrb[156].mxu0 }
 0x39c   :  { %v3504_v34 = vpop.f32.mrb[157].mxu0  ;;  %v3595_v17 = vpop.f32.mrb[228].mxu1 }
 0x39d   :  { %v3505_v46 = vadd.f32 %v3504_v34, %v3503_v18  ;;  %v3506_v56 = vpop.f32.mrb[158].mxu0  ;;  %v2944_v59 = vpop.f32.mrb[229].mxu1 }
 0x39e   :  { %v2945_v24 = vadd.f32 %v2944_v59, %v2784_v11  ;;  %v3507_v6 = vpop.f32.mrb[159].mxu0  ;;  %v3596_v33 = vpop.f32.mrb[230].mxu1 }
 0x39f   :  { %v2792_v61 = vadd.f32 %v3505_v46, %v4868_v44  ;;  %v3508_v53 = vadd.f32 %v3507_v6, %v3506_v56  ;;  %v2947_v63 = vpop.f32.mrb[231].mxu1 }
 0x3a0   :  { %3011 = vst [vmem:[%s5005_s7 + $0xa0] sm:$0xff] %v2945_v24  ;;  %v2948_v48 = vadd.f32 %v2947_v63, %v2787_v1 }
 0x3a1   :  { %v2953_v22 = vadd.f32 %v3595_v17, %v2792_v61  ;;  %v2795_v9 = vadd.f32 %v3508_v53, %v4868_v44 }
 0x3a2   :  { %3012 = vst [vmem:[%s5005_s7 + $0xa8] sm:$0xff] %v2948_v48 }
 0x3a3   :  { %3013 = vst [vmem:[%s5005_s7 + $0xb0] sm:$0xff] %v2953_v22  ;;  %v2956_v7 = vadd.f32 %v3596_v33, %v2795_v9  ;;  %v3509_v13 = vpop.f32.mrb[160].mxu0 }
 0x3a4   :  { %v3510_v49 = vpop.f32.mrb[161].mxu0 }
 0x3a5   :  { %3014 = vst [vmem:[%s5005_s7 + $0xb8] sm:$0xff] %v2956_v7  ;;  %v3511_v29 = vadd.f32 %v3510_v49, %v3509_v13  ;;  %v3512_v52 = vpop.f32.mrb[162].mxu0 }
 0x3a6   :  { %v3513_v41 = vpop.f32.mrb[163].mxu0 }
 0x3a7   :  { %v3514_v20 = vadd.f32 %v3513_v41, %v3512_v52  ;;  %v2800_v30 = vadd.f32 %v3511_v29, %v4868_v44 }
 0x3a9   :  { %v2803_v15 = vadd.f32 %v3514_v20, %v4868_v44 }
 0x3ab   :  { %v3515_v26 = vpop.f32.mrb[164].mxu0 }
 0x3ac   :  { %v3516_v23 = vpop.f32.mrb[165].mxu0  ;;  %v3599_v62 = vpop.f32.mrb[232].mxu1 }
 0x3ad   :  { %v3517_v51 = vadd.f32 %v3516_v23, %v3515_v26  ;;  %v3518_v8 = vpop.f32.mrb[166].mxu0  ;;  %v2960_v35 = vpop.f32.mrb[233].mxu1 }
 0x3ae   :  { %v2961_v3 = vadd.f32 %v2960_v35, %v2800_v30  ;;  %v3519_v37 = vpop.f32.mrb[167].mxu0  ;;  %v3600_v36 = vpop.f32.mrb[234].mxu1 }
 0x3af   :  { %v2808_v19 = vadd.f32 %v3517_v51, %v4868_v44  ;;  %v3520_v40 = vadd.f32 %v3519_v37, %v3518_v8  ;;  %v2963_v28 = vpop.f32.mrb[235].mxu1 }
 0x3b0   :  { %3015 = vst [vmem:[%s5005_s7 + $0xc0] sm:$0xff] %v2961_v3  ;;  %v2964_v25 = vadd.f32 %v2963_v28, %v2803_v15 }
 0x3b1   :  { %v2969_v60 = vadd.f32 %v3599_v62, %v2808_v19  ;;  %v2811_v12 = vadd.f32 %v3520_v40, %v4868_v44 }
 0x3b2   :  { %3016 = vst [vmem:[%s5005_s7 + $0xc8] sm:$0xff] %v2964_v25 }
 0x3b3   :  { %3017 = vst [vmem:[%s5005_s7 + $0xd0] sm:$0xff] %v2969_v60  ;;  %v2972_v10 = vadd.f32 %v3600_v36, %v2811_v12  ;;  %v3521_v14 = vpop.f32.mrb[168].mxu0 }
 0x3b4   :  { %v3522_v47 = vpop.f32.mrb[169].mxu0 }
 0x3b5   :  { %3018 = vst [vmem:[%s5005_s7 + $0xd8] sm:$0xff] %v2972_v10  ;;  %v3523_v38 = vadd.f32 %v3522_v47, %v3521_v14  ;;  %v3524_v32 = vpop.f32.mrb[170].mxu0 }
 0x3b6   :  { %v3525_v27 = vpop.f32.mrb[171].mxu0 }
 0x3b7   :  { %v3526_v31 = vadd.f32 %v3525_v27, %v3524_v32  ;;  %v2816_v43 = vadd.f32 %v3523_v38, %v4868_v44 }
 0x3b9   :  { %v2819_v54 = vadd.f32 %v3526_v31, %v4868_v44 }
 0x3bb   :  { %v3527_v5 = vpop.f32.mrb[172].mxu0 }
 0x3bc   :  { %v3528_v2 = vpop.f32.mrb[173].mxu0  ;;  %v3603_v42 = vpop.f32.mrb[236].mxu1 }
 0x3bd   :  { %v3529_v55 = vadd.f32 %v3528_v2, %v3527_v5  ;;  %v3530_v39 = vpop.f32.mrb[174].mxu0  ;;  %v2976_v4 = vpop.f32.mrb[237].mxu1 }
 0x3be   :  { %v2977_v58 = vadd.f32 %v2976_v4, %v2816_v43  ;;  %v3531_v0 = vpop.f32.mrb[175].mxu0  ;;  %v3604_v16 = vpop.f32.mrb[238].mxu1 }
 0x3bf   :  { %v2824_v50 = vadd.f32 %v3529_v55, %v4868_v44  ;;  %v3532_v45 = vadd.f32 %v3531_v0, %v3530_v39  ;;  %v2979_v57 = vpop.f32.mrb[239].mxu1 }
 0x3c0   :  { %3019 = vst [vmem:[%s5005_s7 + $0xe0] sm:$0xff] %v2977_v58  ;;  %v2980_v21 = vadd.f32 %v2979_v57, %v2819_v54 }
 0x3c1   :  { %v2985_v18 = vadd.f32 %v3603_v42, %v2824_v50  ;;  %v2827_v34 = vadd.f32 %v3532_v45, %v4868_v44 }
 0x3c2   :  { %3020 = vst [vmem:[%s5005_s7 + $0xe8] sm:$0xff] %v2980_v21 }
 0x3c3   :  { %3021 = vst [vmem:[%s5005_s7 + $0xf0] sm:$0xff] %v2985_v18  ;;  %v2988_v17 = vadd.f32 %v3604_v16, %v2827_v34 }
 0x3c5   :  { %3022 = vst [vmem:[%s5005_s7 + $0xf8] sm:$0xff] %v2988_v17 }
 0x3c6   :  { %3027 = vsyncpa [#allocation3], 1 }

// kernel: _critic_forward_impl.1
= control target key start
LH: loop header
LB: loop body
LE: loop exit
PB: predicated region body
PF: predicated region fallthrough
CT: control target
= control target key end

     0   :  { %12 = vsyncpa [#allocation3], 0  ;;  %s3993_s24 = smov [#allocation2]   ;;  %s4998_s0 = inlined_call_operand.vmem [shape: bf16[256,128], index: 0, kind: input, shape index: {}]   ;;  %s4999_s1 = inlined_call_operand.vmem [shape: bf16[128,512], index: 1, kind: input, shape index: {}]   ;;  %s5000_s2 = inlined_call_operand.vmem [shape: f32[1,512], index: 2, kind: input, shape index: {}]   ;;  %s5001_s3 = inlined_call_operand.hbm [shape: bf16[512,384], index: 3, kind: input, shape index: {}]   ;;  %s5002_s4 = inlined_call_operand.vmem [shape: f32[1,384], index: 4, kind: input, shape index: {}]   ;;  %s5003_s5 = inlined_call_operand.vmem [shape: bf16[384,128], index: 5, kind: input, shape index: {}]   ;;  %s5004_s6 = inlined_call_operand.vmem [shape: f32[1,128], index: 6, kind: input, shape index: {}]   ;;  %s5005_s7 = inlined_call_operand.vmem [shape: f32[256,128], index: 7, kind: output, shape index: {}]  }
   0x1   :  { %s24_s25 = sshll.u32 %s3993_s24, 4  ;;  %s3969_s28 = scalar_lea.hbm %s5001_s3, 12288  ;;  %s25_s25 = int_to_ptr.vmem [resolvable:$true] %s24_s25 }
   0x2   :  { %p3970_p0 = scmp.ne.s32.totalorder %s5001_s3, %s3969_s28  ;;  %p3973_p1 = scmp.lt.u32.totalorder %s3969_s28, %s5001_s3 }
   0x4   :  { %p3975_p2 = pnand %p3973_p1, %p3970_p0 }
   0x6   :  { %3978 = shalt.err (!%p3975_p2)
}
   0x7   :  { %s3979_s10 = scalar_lea.vmem %s25_s25, 12288  ;;  %p3984_p4 = scmp.lt.s32.totalorder %s25_s25, %s25_s25 }
   0x8   :  { %p3980_p3 = scmp.ne.s32.totalorder %s25_s25, %s3979_s10  ;;  %p3985_p5 = scmp.lt.s32.totalorder %s3979_s10, %s3979_s10 }
   0xa   :  { %p3986_p6 = por %p3985_p5, %p3984_p4 }
   0xc   :  { %p3987_p7 = pnand %p3986_p6, %p3980_p3 }
   0xe   :  { %3990 = shalt.err (!%p3987_p7)
}
   0xf   :  { %s3994_s11 = smov 192   ;;  %s3995_s12 = smov 12  }
  0x10   :  { %30 = dma.hbm_to_vmem [thread:$0]  %s5001_s3, 12288, %s25_s25, [#allocation3], %s3994_s11, %s3994_s11, %s3995_s12  }
  0x11   :  { %3991 = dma.done.wait [#allocation3], 12288  }
  0x12   :  { %3992 = vsyncadd [#allocation3], 4294955008  ;;  %v3996_v0 = vmov 0   ;;  %v3753_v1 = vld [vmem:[%s4999_s1 + $0x4] ss:$16 sps:$4 sm:$0xff]   ;;  %v4131_v24 = vld [vmem:[%s4998_s0 + $0x8] sm:$0xff]  }
  0x13   :  { %415 = vmatprep.mubr.bf16.mxu0 %v3996_v0  ;;  %535 = vmatprep.mubr.bf16.mxu1 %v3996_v0  ;;  %v3755_v2 = vld [vmem:[%s4999_s1] ss:$16 sps:$4 sm:$0xff]   ;;  %v3756_v3 = vld [vmem:[%s4999_s1 + $0x24] ss:$16 sps:$4 sm:$0xff]   ;;  %v3788_v17 = vld [vmem:[%s4999_s1 + $0xc] ss:$16 sps:$4 sm:$0xff]  }
  0x14   :  { %383 = vmatprep.subr.bf16.mxu0 %v3753_v1  ;;  %3605 = vmatprep.subr.bf16.mxu1 %v3753_v1  ;;  %v3758_v4 = vld [vmem:[%s4999_s1 + $0x20] ss:$16 sps:$4 sm:$0xff]   ;;  %v3759_v5 = vld [vmem:[%s4999_s1 + $0x44] ss:$16 sps:$4 sm:$0xff]   ;;  %v3786_v20 = vld [vmem:[%s4999_s1 + $0x8] ss:$16 sps:$4 sm:$0xff]  }
  0x15   :  { %384 = vmatpush1.bf16.msra.mxu0 %v3755_v2  ;;  %3613 = vmatpush1.bf16.msra.mxu1 %v3755_v2  ;;  %v3761_v6 = vld [vmem:[%s4999_s1 + $0x40] ss:$16 sps:$4 sm:$0xff]   ;;  %v3762_v7 = vld [vmem:[%s4999_s1 + $0x64] ss:$16 sps:$4 sm:$0xff]   ;;  %v3792_v21 = vld [vmem:[%s4999_s1 + $0x2c] ss:$16 sps:$4 sm:$0xff]  }
  0x16   :  { %385 = vmatprep.subr.bf16.mxu0 %v3756_v3  ;;  %3606 = vmatprep.subr.bf16.mxu1 %v3756_v3  ;;  %v3764_v8 = vld [vmem:[%s4999_s1 + $0x60] ss:$16 sps:$4 sm:$0xff]   ;;  %v3765_v9 = vld [vmem:[%s4999_s1 + $0x84] ss:$16 sps:$4 sm:$0xff]   ;;  %v3790_v22 = vld [vmem:[%s4999_s1 + $0x28] ss:$16 sps:$4 sm:$0xff]  }
  0x17   :  { %v3767_v10 = vld [vmem:[%s4999_s1 + $0x80] ss:$16 sps:$4 sm:$0xff]   ;;  %v3768_v11 = vld [vmem:[%s4999_s1 + $0xa4] ss:$16 sps:$4 sm:$0xff]   ;;  %v3796_v23 = vld [vmem:[%s4999_s1 + $0x4c] ss:$16 sps:$4 sm:$0xff]  }
  0x18   :  { %v3770_v12 = vld [vmem:[%s4999_s1 + $0xa0] ss:$16 sps:$4 sm:$0xff]   ;;  %v3771_v13 = vld [vmem:[%s4999_s1 + $0xc4] ss:$16 sps:$4 sm:$0xff]   ;;  %v4136_v25 = vld [vmem:[%s4998_s0 + $0x68] sm:$0xff]  }
  0x19   :  { %386 = vmatpush1.bf16.msra.mxu0 %v3758_v4  ;;  %3614 = vmatpush1.bf16.msra.mxu1 %v3758_v4  ;;  %v3773_v14 = vld [vmem:[%s4999_s1 + $0xc0] ss:$16 sps:$4 sm:$0xff]   ;;  %v3774_v15 = vld [vmem:[%s4999_s1 + $0xe4] ss:$16 sps:$4 sm:$0xff]   ;;  %v3794_v26 = vld [vmem:[%s4999_s1 + $0x48] ss:$16 sps:$4 sm:$0xff]  }
  0x1a   :  { %387 = vmatprep.subr.bf16.mxu0 %v3759_v5  ;;  %3607 = vmatprep.subr.bf16.mxu1 %v3759_v5  ;;  %v3776_v16 = vld [vmem:[%s4999_s1 + $0xe0] ss:$16 sps:$4 sm:$0xff]   ;;  %v3800_v27 = vld [vmem:[%s4999_s1 + $0x6c] ss:$16 sps:$4 sm:$0xff]   ;;  %v3798_v30 = vld [vmem:[%s4999_s1 + $0x68] ss:$16 sps:$4 sm:$0xff]  }
  0x1b   :  { %v4105_v18 = vld [vmem:[%s4998_s0] sm:$0xff]   ;;  %v3804_v31 = vld [vmem:[%s4999_s1 + $0x8c] ss:$16 sps:$4 sm:$0xff]   ;;  %v4157_v32 = vld [vmem:[%s4998_s0 + $0x10] sm:$0xff]  }
  0x1c   :  { %v4110_v19 = vld [vmem:[%s4998_s0 + $0x60] sm:$0xff]   ;;  %v3828_v33 = vld [vmem:[#allocation2 + $0x1c] ss:$12 sps:$4 sm:$0xff]   ;;  %v4162_v34 = vld [vmem:[%s4998_s0 + $0x70] sm:$0xff]  }
  0x1d   :  { %388 = vmatpush1.bf16.msra.mxu0 %v3761_v6  ;;  %3615 = vmatpush1.bf16.msra.mxu1 %v3761_v6  ;;  %v3821_v28 = vld [vmem:[#allocation2] ss:$12 sps:$4 sm:$0xff]   ;;  %v3823_v29 = vld [vmem:[#allocation2 + $0x4] ss:$12 sps:$4 sm:$0xff]   ;;  %v3802_v35 = vld [vmem:[%s4999_s1 + $0x88] ss:$16 sps:$4 sm:$0xff]  }
  0x1e   :  { %389 = vmatprep.subr.bf16.mxu0 %v3762_v7  ;;  %3608 = vmatprep.subr.bf16.mxu1 %v3762_v7  ;;  %v3808_v36 = vld [vmem:[%s4999_s1 + $0xac] ss:$16 sps:$4 sm:$0xff]   ;;  %v3826_v37 = vld [vmem:[#allocation2 + $0x18] ss:$12 sps:$4 sm:$0xff]   ;;  %v3831_v38 = vld [vmem:[#allocation2 + $0x34] ss:$12 sps:$4 sm:$0xff]  }
  0x1f   :  { %v3806_v39 = vld [vmem:[%s4999_s1 + $0xa8] ss:$16 sps:$4 sm:$0xff]   ;;  %v3812_v41 = vld [vmem:[%s4999_s1 + $0xcc] ss:$16 sps:$4 sm:$0xff]   ;;  %v3839_v49 = vld [vmem:[#allocation2 + $0x64] ss:$12 sps:$4 sm:$0xff]  }
  0x20   :  { %v4179_v40 = vld [vmem:[%s4998_s0 + $0x18] sm:$0xff]   ;;  %v3832_v48 = vld [vmem:[#allocation2 + $0x48] ss:$12 sps:$4 sm:$0xff]   ;;  %v4206_v51 = vld [vmem:[%s4998_s0 + $0x20] sm:$0xff]  }
  0x21   :  { %390 = vmatpush1.bf16.msra.mxu0 %v3764_v8  ;;  %3616 = vmatpush1.bf16.msra.mxu1 %v3764_v8  ;;  %v3829_v42 = vld [vmem:[#allocation2 + $0x30] ss:$12 sps:$4 sm:$0xff]   ;;  %v3810_v44 = vld [vmem:[%s4999_s1 + $0xc8] ss:$16 sps:$4 sm:$0xff]   ;;  %v3819_v53 = vld [vmem:[#allocation2 + $0xe0] ss:$12 sps:$4 sm:$0xff]  }
  0x22   :  { %391 = vmatprep.subr.bf16.mxu0 %v3765_v9  ;;  %3609 = vmatprep.subr.bf16.mxu1 %v3765_v9  ;;  %v4188_v43 = vld [vmem:[%s4998_s0 + $0x78] sm:$0xff]   ;;  %v3817_v50 = vld [vmem:[#allocation2 + $0xc8] ss:$12 sps:$4 sm:$0xff]   ;;  %v3837_v54 = vld [vmem:[#allocation2 + $0x60] ss:$12 sps:$4 sm:$0xff]  }
  0x23   :  { %v3816_v45 = vld [vmem:[%s4999_s1 + $0xec] ss:$16 sps:$4 sm:$0xff]   ;;  %v3814_v46 = vld [vmem:[%s4999_s1 + $0xe8] ss:$16 sps:$4 sm:$0xff]   ;;  %v3846_v62 = vld [vmem:[#allocation2 + $0x94] ss:$12 sps:$4 sm:$0xff]  }
  0x24   :  { %v3834_v47 = vld [vmem:[#allocation2 + $0x4c] ss:$12 sps:$4 sm:$0xff]   ;;  %v3818_v52 = vld [vmem:[#allocation2 + $0x8] ss:$12 sps:$4 sm:$0xff]   ;;  %v3835_v61 = vld [vmem:[#allocation2 + $0x110] ss:$12 sps:$4 sm:$0xff]  }
  0x25   :  { %392 = vmatpush1.bf16.msra.mxu0 %v3767_v10  ;;  %3617 = vmatpush1.bf16.msra.mxu1 %v3767_v10  ;;  %v3842_v55 = vld [vmem:[#allocation2 + $0x7c] ss:$12 sps:$4 sm:$0xff]   ;;  %v3820_v56 = vld [vmem:[#allocation2 + $0x20] ss:$12 sps:$4 sm:$0xff]   ;;  %v3824_v57 = vld [vmem:[#allocation2 + $0xf8] ss:$12 sps:$4 sm:$0xff]  }
  0x26   :  { %393 = vmatprep.subr.bf16.mxu0 %v3768_v11  ;;  %3610 = vmatprep.subr.bf16.mxu1 %v3768_v11  ;;  %v4215_v58 = vld [vmem:[%s4998_s0 + $0x28] sm:$0xff]   ;;  %v3840_v59 = vld [vmem:[#allocation2 + $0x78] ss:$12 sps:$4 sm:$0xff]   ;;  %v3844_v63 = vld [vmem:[#allocation2 + $0x90] ss:$12 sps:$4 sm:$0xff]  }
  0x27   :  { %v3825_v60 = vld [vmem:[#allocation2 + $0x38] ss:$12 sps:$4 sm:$0xff]   ;;  %v3836_v2 = vld [vmem:[#allocation2 + $0x50] ss:$12 sps:$4 sm:$0xff]   ;;  %v3843_v3 = vld [vmem:[#allocation2 + $0x128] ss:$12 sps:$4 sm:$0xff]  }
  0x28   :  { %v3850_v1 = vld [vmem:[#allocation2 + $0xac] ss:$12 sps:$4 sm:$0xff]   ;;  %v3848_v4 = vld [vmem:[#allocation2 + $0xa8] ss:$12 sps:$4 sm:$0xff]   ;;  %v3853_v7 = vld [vmem:[#allocation2 + $0xc4] ss:$12 sps:$4 sm:$0xff]  }
  0x29   :  { %394 = vmatpush1.bf16.msra.mxu0 %v3770_v12  ;;  %3618 = vmatpush1.bf16.msra.mxu1 %v3770_v12  ;;  %v4224_v5 = vld [vmem:[%s4998_s0 + $0x30] sm:$0xff]   ;;  %v3851_v8 = vld [vmem:[#allocation2 + $0xc0] ss:$12 sps:$4 sm:$0xff]   ;;  %v3858_v10 = vld [vmem:[#allocation2 + $0xdc] ss:$12 sps:$4 sm:$0xff]  }
  0x2a   :  { %395 = vmatprep.subr.bf16.mxu0 %v3771_v13  ;;  %3611 = vmatprep.subr.bf16.mxu1 %v3771_v13  ;;  %v3847_v6 = vld [vmem:[#allocation2 + $0x68] ss:$12 sps:$4 sm:$0xff]   ;;  %v3854_v9 = vld [vmem:[#allocation2 + $0x140] ss:$12 sps:$4 sm:$0xff]   ;;  %v3856_v12 = vld [vmem:[#allocation2 + $0xd8] ss:$12 sps:$4 sm:$0xff]  }
  0x2b   :  { %v3855_v11 = vld [vmem:[#allocation2 + $0x80] ss:$12 sps:$4 sm:$0xff]   ;;  %v3865_v13 = vld [vmem:[#allocation2 + $0x158] ss:$12 sps:$4 sm:$0xff]  }
  0x2d   :  { %396 = vmatpush1.bf16.msra.mxu0 %v3773_v14  ;;  %3619 = vmatpush1.bf16.msra.mxu1 %v3773_v14  ;;  %v3784_v14 = vld [vmem:[%s4998_s0 + $0x38] sm:$0xff]  }
  0x2e   :  { %397 = vmatprep.subr.bf16.mxu0 %v3774_v15  ;;  %3612 = vmatprep.subr.bf16.mxu1 %v3774_v15  ;;  %v3861_v15 = vld [vmem:[#allocation2 + $0xf4] ss:$12 sps:$4 sm:$0xff]  }
  0x31   :  { %398 = vmatpush1.bf16.msra.mxu0 %v3776_v16  ;;  %3620 = vmatpush1.bf16.msra.mxu1 %v3776_v16  ;;  %v3866_v16 = vld [vmem:[#allocation2 + $0x98] ss:$12 sps:$4 sm:$0xff]  }
  0x32   :  { %576 = vmatprep.subr.bf16.mxu1 %v3788_v17  ;;  %1618 = vmatprep.subr.bf16.mxu0 %v3823_v29  ;;  %v3859_v17 = vld [vmem:[#allocation2 + $0xf0] ss:$12 sps:$4 sm:$0xff]   ;;  %v3797_v29 = vld [vmem:[%s4998_s0 + $0x48] sm:$0xff]  }
  0x34   :  { %416 = vmatmul.mubr.bf16.vlgmr.msra.gmra.mrb[0].mxu0 %v4105_v18  ;;  %536 = vmatmul.mubr.bf16.vlgmr.msra.gmra.mrb[0].mxu1 %v4110_v19 }
  0x35   :  { %425 = vmatprep.mubr.bf16.mxu0 %v3996_v0  ;;  %577 = vmatpush1.bf16.msra.mxu1 %v3786_v20  ;;  %v3864_v20 = vld [vmem:[#allocation2 + $0x10c] ss:$12 sps:$4 sm:$0xff]  }
  0x36   :  { %578 = vmatprep.subr.bf16.mxu1 %v3792_v21  ;;  %545 = vmatprep.mubr.bf16.mxu1 %v3996_v0  ;;  %v3877_v21 = vld [vmem:[#allocation2 + $0xb0] ss:$12 sps:$4 sm:$0xff]  }
  0x37   :  { %1619 = vmatpush1.bf16.msra.mxu0 %v3821_v28  ;;  %v3870_v28 = vld [vmem:[#allocation2 + $0x138] ss:$12 sps:$4 sm:$0xff]  }
  0x38   :  { %1620 = vmatprep.subr.bf16.mxu0 %v3828_v33  ;;  %v3813_v33 = vld [vmem:[%s4998_s0 + $0x58] sm:$0xff]  }
  0x39   :  { %579 = vmatpush1.bf16.msra.mxu1 %v3790_v22  ;;  %v3862_v22 = vld [vmem:[#allocation2 + $0x108] ss:$12 sps:$4 sm:$0xff]  }
  0x3a   :  { %580 = vmatprep.subr.bf16.mxu1 %v3796_v23  ;;  %v3789_v23 = vld [vmem:[%s4998_s0 + $0x40] sm:$0xff]  }
  0x3b   :  { %1621 = vmatpush1.bf16.msra.mxu0 %v3826_v37  ;;  %v3883_v37 = vld [vmem:[#allocation2 + $0x184] ss:$12 sps:$4 sm:$0xff]  }
  0x3c   :  { %426 = vmatmul.mubr.bf16.gmra.mrb[4].mxu0 %v4131_v24  ;;  %546 = vmatmul.mubr.bf16.gmra.mrb[4].mxu1 %v4136_v25 }
  0x3d   :  { %435 = vmatprep.mubr.bf16.mxu0 %v3996_v0  ;;  %581 = vmatpush1.bf16.msra.mxu1 %v3794_v26  ;;  %v3867_v26 = vld [vmem:[#allocation2 + $0x120] ss:$12 sps:$4 sm:$0xff]  }
  0x3e   :  { %582 = vmatprep.subr.bf16.mxu1 %v3800_v27  ;;  %555 = vmatprep.mubr.bf16.mxu1 %v3996_v0  ;;  %v3872_v27 = vld [vmem:[#allocation2 + $0x13c] ss:$12 sps:$4 sm:$0xff]  }
  0x3f   :  { %1622 = vmatprep.subr.bf16.mxu0 %v3831_v38  ;;  %v3884_v38 = vld [vmem:[#allocation2 + $0x248] ss:$12 sps:$4 sm:$0xff]  }
  0x40   :  { %1623 = vmatpush1.bf16.msra.mxu0 %v3829_v42 }
  0x41   :  { %583 = vmatpush1.bf16.msra.mxu1 %v3798_v30  ;;  %1624 = vmatprep.subr.bf16.mxu0 %v3834_v47  ;;  %v3876_v30 = vld [vmem:[#allocation2 + $0x154] ss:$12 sps:$4 sm:$0xff]  }
  0x42   :  { %584 = vmatprep.subr.bf16.mxu1 %v3804_v31  ;;  %v3874_v31 = vld [vmem:[#allocation2 + $0x150] ss:$12 sps:$4 sm:$0xff]  }
  0x44   :  { %436 = vmatmul.mubr.bf16.gmra.mrb[8].mxu0 %v4157_v32  ;;  %556 = vmatmul.mubr.bf16.gmra.mrb[8].mxu1 %v4162_v34 }
  0x45   :  { %445 = vmatprep.mubr.bf16.mxu0 %v3996_v0  ;;  %585 = vmatpush1.bf16.msra.mxu1 %v3802_v35  ;;  %v3880_v35 = vld [vmem:[#allocation2 + $0x16c] ss:$12 sps:$4 sm:$0xff]  }
  0x46   :  { %586 = vmatprep.subr.bf16.mxu1 %v3808_v36  ;;  %565 = vmatprep.mubr.bf16.mxu1 %v3996_v0  ;;  %v3878_v36 = vld [vmem:[#allocation2 + $0x168] ss:$12 sps:$4 sm:$0xff]  }
  0x47   :  { %1625 = vmatpush1.bf16.msra.mxu0 %v3832_v48 }
  0x48   :  { %1626 = vmatprep.subr.bf16.mxu0 %v3839_v49 }
  0x49   :  { %587 = vmatpush1.bf16.msra.mxu1 %v3806_v39  ;;  %v107_v39 = vlaneseq }
  0x4a   :  { %588 = vmatprep.subr.bf16.mxu1 %v3812_v41 }
  0x4b   :  { %1627 = vmatpush1.bf16.msra.mxu0 %v3837_v54 }
  0x4c   :  { %446 = vmatmul.mubr.bf16.gmra.mrb[12].mxu0 %v4179_v40  ;;  %566 = vmatmul.mubr.bf16.gmra.mrb[12].mxu1 %v4188_v43 }
  0x4d   :  { %455 = vmatprep.mubr.bf16.mxu0 %v3996_v0  ;;  %589 = vmatpush1.bf16.msra.mxu1 %v3810_v44 }
  0x4e   :  { %590 = vmatprep.subr.bf16.mxu1 %v3816_v45  ;;  %608 = vmatprep.mubr.bf16.mxu1 %v3996_v0 }
  0x4f   :  { %1628 = vmatprep.subr.bf16.mxu0 %v3842_v55 }
  0x50   :  { %1629 = vmatpush1.bf16.msra.mxu0 %v3840_v59 }
  0x51   :  { %591 = vmatpush1.bf16.msra.mxu1 %v3814_v46  ;;  %1630 = vmatprep.subr.bf16.mxu0 %v3846_v62 }
  0x52   :  { %3197 = vmatprep.subr.bf16.mxu1 %v3817_v50 }
  0x54   :  { %456 = vmatmul.mubr.bf16.gmra.mrb[16].mxu0 %v4206_v51  ;;  %609 = vmatmul.mubr.bf16.vlgmr.msra.gmra.mrb[16].mxu1 %v4105_v18  ;;  %v3873_v18 = vld [vmem:[#allocation2 + $0x170] ss:$12 sps:$4 sm:$0xff]  }
  0x55   :  { %465 = vmatprep.mubr.bf16.mxu0 %v3996_v0  ;;  %3198 = vmatpush3.bf16.msra.mxu1 %v3818_v52 }
  0x56   :  { %618 = vmatprep.mubr.bf16.mxu1 %v3996_v0  ;;  %3199 = vmatprep.subr.bf16.mxu1 %v3819_v53 }
  0x57   :  { %1631 = vmatpush1.bf16.msra.mxu0 %v3844_v63 }
  0x58   :  { %1632 = vmatprep.subr.bf16.mxu0 %v3850_v1 }
  0x59   :  { %3200 = vmatpush3.bf16.msra.mxu1 %v3820_v56 }
  0x5a   :  { %3201 = vmatprep.subr.bf16.mxu1 %v3824_v57 }
  0x5b   :  { %1633 = vmatpush1.bf16.msra.mxu0 %v3848_v4 }
  0x5c   :  { %466 = vmatmul.mubr.bf16.gmra.mrb[20].mxu0 %v4215_v58  ;;  %619 = vmatmul.mubr.bf16.gmra.mrb[20].mxu1 %v4131_v24  ;;  %v3869_v24 = vld [vmem:[#allocation2 + $0x124] ss:$12 sps:$4 sm:$0xff]  }
  0x5d   :  { %475 = vmatprep.mubr.bf16.mxu0 %v3996_v0  ;;  %628 = vmatprep.mubr.bf16.mxu1 %v3996_v0 }
  0x5e   :  { %3202 = vmatpush3.bf16.msra.mxu1 %v3825_v60  ;;  %1634 = vmatprep.subr.bf16.mxu0 %v3853_v7  ;;  %v3881_v7 = vld [vmem:[#allocation2 + $0x180] ss:$12 sps:$4 sm:$0xff]  }
  0x5f   :  { %3203 = vmatprep.subr.bf16.mxu1 %v3835_v61  ;;  %1635 = vmatpush1.bf16.msra.mxu0 %v3851_v8  ;;  %v3885_v8 = vld [vmem:[#allocation2 + $0x188] ss:$12 sps:$4 sm:$0xff]  }
  0x60   :  { %1636 = vmatprep.subr.bf16.mxu0 %v3858_v10 }
  0x62   :  { %3204 = vmatpush3.bf16.msra.mxu1 %v3836_v2 }
  0x63   :  { %3205 = vmatprep.subr.bf16.mxu1 %v3843_v3  ;;  %1637 = vmatpush1.bf16.msra.mxu0 %v3856_v12 }
  0x64   :  { %476 = vmatmul.mubr.bf16.gmra.mrb[24].mxu0 %v4224_v5  ;;  %629 = vmatmul.mubr.bf16.gmra.mrb[24].mxu1 %v4157_v32  ;;  %v3805_v32 = vld [vmem:[%s4998_s0 + $0x50] sm:$0xff]  }
  0x65   :  { %485 = vmatprep.mubr.bf16.mxu0 %v3996_v0  ;;  %638 = vmatprep.mubr.bf16.mxu1 %v3996_v0 }
  0x66   :  { %3206 = vmatpush3.bf16.msra.mxu1 %v3847_v6  ;;  %1638 = vmatprep.subr.bf16.mxu0 %v3861_v15 }
  0x67   :  { %3207 = vmatprep.subr.bf16.mxu1 %v3854_v9  ;;  %1639 = vmatpush1.bf16.msra.mxu0 %v3859_v17 }
  0x68   :  { %1640 = vmatprep.subr.bf16.mxu0 %v3864_v20 }
  0x6a   :  { %3208 = vmatpush3.bf16.msra.mxu1 %v3855_v11 }
  0x6b   :  { %3209 = vmatprep.subr.bf16.mxu1 %v3865_v13  ;;  %1641 = vmatpush1.bf16.msra.mxu0 %v3862_v22  ;;  %v3888_v13 = vld [vmem:[#allocation2 + $0x19c] ss:$12 sps:$4 sm:$0xff]  }
  0x6c   :  { %486 = vmatmul.mubr.bf16.gmra.mrb[28].mxu0 %v3784_v14  ;;  %639 = vmatmul.mubr.bf16.gmra.mrb[28].mxu1 %v4179_v40  ;;  %v4269_v40 = vshrl.u32 %v107_v39, 7 }
  0x6d   :  { %495 = vmatprep.mubr.bf16.mxu0 %v3996_v0  ;;  %648 = vmatprep.mubr.bf16.mxu1 %v3996_v0 }
  0x6e   :  { %3210 = vmatpush3.bf16.msra.mxu1 %v3866_v16  ;;  %1642 = vmatprep.subr.bf16.mxu0 %v3869_v24  ;;  %v109_v41 = vsub.s32 0, %v4269_v40  ;;  %v3886_v24 = vld [vmem:[#allocation2 + $0x198] ss:$12 sps:$4 sm:$0xff]  }
  0x6f   :  { %3211 = vmatprep.subr.bf16.mxu1 %v3873_v18  ;;  %1643 = vmatpush1.bf16.msra.mxu0 %v3867_v26 }
  0x70   :  { %1644 = vmatprep.subr.bf16.mxu0 %v3872_v27 }
  0x72   :  { %3212 = vmatpush3.bf16.msra.mxu1 %v3877_v21 }
  0x73   :  { %1645 = vmatpush1.bf16.msra.mxu0 %v3870_v28  ;;  %3309 = vmatprep.subr.bf16.mxu1 %v3884_v38 }
  0x74   :  { %496 = vmatmul.mubr.bf16.gmra.mrb[32].mxu0 %v3789_v23  ;;  %649 = vmatmul.mubr.bf16.gmra.mrb[32].mxu1 %v4206_v51 }
  0x75   :  { %505 = vmatprep.mubr.bf16.mxu0 %v3996_v0  ;;  %658 = vmatprep.mubr.bf16.mxu1 %v3996_v0 }
  0x76   :  { %1646 = vmatprep.subr.bf16.mxu0 %v3876_v30  ;;  %v3891_v30 = vld [vmem:[#allocation2 + $0x1b4] ss:$12 sps:$4 sm:$0xff]  }
  0x77   :  { %1647 = vmatpush1.bf16.msra.mxu0 %v3874_v31  ;;  %v3893_v31 = vld [vmem:[#allocation2 + $0x1a0] ss:$12 sps:$4 sm:$0xff]  }
  0x78   :  { %1648 = vmatprep.subr.bf16.mxu0 %v3880_v35 }
  0x7b   :  { %1649 = vmatpush1.bf16.msra.mxu0 %v3878_v36 }
  0x7c   :  { %506 = vmatmul.mubr.bf16.gmra.mrb[36].mxu0 %v3797_v29  ;;  %659 = vmatmul.mubr.bf16.gmra.mrb[36].mxu1 %v4215_v58 }
  0x7d   :  { %515 = vmatprep.mubr.bf16.mxu0 %v3996_v0  ;;  %668 = vmatprep.mubr.bf16.mxu1 %v3996_v0 }
  0x7e   :  { %1811 = vmatprep.subr.bf16.mxu0 %v3883_v37  ;;  %v3900_v37 = vld [vmem:[#allocation2 + $0x278] ss:$12 sps:$4 sm:$0xff]  }
  0x84   :  { %516 = vmatmul.mubr.bf16.gmra.mrb[40].mxu0 %v3805_v32  ;;  %669 = vmatmul.mubr.bf16.gmra.mrb[40].mxu1 %v4224_v5 }
  0x85   :  { %525 = vmatprep.mubr.bf16.mxu0 %v3996_v0  ;;  %678 = vmatprep.mubr.bf16.mxu1 %v3996_v0 }
  0x8c   :  { %526 = vmatmul.mubr.bf16.gmra.mrb[44].mxu0 %v3813_v33  ;;  %679 = vmatmul.mubr.bf16.gmra.mrb[44].mxu1 %v3784_v14  ;;  %v3892_v14 = vld [vmem:[#allocation2 + $0x260] ss:$12 sps:$4 sm:$0xff]  }
  0x8d   :  { %688 = vmatprep.mubr.bf16.mxu1 %v3996_v0 }
  0x94   :  { %689 = vmatmul.mubr.bf16.gmra.mrb[48].mxu1 %v3789_v23 }
  0x95   :  { %698 = vmatprep.mubr.bf16.mxu1 %v3996_v0 }
  0x9c   :  { %699 = vmatmul.mubr.bf16.gmra.mrb[52].mxu1 %v3797_v29 }
  0x9d   :  { %708 = vmatprep.mubr.bf16.mxu1 %v3996_v0 }
  0xa4   :  { %709 = vmatmul.mubr.bf16.gmra.mrb[56].mxu1 %v3805_v32 }
  0xa5   :  { %718 = vmatprep.mubr.bf16.mxu1 %v3996_v0 }
  0xac   :  { %719 = vmatmul.mubr.bf16.gmra.mrb[60].mxu1 %v3813_v33 }
  0xad   :  { %728 = vmatprep.mubr.bf16.mxu1 %v3996_v0 }
  0xb4   :  { %729 = vmatmul.mubr.bf16.gmra.mrb[64].mxu1 %v4110_v19  ;;  %v4275_v19 = vld [vmem:[%s5000_s2] sm:$0xf] }
  0xb5   :  { %738 = vmatprep.mubr.bf16.mxu1 %v3996_v0 }
  0xbc   :  { %739 = vmatmul.mubr.bf16.gmra.mrb[68].mxu1 %v4136_v25  ;;  %v113_v25 = vsub.s32 1, %v4269_v40 }
  0xbd   :  { %748 = vmatprep.mubr.bf16.mxu1 %v3996_v0 }
  0xc4   :  { %749 = vmatmul.mubr.bf16.gmra.mrb[72].mxu1 %v4162_v34  ;;  %v4281_v34 = vrot.slane %v4275_v19, %v109_v41 }
  0xc5   :  { %758 = vmatprep.mubr.bf16.mxu1 %v3996_v0  ;;  %v4286_v0 = vrot.slane %v4275_v19, %v113_v25 }
  0xcc   :  { %759 = vmatmul.mubr.bf16.gmra.mrb[76].mxu1 %v4188_v43 }
 0x107   :  { %v417_v42 = vpop.f32.mrb[0].mxu0  ;;  %v537_v43 = vpop.f32.mrb[0].mxu1 }
 0x108   :  { %v418_v44 = vadd.f32 %v417_v42, %v4281_v34  ;;  %v419_v45 = vpop.f32.mrb[1].mxu0  ;;  %v538_v46 = vadd.f32 %v537_v43, %v4281_v34  ;;  %v539_v47 = vpop.f32.mrb[1].mxu1 }
 0x109   :  { %v420_v48 = vadd.f32 %v419_v45, %v4286_v0  ;;  %v421_v49 = vpop.f32.mrb[2].mxu0  ;;  %v540_v50 = vadd.f32 %v539_v47, %v4286_v0  ;;  %v541_v51 = vpop.f32.mrb[2].mxu1 }
 0x10a   :  { %v422_v52 = vadd.f32 %v421_v49, %v4281_v34  ;;  %v423_v53 = vpop.f32.mrb[3].mxu0  ;;  %v865_v54 = vmax.f32 %v538_v46, 0.0  ;;  %v542_v55 = vadd.f32 %v541_v51, %v4281_v34  ;;  %v543_v56 = vpop.f32.mrb[3].mxu1  ;;  %v769_v60 = vmax.f32 %v418_v44, 0.0  ;;  %v3901_v49 = vld [vmem:[#allocation2 + $0x1b8] ss:$12 sps:$4 sm:$0xff]  }
 0x10b   :  { %v424_v57 = vadd.f32 %v423_v53, %v4286_v0  ;;  %v866_v58 = vmax.f32 %v540_v50, 0.0  ;;  %v544_v59 = vadd.f32 %v543_v56, %v4286_v0  ;;  %v770_v63 = vmax.f32 %v420_v48, 0.0  ;;  %v3889_v48 = vld [vmem:[#allocation2 + $0x1b0] ss:$12 sps:$4 sm:$0xff]  }
 0x10c   :  { %v773_v61 = vmax.f32 %v422_v52, 0.0  ;;  %v869_v62 = vmax.f32 %v542_v55, 0.0  ;;  %v3908_v55 = vld [vmem:[#allocation2 + $0x290] ss:$12 sps:$4 sm:$0xff]  }
 0x10d   :  { %v774_v1 = vmax.f32 %v424_v57, 0.0  ;;  %v870_v2 = vmax.f32 %v544_v59, 0.0 }
 0x10e   :  { %v897_v3 = vpack.c.bf16 %v773_v61, %v769_v60  ;;  %v4296_v4 = vpack.c.bf16 %v869_v62, %v865_v54  ;;  %v3896_v54 = vld [vmem:[#allocation2 + $0x1cc] ss:$12 sps:$4 sm:$0xff]  }
 0x10f   :  { %v898_v5 = vpack.c.bf16 %v774_v1, %v770_v63  ;;  %v427_v6 = vpop.f32.mrb[4].mxu0  ;;  %v4298_v9 = vpack.c.bf16 %v870_v2, %v866_v58  ;;  %v547_v10 = vpop.f32.mrb[4].mxu1  ;;  %v3894_v1 = vld [vmem:[#allocation2 + $0x1c8] ss:$12 sps:$4 sm:$0xff]  }
 0x110   :  { %v428_v11 = vadd.f32 %v427_v6, %v4281_v34  ;;  %v429_v12 = vpop.f32.mrb[5].mxu0  ;;  %v548_v15 = vadd.f32 %v547_v10, %v4281_v34  ;;  %v549_v16 = vpop.f32.mrb[5].mxu1 }
 0x111   :  { %v430_v17 = vadd.f32 %v429_v12, %v4286_v0  ;;  %v431_v18 = vpop.f32.mrb[6].mxu0  ;;  %1650 = vmatprep.mubr.bf16.mxu0 %v898_v5  ;;  %2036 = vmatprep.mubr.bf16.mxu1 %v898_v5  ;;  %v550_v20 = vadd.f32 %v549_v16, %v4286_v0  ;;  %v551_v21 = vpop.f32.mrb[6].mxu1 }
 0x112   :  { %v432_v22 = vadd.f32 %v431_v18, %v4281_v34  ;;  %v433_v23 = vpop.f32.mrb[7].mxu0  ;;  %1651 = vmatmul.mubr.bf16.vlgmr.msra.gmra.mrb[48].mxu0 %v897_v3  ;;  %2037 = vmatmul.mubr.bf16.vlgmr.msra.gmra.mrb[80].mxu1 %v897_v3  ;;  %v873_v26 = vmax.f32 %v548_v15, 0.0  ;;  %v552_v27 = vadd.f32 %v551_v21, %v4281_v34  ;;  %v553_v28 = vpop.f32.mrb[7].mxu1  ;;  %v777_v35 = vmax.f32 %v428_v11, 0.0  ;;  %v3897_v21 = vld [vmem:[#allocation2 + $0x1e0] ss:$12 sps:$4 sm:$0xff]  }
 0x113   :  { %v434_v29 = vadd.f32 %v433_v23, %v4286_v0  ;;  %1812 = vmatpush1.bf16.msra.mxu0 %v3881_v7  ;;  %3310 = vmatpush3.bf16.msra.mxu1 %v3885_v8  ;;  %v874_v32 = vmax.f32 %v550_v20, 0.0  ;;  %v554_v33 = vadd.f32 %v553_v28, %v4286_v0  ;;  %v778_v39 = vmax.f32 %v430_v17, 0.0  ;;  %v3899_v7 = vld [vmem:[#allocation2 + $0x1e4] ss:$12 sps:$4 sm:$0xff]  }
 0x114   :  { %v781_v36 = vmax.f32 %v432_v22, 0.0  ;;  %1813 = vmatprep.subr.bf16.mxu0 %v3888_v13  ;;  %3311 = vmatprep.subr.bf16.mxu1 %v3892_v14  ;;  %v877_v38 = vmax.f32 %v552_v27, 0.0  ;;  %v3909_v8 = vld [vmem:[#allocation2 + $0x1d0] ss:$12 sps:$4 sm:$0xff]   ;;  %v3916_v14 = vld [vmem:[#allocation2 + $0x2a8] ss:$12 sps:$4 sm:$0xff]  }
 0x115   :  { %v782_v42 = vmax.f32 %v434_v29, 0.0  ;;  %v878_v43 = vmax.f32 %v554_v33, 0.0  ;;  %v3917_v27 = vld [vmem:[#allocation2 + $0x1e8] ss:$12 sps:$4 sm:$0xff]  }
 0x116   :  { %v901_v44 = vpack.c.bf16 %v781_v36, %v777_v35  ;;  %v4308_v45 = vpack.c.bf16 %v877_v38, %v873_v26  ;;  %v3904_v26 = vld [vmem:[#allocation2 + $0x1fc] ss:$12 sps:$4 sm:$0xff]   ;;  %v3924_v35 = vld [vmem:[#allocation2 + $0x2c0] ss:$12 sps:$4 sm:$0xff]   ;;  %v117_v36 = vsub.s32 2, %v4269_v40 }
 0x117   :  { %v902_v46 = vpack.c.bf16 %v782_v42, %v778_v39  ;;  %v437_v47 = vpop.f32.mrb[8].mxu0  ;;  %1814 = vmatpush1.bf16.msra.mxu0 %v3886_v24  ;;  %3312 = vmatpush3.bf16.msra.mxu1 %v3893_v31  ;;  %v4310_v50 = vpack.c.bf16 %v878_v43, %v874_v32  ;;  %v557_v51 = vpop.f32.mrb[8].mxu1  ;;  %v121_v43 = vsub.s32 3, %v4269_v40 }
 0x118   :  { %v438_v52 = vadd.f32 %v437_v47, %v4281_v34  ;;  %v439_v53 = vpop.f32.mrb[9].mxu0  ;;  %1815 = vmatprep.subr.bf16.mxu0 %v3891_v30  ;;  %3313 = vmatprep.subr.bf16.mxu1 %v3900_v37  ;;  %v558_v56 = vadd.f32 %v557_v51, %v4281_v34  ;;  %v559_v57 = vpop.f32.mrb[9].mxu1  ;;  %v3902_v47 = vld [vmem:[#allocation2 + $0x1f8] ss:$12 sps:$4 sm:$0xff]  }
 0x119   :  { %v440_v58 = vadd.f32 %v439_v53, %v4286_v0  ;;  %v441_v59 = vpop.f32.mrb[10].mxu0  ;;  %1660 = vmatprep.mubr.bf16.mxu0 %v902_v46  ;;  %2044 = vmatprep.mubr.bf16.mxu1 %v902_v46  ;;  %v560_v60 = vadd.f32 %v559_v57, %v4286_v0  ;;  %v561_v61 = vpop.f32.mrb[10].mxu1  ;;  %v3907_v53 = vld [vmem:[#allocation2 + $0x214] ss:$12 sps:$4 sm:$0xff]  }
 0x11a   :  { %v442_v62 = vadd.f32 %v441_v59, %v4281_v34  ;;  %v443_v63 = vpop.f32.mrb[11].mxu0  ;;  %1661 = vmatmul.mubr.bf16.gmra.mrb[52].mxu0 %v901_v44  ;;  %2045 = vmatmul.mubr.bf16.gmra.mrb[84].mxu1 %v901_v44  ;;  %v881_v2 = vmax.f32 %v558_v56, 0.0  ;;  %v562_v3 = vadd.f32 %v561_v61, %v4281_v34  ;;  %v563_v5 = vpop.f32.mrb[11].mxu1  ;;  %v785_v12 = vmax.f32 %v438_v52, 0.0  ;;  %v3925_v56 = vld [vmem:[#allocation2 + $0x200] ss:$12 sps:$4 sm:$0xff]  }
 0x11b   :  { %v444_v6 = vadd.f32 %v443_v63, %v4286_v0  ;;  %1816 = vmatpush1.bf16.msra.mxu0 %v3889_v48  ;;  %3314 = vmatpush3.bf16.msra.mxu1 %v3901_v49  ;;  %v882_v10 = vmax.f32 %v560_v60, 0.0  ;;  %v564_v11 = vadd.f32 %v563_v5, %v4286_v0  ;;  %v786_v16 = vmax.f32 %v440_v58, 0.0  ;;  %v3932_v61 = vld [vmem:[#allocation2 + $0x2d8] ss:$12 sps:$4 sm:$0xff]  }
 0x11c   :  { %v789_v13 = vmax.f32 %v442_v62, 0.0  ;;  %1817 = vmatprep.subr.bf16.mxu0 %v3896_v54  ;;  %3315 = vmatprep.subr.bf16.mxu1 %v3908_v55  ;;  %v885_v15 = vmax.f32 %v562_v3, 0.0  ;;  %v4337_v60 = vrot.slane %v4275_v19, %v117_v36 }
 0x11d   :  { %v790_v17 = vmax.f32 %v444_v6, 0.0  ;;  %v886_v18 = vmax.f32 %v564_v11, 0.0 }
 0x11e   :  { %v905_v20 = vpack.c.bf16 %v789_v13, %v785_v12  ;;  %v4320_v22 = vpack.c.bf16 %v885_v15, %v881_v2  ;;  %v4340_v2 = vrot.slane %v4275_v19, %v121_v43  ;;  %v3933_v12 = vld [vmem:[#allocation2 + $0x218] ss:$12 sps:$4 sm:$0xff]  }
 0x11f   :  { %v906_v23 = vpack.c.bf16 %v790_v17, %v786_v16  ;;  %v447_v24 = vpop.f32.mrb[12].mxu0  ;;  %1818 = vmatpush1.bf16.msra.mxu0 %v3894_v1  ;;  %3316 = vmatpush3.bf16.msra.mxu1 %v3909_v8  ;;  %v4322_v28 = vpack.c.bf16 %v886_v18, %v882_v10  ;;  %v567_v29 = vpop.f32.mrb[12].mxu1  ;;  %v3905_v8 = vld [vmem:[#allocation2 + $0x210] ss:$12 sps:$4 sm:$0xff]   ;;  %v3912_v15 = vld [vmem:[#allocation2 + $0x22c] ss:$12 sps:$4 sm:$0xff]  }
 0x120   :  { %v448_v30 = vadd.f32 %v447_v24, %v4281_v34  ;;  %v449_v31 = vpop.f32.mrb[13].mxu0  ;;  %1819 = vmatprep.subr.bf16.mxu0 %v3899_v7  ;;  %3317 = vmatprep.subr.bf16.mxu1 %v3916_v14  ;;  %v568_v32 = vadd.f32 %v567_v29, %v4281_v34  ;;  %v569_v33 = vpop.f32.mrb[13].mxu1  ;;  %v3940_v17 = vld [vmem:[#allocation2 + $0x2f0] ss:$12 sps:$4 sm:$0xff]  }
 0x121   :  { %v450_v37 = vadd.f32 %v449_v31, %v4286_v0  ;;  %v451_v38 = vpop.f32.mrb[14].mxu0  ;;  %1670 = vmatprep.mubr.bf16.mxu0 %v906_v23  ;;  %2052 = vmatprep.mubr.bf16.mxu1 %v906_v23  ;;  %v570_v39 = vadd.f32 %v569_v33, %v4286_v0  ;;  %v571_v42 = vpop.f32.mrb[14].mxu1 }
 0x122   :  { %v452_v44 = vadd.f32 %v451_v38, %v4281_v34  ;;  %v453_v46 = vpop.f32.mrb[15].mxu0  ;;  %1671 = vmatmul.mubr.bf16.gmra.mrb[56].mxu0 %v905_v20  ;;  %2053 = vmatmul.mubr.bf16.gmra.mrb[88].mxu1 %v905_v20  ;;  %v889_v48 = vmax.f32 %v568_v32, 0.0  ;;  %v572_v49 = vadd.f32 %v571_v42, %v4281_v34  ;;  %v573_v51 = vpop.f32.mrb[15].mxu1  ;;  %v793_v57 = vmax.f32 %v448_v30, 0.0  ;;  %v3910_v32 = vld [vmem:[#allocation2 + $0x228] ss:$12 sps:$4 sm:$0xff]  }
 0x123   :  { %v454_v52 = vadd.f32 %v453_v46, %v4286_v0  ;;  %1820 = vmatpush1.bf16.msra.mxu0 %v3897_v21  ;;  %3318 = vmatpush3.bf16.msra.mxu1 %v3917_v27  ;;  %v890_v54 = vmax.f32 %v570_v39, 0.0  ;;  %v574_v55 = vadd.f32 %v573_v51, %v4286_v0  ;;  %v794_v62 = vmax.f32 %v450_v37, 0.0  ;;  %v3941_v37 = vld [vmem:[#allocation2 + $0x230] ss:$12 sps:$4 sm:$0xff]  }
 0x124   :  { %v797_v58 = vmax.f32 %v452_v44, 0.0  ;;  %1821 = vmatprep.subr.bf16.mxu0 %v3904_v26  ;;  %v893_v59 = vmax.f32 %v572_v49, 0.0  ;;  %3319 = vmatprep.subr.bf16.mxu1 %v3924_v35  ;;  %v3915_v42 = vld [vmem:[#allocation2 + $0x244] ss:$12 sps:$4 sm:$0xff]  }
 0x125   :  { %v798_v63 = vmax.f32 %v454_v52, 0.0  ;;  %v894_v1 = vmax.f32 %v574_v55, 0.0 }
 0x126   :  { %v909_v3 = vpack.c.bf16 %v797_v58, %v793_v57  ;;  %v4342_v5 = vpack.c.bf16 %v893_v59, %v889_v48  ;;  %v3920_v58 = vld [vmem:[#allocation2 + $0x25c] ss:$12 sps:$4 sm:$0xff]  }
 0x127   :  { %v910_v6 = vpack.c.bf16 %v798_v63, %v794_v62  ;;  %v457_v7 = vpop.f32.mrb[16].mxu0  ;;  %1822 = vmatpush1.bf16.msra.mxu0 %v3902_v47  ;;  %v4344_v10 = vpack.c.bf16 %v894_v1, %v890_v54  ;;  %v610_v11 = vpop.f32.mrb[16].mxu1  ;;  %3320 = vmatpush3.bf16.msra.mxu1 %v3925_v56 }
 0x128   :  { %v458_v13 = vadd.f32 %v457_v7, %v4281_v34  ;;  %v459_v14 = vpop.f32.mrb[17].mxu0  ;;  %1823 = vmatprep.subr.bf16.mxu0 %v3907_v53  ;;  %v611_v19 = vadd.f32 %v610_v11, %v4337_v60  ;;  %v612_v16 = vpop.f32.mrb[17].mxu1  ;;  %3321 = vmatprep.subr.bf16.mxu1 %v3932_v61  ;;  %v3913_v53 = vld [vmem:[#allocation2 + $0x240] ss:$12 sps:$4 sm:$0xff]  }
 0x129   :  { %v460_v18 = vadd.f32 %v459_v14, %v4286_v0  ;;  %v461_v20 = vpop.f32.mrb[18].mxu0  ;;  %1680 = vmatprep.mubr.bf16.mxu0 %v910_v6  ;;  %2060 = vmatprep.mubr.bf16.mxu1 %v910_v6  ;;  %v613_v21 = vadd.f32 %v612_v16, %v4340_v2  ;;  %v614_v23 = vpop.f32.mrb[18].mxu1  ;;  %v3918_v14 = vld [vmem:[#allocation2 + $0x258] ss:$12 sps:$4 sm:$0xff]  }
 0x12a   :  { %v462_v24 = vadd.f32 %v461_v20, %v4281_v34  ;;  %v463_v26 = vpop.f32.mrb[19].mxu0  ;;  %1681 = vmatmul.mubr.bf16.gmra.mrb[60].mxu0 %v909_v3  ;;  %2061 = vmatmul.mubr.bf16.gmra.mrb[92].mxu1 %v909_v3  ;;  %v771_v27 = vmax.f32 %v611_v19, 0.0  ;;  %v615_v29 = vadd.f32 %v614_v23, %v4337_v60  ;;  %v616_v30 = vpop.f32.mrb[19].mxu1  ;;  %v801_v38 = vmax.f32 %v458_v13, 0.0 }
 0x12b   :  { %v464_v31 = vadd.f32 %v463_v26, %v4286_v0  ;;  %1824 = vmatpush1.bf16.msra.mxu0 %v3905_v8  ;;  %v772_v33 = vmax.f32 %v613_v21, 0.0  ;;  %v617_v35 = vadd.f32 %v616_v30, %v4340_v2  ;;  %3322 = vmatpush3.bf16.msra.mxu1 %v3933_v12  ;;  %v802_v44 = vmax.f32 %v460_v18, 0.0  ;;  %v3923_v18 = vld [vmem:[#allocation2 + $0x274] ss:$12 sps:$4 sm:$0xff]  }
 0x12c   :  { %v805_v39 = vmax.f32 %v462_v24, 0.0  ;;  %1825 = vmatprep.subr.bf16.mxu0 %v3912_v15  ;;  %v775_v43 = vmax.f32 %v615_v29, 0.0  ;;  %3323 = vmatprep.subr.bf16.mxu1 %v3940_v17 }
 0x12d   :  { %v806_v46 = vmax.f32 %v464_v31, 0.0  ;;  %v776_v47 = vmax.f32 %v617_v35, 0.0  ;;  %v3921_v31 = vld [vmem:[#allocation2 + $0x270] ss:$12 sps:$4 sm:$0xff]  }
 0x12e   :  { %v913_v48 = vpack.c.bf16 %v805_v39, %v801_v38  ;;  %v4354_v49 = vpack.c.bf16 %v775_v43, %v771_v27  ;;  %v3928_v38 = vld [vmem:[#allocation2 + $0x28c] ss:$12 sps:$4 sm:$0xff]  }
 0x12f   :  { %v914_v51 = vpack.c.bf16 %v806_v46, %v802_v44  ;;  %v467_v52 = vpop.f32.mrb[20].mxu0  ;;  %1826 = vmatpush1.bf16.msra.mxu0 %v3910_v32  ;;  %v4356_v54 = vpack.c.bf16 %v776_v47, %v772_v33  ;;  %v620_v55 = vpop.f32.mrb[20].mxu1  ;;  %3324 = vmatpush3.bf16.msra.mxu1 %v3941_v37 }
 0x130   :  { %v468_v56 = vadd.f32 %v467_v52, %v4281_v34  ;;  %v469_v57 = vpop.f32.mrb[21].mxu0  ;;  %1827 = vmatprep.subr.bf16.mxu0 %v3915_v42  ;;  %v621_v59 = vadd.f32 %v620_v55, %v4337_v60  ;;  %v622_v61 = vpop.f32.mrb[21].mxu1 }
 0x131   :  { %v470_v62 = vadd.f32 %v469_v57, %v4286_v0  ;;  %v471_v63 = vpop.f32.mrb[22].mxu0  ;;  %1690 = vmatprep.mubr.bf16.mxu0 %v914_v51  ;;  %2068 = vmatprep.mubr.bf16.mxu1 %v914_v51  ;;  %v623_v1 = vadd.f32 %v622_v61, %v4340_v2  ;;  %v624_v3 = vpop.f32.mrb[22].mxu1  ;;  %v3926_v57 = vld [vmem:[#allocation2 + $0x288] ss:$12 sps:$4 sm:$0xff]  }
 0x132   :  { %v472_v6 = vadd.f32 %v471_v63, %v4281_v34  ;;  %v473_v7 = vpop.f32.mrb[23].mxu0  ;;  %1691 = vmatmul.mubr.bf16.gmra.mrb[64].mxu0 %v913_v48  ;;  %2069 = vmatmul.mubr.bf16.gmra.mrb[96].mxu1 %v913_v48  ;;  %v779_v8 = vmax.f32 %v621_v59, 0.0  ;;  %v625_v11 = vadd.f32 %v624_v3, %v4337_v60  ;;  %v626_v12 = vpop.f32.mrb[23].mxu1  ;;  %v809_v16 = vmax.f32 %v468_v56, 0.0  ;;  %v3931_v63 = vld [vmem:[#allocation2 + $0x2a4] ss:$12 sps:$4 sm:$0xff]  }
 0x133   :  { %v474_v13 = vadd.f32 %v473_v7, %v4286_v0  ;;  %1828 = vmatpush1.bf16.msra.mxu0 %v3913_v53  ;;  %v780_v15 = vmax.f32 %v623_v1, 0.0  ;;  %v627_v19 = vadd.f32 %v626_v12, %v4340_v2  ;;  %v810_v21 = vmax.f32 %v470_v62, 0.0 }
 0x134   :  { %v813_v17 = vmax.f32 %v472_v6, 0.0  ;;  %1829 = vmatprep.subr.bf16.mxu0 %v3920_v58  ;;  %v783_v20 = vmax.f32 %v625_v11, 0.0 }
 0x135   :  { %v814_v23 = vmax.f32 %v474_v13, 0.0  ;;  %v784_v24 = vmax.f32 %v627_v19, 0.0 }
 0x136   :  { %v917_v26 = vpack.c.bf16 %v813_v17, %v809_v16  ;;  %v4366_v27 = vpack.c.bf16 %v783_v20, %v779_v8 }
 0x137   :  { %v918_v29 = vpack.c.bf16 %v814_v23, %v810_v21  ;;  %v477_v30 = vpop.f32.mrb[24].mxu0  ;;  %1830 = vmatpush1.bf16.msra.mxu0 %v3918_v14  ;;  %v4368_v32 = vpack.c.bf16 %v784_v24, %v780_v15  ;;  %v630_v33 = vpop.f32.mrb[24].mxu1  ;;  %v3929_v14 = vld [vmem:[#allocation2 + $0x2a0] ss:$12 sps:$4 sm:$0xff]  }
 0x138   :  { %v478_v35 = vadd.f32 %v477_v30, %v4281_v34  ;;  %v479_v37 = vpop.f32.mrb[25].mxu0  ;;  %1831 = vmatprep.subr.bf16.mxu0 %v3923_v18  ;;  %v631_v39 = vadd.f32 %v630_v33, %v4337_v60  ;;  %v632_v42 = vpop.f32.mrb[25].mxu1  ;;  %v3936_v18 = vld [vmem:[#allocation2 + $0x2bc] ss:$12 sps:$4 sm:$0xff]  }
 0x139   :  { %v480_v43 = vadd.f32 %v479_v37, %v4286_v0  ;;  %v481_v44 = vpop.f32.mrb[26].mxu0  ;;  %1700 = vmatprep.mubr.bf16.mxu0 %v918_v29  ;;  %2076 = vmatprep.mubr.bf16.mxu1 %v918_v29  ;;  %v633_v46 = vadd.f32 %v632_v42, %v4340_v2  ;;  %v634_v47 = vpop.f32.mrb[26].mxu1 }
 0x13a   :  { %v482_v48 = vadd.f32 %v481_v44, %v4281_v34  ;;  %v483_v51 = vpop.f32.mrb[27].mxu0  ;;  %1701 = vmatmul.mubr.bf16.gmra.mrb[68].mxu0 %v917_v26  ;;  %2077 = vmatmul.mubr.bf16.gmra.mrb[100].mxu1 %v917_v26  ;;  %v787_v52 = vmax.f32 %v631_v39, 0.0  ;;  %v635_v53 = vadd.f32 %v634_v47, %v4337_v60  ;;  %v636_v55 = vpop.f32.mrb[27].mxu1  ;;  %v817_v61 = vmax.f32 %v478_v35, 0.0  ;;  %v3934_v39 = vld [vmem:[#allocation2 + $0x2b8] ss:$12 sps:$4 sm:$0xff]  }
 0x13b   :  { %v484_v56 = vadd.f32 %v483_v51, %v4286_v0  ;;  %1832 = vmatpush1.bf16.msra.mxu0 %v3921_v31  ;;  %v788_v58 = vmax.f32 %v633_v46, 0.0  ;;  %v637_v59 = vadd.f32 %v636_v55, %v4340_v2  ;;  %v818_v3 = vmax.f32 %v480_v43, 0.0 }
 0x13c   :  { %v821_v62 = vmax.f32 %v482_v48, 0.0  ;;  %1833 = vmatprep.subr.bf16.mxu0 %v3928_v38  ;;  %v791_v1 = vmax.f32 %v635_v53, 0.0  ;;  %v3939_v48 = vld [vmem:[#allocation2 + $0x2d4] ss:$12 sps:$4 sm:$0xff]  }
 0x13d   :  { %v822_v6 = vmax.f32 %v484_v56, 0.0  ;;  %v792_v7 = vmax.f32 %v637_v59, 0.0 }
 0x13e   :  { %v921_v8 = vpack.c.bf16 %v821_v62, %v817_v61  ;;  %v4378_v11 = vpack.c.bf16 %v791_v1, %v787_v52  ;;  %v3937_v61 = vld [vmem:[#allocation2 + $0x2d0] ss:$12 sps:$4 sm:$0xff]  }
 0x13f   :  { %v922_v12 = vpack.c.bf16 %v822_v6, %v818_v3  ;;  %v487_v13 = vpop.f32.mrb[28].mxu0  ;;  %1834 = vmatpush1.bf16.msra.mxu0 %v3926_v57  ;;  %v4380_v15 = vpack.c.bf16 %v792_v7, %v788_v58  ;;  %v640_v19 = vpop.f32.mrb[28].mxu1  ;;  %v3944_v7 = vld [vmem:[#allocation2 + $0x2ec] ss:$12 sps:$4 sm:$0xff]  }
 0x140   :  { %v488_v16 = vadd.f32 %v487_v13, %v4281_v34  ;;  %v489_v17 = vpop.f32.mrb[29].mxu0  ;;  %1835 = vmatprep.subr.bf16.mxu0 %v3931_v63  ;;  %v641_v20 = vadd.f32 %v640_v19, %v4337_v60  ;;  %v642_v21 = vpop.f32.mrb[29].mxu1 }
 0x141   :  { %v490_v23 = vadd.f32 %v489_v17, %v4286_v0  ;;  %v491_v24 = vpop.f32.mrb[30].mxu0  ;;  %1710 = vmatprep.mubr.bf16.mxu0 %v922_v12  ;;  %2084 = vmatprep.mubr.bf16.mxu1 %v922_v12  ;;  %v643_v26 = vadd.f32 %v642_v21, %v4340_v2  ;;  %v644_v29 = vpop.f32.mrb[30].mxu1 }
 0x142   :  { %v492_v30 = vadd.f32 %v491_v24, %v4281_v34  ;;  %v493_v31 = vpop.f32.mrb[31].mxu0  ;;  %1711 = vmatmul.mubr.bf16.gmra.mrb[72].mxu0 %v921_v8  ;;  %2085 = vmatmul.mubr.bf16.gmra.mrb[104].mxu1 %v921_v8  ;;  %v795_v33 = vmax.f32 %v641_v20, 0.0  ;;  %v645_v35 = vadd.f32 %v644_v29, %v4337_v60  ;;  %v646_v37 = vpop.f32.mrb[31].mxu1  ;;  %v825_v44 = vmax.f32 %v488_v16, 0.0 }
 0x143   :  { %v494_v38 = vadd.f32 %v493_v31, %v4286_v0  ;;  %1836 = vmatpush1.bf16.msra.mxu0 %v3929_v14  ;;  %v796_v42 = vmax.f32 %v643_v26, 0.0  ;;  %v647_v43 = vadd.f32 %v646_v37, %v4340_v2  ;;  %v826_v51 = vmax.f32 %v490_v23, 0.0  ;;  %v3942_v26 = vld [vmem:[#allocation2 + $0x2e8] ss:$12 sps:$4 sm:$0xff]  }
 0x144   :  { %v829_v46 = vmax.f32 %v492_v30, 0.0  ;;  %1837 = vmatprep.subr.bf16.mxu0 %v3936_v18  ;;  %v799_v47 = vmax.f32 %v645_v35, 0.0 }
 0x145   :  { %v830_v52 = vmax.f32 %v494_v38, 0.0  ;;  %v800_v53 = vmax.f32 %v647_v43, 0.0 }
 0x146   :  { %v925_v55 = vpack.c.bf16 %v829_v46, %v825_v44  ;;  %v4390_v56 = vpack.c.bf16 %v799_v47, %v795_v33 }
 0x147   :  { %v926_v57 = vpack.c.bf16 %v830_v52, %v826_v51  ;;  %v497_v58 = vpop.f32.mrb[32].mxu0  ;;  %1838 = vmatpush1.bf16.msra.mxu0 %v3934_v39  ;;  %v4392_v59 = vpack.c.bf16 %v800_v53, %v796_v42  ;;  %v650_v62 = vpop.f32.mrb[32].mxu1 }
 0x148   :  { %v498_v63 = vadd.f32 %v497_v58, %v4281_v34  ;;  %v499_v1 = vpop.f32.mrb[33].mxu0  ;;  %1839 = vmatprep.subr.bf16.mxu0 %v3939_v48  ;;  %v651_v3 = vadd.f32 %v650_v62, %v4337_v60  ;;  %v652_v6 = vpop.f32.mrb[33].mxu1 }
 0x149   :  { %v500_v8 = vadd.f32 %v499_v1, %v4286_v0  ;;  %v501_v12 = vpop.f32.mrb[34].mxu0  ;;  %1720 = vmatprep.mubr.bf16.mxu0 %v926_v57  ;;  %2092 = vmatprep.mubr.bf16.mxu1 %v926_v57  ;;  %v653_v13 = vadd.f32 %v652_v6, %v4340_v2  ;;  %v654_v14 = vpop.f32.mrb[34].mxu1 }
 0x14a   :  { %v502_v19 = vadd.f32 %v501_v12, %v4281_v34  ;;  %v503_v16 = vpop.f32.mrb[35].mxu0  ;;  %1721 = vmatmul.mubr.bf16.gmra.mrb[76].mxu0 %v925_v55  ;;  %2093 = vmatmul.mubr.bf16.gmra.mrb[108].mxu1 %v925_v55  ;;  %v803_v17 = vmax.f32 %v651_v3, 0.0  ;;  %v655_v18 = vadd.f32 %v654_v14, %v4337_v60  ;;  %v656_v20 = vpop.f32.mrb[35].mxu1  ;;  %v833_v29 = vmax.f32 %v498_v63, 0.0 }
 0x14b   :  { %v504_v21 = vadd.f32 %v503_v16, %v4286_v0  ;;  %1840 = vmatpush1.bf16.msra.mxu0 %v3937_v61  ;;  %v804_v23 = vmax.f32 %v653_v13, 0.0  ;;  %v657_v24 = vadd.f32 %v656_v20, %v4340_v2  ;;  %v834_v33 = vmax.f32 %v500_v8, 0.0 }
 0x14c   :  { %v837_v30 = vmax.f32 %v502_v19, 0.0  ;;  %v807_v31 = vmax.f32 %v655_v18, 0.0  ;;  %1841 = vmatprep.subr.bf16.mxu0 %v3944_v7 }
 0x14d   :  { %v838_v35 = vmax.f32 %v504_v21, 0.0  ;;  %v808_v37 = vmax.f32 %v657_v24, 0.0 }
 0x14e   :  { %v929_v38 = vpack.c.bf16 %v837_v30, %v833_v29  ;;  %v4402_v39 = vpack.c.bf16 %v807_v31, %v803_v17 }
 0x14f   :  { %v930_v42 = vpack.c.bf16 %v838_v35, %v834_v33  ;;  %v507_v43 = vpop.f32.mrb[36].mxu0  ;;  %v4404_v44 = vpack.c.bf16 %v808_v37, %v804_v23  ;;  %1842 = vmatpush1.bf16.msra.mxu0 %v3942_v26  ;;  %v660_v46 = vpop.f32.mrb[36].mxu1 }
 0x150   :  { %v508_v47 = vadd.f32 %v507_v43, %v4281_v34  ;;  %v509_v48 = vpop.f32.mrb[37].mxu0  ;;  %v661_v51 = vadd.f32 %v660_v46, %v4337_v60  ;;  %v662_v52 = vpop.f32.mrb[37].mxu1 }
 0x151   :  { %v510_v53 = vadd.f32 %v509_v48, %v4286_v0  ;;  %v511_v55 = vpop.f32.mrb[38].mxu0  ;;  %1730 = vmatprep.mubr.bf16.mxu0 %v930_v42  ;;  %2100 = vmatprep.mubr.bf16.mxu1 %v930_v42  ;;  %v663_v57 = vadd.f32 %v662_v52, %v4340_v2  ;;  %v664_v58 = vpop.f32.mrb[38].mxu1 }
 0x152   :  { %v512_v61 = vadd.f32 %v511_v55, %v4281_v34  ;;  %v513_v62 = vpop.f32.mrb[39].mxu0  ;;  %1731 = vmatmul.mubr.bf16.gmra.mrb[80].mxu0 %v929_v38  ;;  %2101 = vmatmul.mubr.bf16.gmra.mrb[112].mxu1 %v929_v38  ;;  %v811_v63 = vmax.f32 %v661_v51, 0.0  ;;  %v665_v1 = vadd.f32 %v664_v58, %v4337_v60  ;;  %v666_v3 = vpop.f32.mrb[39].mxu1  ;;  %v841_v12 = vmax.f32 %v508_v47, 0.0 }
 0x153   :  { %v514_v6 = vadd.f32 %v513_v62, %v4286_v0  ;;  %v812_v7 = vmax.f32 %v663_v57, 0.0  ;;  %v667_v8 = vadd.f32 %v666_v3, %v4340_v2  ;;  %v842_v19 = vmax.f32 %v510_v53, 0.0 }
 0x154   :  { %v845_v13 = vmax.f32 %v512_v61, 0.0  ;;  %v815_v14 = vmax.f32 %v665_v1, 0.0 }
 0x155   :  { %v846_v16 = vmax.f32 %v514_v6, 0.0  ;;  %v816_v17 = vmax.f32 %v667_v8, 0.0 }
 0x156   :  { %v933_v18 = vpack.c.bf16 %v845_v13, %v841_v12  ;;  %v4414_v20 = vpack.c.bf16 %v815_v14, %v811_v63 }
 0x157   :  { %v934_v21 = vpack.c.bf16 %v846_v16, %v842_v19  ;;  %v517_v23 = vpop.f32.mrb[40].mxu0  ;;  %v4416_v24 = vpack.c.bf16 %v816_v17, %v812_v7  ;;  %v670_v26 = vpop.f32.mrb[40].mxu1 }
 0x158   :  { %v518_v29 = vadd.f32 %v517_v23, %v4281_v34  ;;  %v519_v30 = vpop.f32.mrb[41].mxu0  ;;  %v671_v31 = vadd.f32 %v670_v26, %v4337_v60  ;;  %v672_v33 = vpop.f32.mrb[41].mxu1 }
 0x159   :  { %v520_v35 = vadd.f32 %v519_v30, %v4286_v0  ;;  %v521_v37 = vpop.f32.mrb[42].mxu0  ;;  %1740 = vmatprep.mubr.bf16.mxu0 %v934_v21  ;;  %2108 = vmatprep.mubr.bf16.mxu1 %v934_v21  ;;  %v673_v38 = vadd.f32 %v672_v33, %v4340_v2  ;;  %v674_v42 = vpop.f32.mrb[42].mxu1 }
 0x15a   :  { %v522_v43 = vadd.f32 %v521_v37, %v4281_v34  ;;  %v523_v46 = vpop.f32.mrb[43].mxu0  ;;  %1741 = vmatmul.mubr.bf16.gmra.mrb[84].mxu0 %v933_v18  ;;  %2109 = vmatmul.mubr.bf16.gmra.mrb[116].mxu1 %v933_v18  ;;  %v819_v47 = vmax.f32 %v671_v31, 0.0  ;;  %v675_v48 = vadd.f32 %v674_v42, %v4337_v60  ;;  %v676_v51 = vpop.f32.mrb[43].mxu1  ;;  %v849_v57 = vmax.f32 %v518_v29, 0.0 }
 0x15b   :  { %v524_v52 = vadd.f32 %v523_v46, %v4286_v0  ;;  %v820_v53 = vmax.f32 %v673_v38, 0.0  ;;  %v677_v55 = vadd.f32 %v676_v51, %v4340_v2  ;;  %v850_v62 = vmax.f32 %v520_v35, 0.0 }
 0x15c   :  { %v853_v58 = vmax.f32 %v522_v43, 0.0  ;;  %v823_v61 = vmax.f32 %v675_v48, 0.0 }
 0x15d   :  { %v854_v63 = vmax.f32 %v524_v52, 0.0  ;;  %v824_v1 = vmax.f32 %v677_v55, 0.0 }
 0x15e   :  { %v937_v3 = vpack.c.bf16 %v853_v58, %v849_v57  ;;  %v4426_v6 = vpack.c.bf16 %v823_v61, %v819_v47 }
 0x15f   :  { %v938_v7 = vpack.c.bf16 %v854_v63, %v850_v62  ;;  %v527_v8 = vpop.f32.mrb[44].mxu0  ;;  %v4428_v12 = vpack.c.bf16 %v824_v1, %v820_v53  ;;  %v680_v13 = vpop.f32.mrb[44].mxu1 }
 0x160   :  { %v528_v14 = vadd.f32 %v527_v8, %v4281_v34  ;;  %v529_v19 = vpop.f32.mrb[45].mxu0  ;;  %v681_v16 = vadd.f32 %v680_v13, %v4337_v60  ;;  %v682_v17 = vpop.f32.mrb[45].mxu1 }
 0x161   :  { %v530_v18 = vadd.f32 %v529_v19, %v4286_v0  ;;  %v531_v21 = vpop.f32.mrb[46].mxu0  ;;  %1750 = vmatprep.mubr.bf16.mxu0 %v938_v7  ;;  %2116 = vmatprep.mubr.bf16.mxu1 %v938_v7  ;;  %v683_v23 = vadd.f32 %v682_v17, %v4340_v2  ;;  %v684_v26 = vpop.f32.mrb[46].mxu1 }
 0x162   :  { %v532_v29 = vadd.f32 %v531_v21, %v4281_v34  ;;  %v533_v30 = vpop.f32.mrb[47].mxu0  ;;  %1751 = vmatmul.mubr.bf16.gmra.mrb[88].mxu0 %v937_v3  ;;  %2117 = vmatmul.mubr.bf16.gmra.mrb[120].mxu1 %v937_v3  ;;  %v827_v31 = vmax.f32 %v681_v16, 0.0  ;;  %v685_v33 = vadd.f32 %v684_v26, %v4337_v60  ;;  %v686_v35 = vpop.f32.mrb[47].mxu1  ;;  %v857_v43 = vmax.f32 %v528_v14, 0.0 }
 0x163   :  { %v534_v37 = vadd.f32 %v533_v30, %v4286_v0  ;;  %v828_v38 = vmax.f32 %v683_v23, 0.0  ;;  %v687_v42 = vadd.f32 %v686_v35, %v4340_v2  ;;  %v858_v48 = vmax.f32 %v530_v18, 0.0 }
 0x164   :  { %v861_v46 = vmax.f32 %v532_v29, 0.0  ;;  %v831_v47 = vmax.f32 %v685_v33, 0.0 }
 0x165   :  { %v862_v51 = vmax.f32 %v534_v37, 0.0  ;;  %v832_v52 = vmax.f32 %v687_v42, 0.0 }
 0x166   :  { %v941_v53 = vpack.c.bf16 %v861_v46, %v857_v43  ;;  %v4438_v34 = vpack.c.bf16 %v831_v47, %v827_v31 }
 0x167   :  { %v942_v55 = vpack.c.bf16 %v862_v51, %v858_v48  ;;  %v4440_v57 = vpack.c.bf16 %v832_v52, %v828_v38  ;;  %v690_v58 = vpop.f32.mrb[48].mxu1 }
 0x168   :  { %v691_v61 = vadd.f32 %v690_v58, %v4337_v60  ;;  %v692_v62 = vpop.f32.mrb[49].mxu1 }
 0x169   :  { %1760 = vmatprep.mubr.bf16.mxu0 %v942_v55  ;;  %2124 = vmatprep.mubr.bf16.mxu1 %v942_v55  ;;  %v693_v0 = vadd.f32 %v692_v62, %v4340_v2  ;;  %v694_v63 = vpop.f32.mrb[50].mxu1 }
 0x16a   :  { %1761 = vmatmul.mubr.bf16.gmra.mrb[92].mxu0 %v941_v53  ;;  %2125 = vmatmul.mubr.bf16.gmra.mrb[124].mxu1 %v941_v53  ;;  %v835_v1 = vmax.f32 %v691_v61, 0.0  ;;  %v695_v3 = vadd.f32 %v694_v63, %v4337_v60  ;;  %v696_v7 = vpop.f32.mrb[51].mxu1 }
 0x16b   :  { %1770 = vmatprep.mubr.bf16.mxu0 %v4298_v9  ;;  %2132 = vmatprep.mubr.bf16.mxu1 %v4298_v9  ;;  %v836_v8 = vmax.f32 %v693_v0, 0.0  ;;  %v697_v13 = vadd.f32 %v696_v7, %v4340_v2  ;;  %v3945_v9 = vld [vmem:[%s5003_s5 + $0x40] sm:$0xff]  }
 0x16c   :  { %v839_v14 = vmax.f32 %v695_v3, 0.0  ;;  %3421 = vmatprep.subr.bf16.mxu0 %v3945_v9 }
 0x16d   :  { %v840_v19 = vmax.f32 %v697_v13, 0.0 }
 0x16e   :  { %v4448_v16 = vpack.c.bf16 %v839_v14, %v835_v1 }
 0x16f   :  { %v4450_v17 = vpack.c.bf16 %v840_v19, %v836_v8  ;;  %v700_v18 = vpop.f32.mrb[52].mxu1 }
 0x170   :  { %v701_v21 = vadd.f32 %v700_v18, %v4337_v60  ;;  %v702_v23 = vpop.f32.mrb[53].mxu1 }
 0x171   :  { %v703_v26 = vadd.f32 %v702_v23, %v4340_v2  ;;  %v704_v29 = vpop.f32.mrb[54].mxu1 }
 0x172   :  { %1771 = vmatmul.mubr.bf16.gmra.mrb[96].mxu0 %v4296_v4  ;;  %2133 = vmatmul.mubr.bf16.gmra.mrb[128].mxu1 %v4296_v4  ;;  %v843_v30 = vmax.f32 %v701_v21, 0.0  ;;  %v705_v31 = vadd.f32 %v704_v29, %v4337_v60  ;;  %v706_v33 = vpop.f32.mrb[55].mxu1 }
 0x173   :  { %1780 = vmatprep.mubr.bf16.mxu0 %v4310_v50  ;;  %2140 = vmatprep.mubr.bf16.mxu1 %v4310_v50  ;;  %v844_v35 = vmax.f32 %v703_v26, 0.0  ;;  %v707_v37 = vadd.f32 %v706_v33, %v4340_v2 }
 0x174   :  { %v847_v38 = vmax.f32 %v705_v31, 0.0 }
 0x175   :  { %v848_v42 = vmax.f32 %v707_v37, 0.0 }
 0x176   :  { %v4463_v43 = vpack.c.bf16 %v847_v38, %v843_v30 }
 0x177   :  { %v4465_v46 = vpack.c.bf16 %v848_v42, %v844_v35  ;;  %v710_v47 = vpop.f32.mrb[56].mxu1 }
 0x178   :  { %v711_v4 = vadd.f32 %v710_v47, %v4337_v60  ;;  %v712_v48 = vpop.f32.mrb[57].mxu1 }
 0x179   :  { %v713_v51 = vadd.f32 %v712_v48, %v4340_v2  ;;  %v714_v52 = vpop.f32.mrb[58].mxu1 }
 0x17a   :  { %1781 = vmatmul.mubr.bf16.gmra.mrb[100].mxu0 %v4308_v45  ;;  %2141 = vmatmul.mubr.bf16.gmra.mrb[132].mxu1 %v4308_v45  ;;  %v851_v50 = vmax.f32 %v711_v4, 0.0  ;;  %v715_v53 = vadd.f32 %v714_v52, %v4337_v60  ;;  %v716_v55 = vpop.f32.mrb[59].mxu1 }
 0x17b   :  { %1790 = vmatprep.mubr.bf16.mxu0 %v4322_v28  ;;  %2148 = vmatprep.mubr.bf16.mxu1 %v4322_v28  ;;  %v852_v58 = vmax.f32 %v713_v51, 0.0  ;;  %v717_v61 = vadd.f32 %v716_v55, %v4340_v2  ;;  %v3946_v55 = vld [vmem:[%s5003_s5] sm:$0xff]  }
 0x17c   :  { %v855_v62 = vmax.f32 %v715_v53, 0.0 }
 0x17d   :  { %v856_v0 = vmax.f32 %v717_v61, 0.0  ;;  %v3947_v61 = vld [vmem:[%s5003_s5 + $0x48] sm:$0xff]  }
 0x17e   :  { %v4475_v63 = vpack.c.bf16 %v855_v62, %v851_v50 }
 0x17f   :  { %v4477_v1 = vpack.c.bf16 %v856_v0, %v852_v58  ;;  %v720_v3 = vpop.f32.mrb[60].mxu1 }
 0x180   :  { %v721_v45 = vadd.f32 %v720_v3, %v4337_v60  ;;  %v722_v7 = vpop.f32.mrb[61].mxu1 }
 0x181   :  { %v723_v8 = vadd.f32 %v722_v7, %v4340_v2  ;;  %v724_v13 = vpop.f32.mrb[62].mxu1 }
 0x182   :  { %1791 = vmatmul.mubr.bf16.gmra.mrb[104].mxu0 %v4320_v22  ;;  %2149 = vmatmul.mubr.bf16.gmra.mrb[136].mxu1 %v4320_v22  ;;  %v859_v28 = vmax.f32 %v721_v45, 0.0  ;;  %v725_v14 = vadd.f32 %v724_v13, %v4337_v60  ;;  %v726_v19 = vpop.f32.mrb[63].mxu1  ;;  %v3948_v13 = vld [vmem:[%s5003_s5 + $0x8] sm:$0xff]  }
 0x183   :  { %1800 = vmatprep.mubr.bf16.mxu0 %v4344_v10  ;;  %2156 = vmatprep.mubr.bf16.mxu1 %v4344_v10  ;;  %v860_v18 = vmax.f32 %v723_v8, 0.0  ;;  %v727_v21 = vadd.f32 %v726_v19, %v4340_v2 }
 0x184   :  { %v863_v23 = vmax.f32 %v725_v14, 0.0 }
 0x185   :  { %v864_v26 = vmax.f32 %v727_v21, 0.0 }
 0x186   :  { %v4487_v29 = vpack.c.bf16 %v863_v23, %v859_v28  ;;  %v3950_v23 = vld [vmem:[%s5003_s5 + $0x10] sm:$0xff]  }
 0x187   :  { %v4489_v9 = vpack.c.bf16 %v864_v26, %v860_v18  ;;  %v730_v30 = vpop.f32.mrb[64].mxu1 }
 0x188   :  { %v731_v22 = vadd.f32 %v730_v30, %v4337_v60  ;;  %v732_v31 = vpop.f32.mrb[65].mxu1 }
 0x189   :  { %v733_v33 = vadd.f32 %v732_v31, %v4340_v2  ;;  %v734_v35 = vpop.f32.mrb[66].mxu1 }
 0x18a   :  { %1801 = vmatmul.mubr.bf16.gmra.mrb[108].mxu0 %v4342_v5  ;;  %2157 = vmatmul.mubr.bf16.gmra.mrb[140].mxu1 %v4342_v5  ;;  %v867_v10 = vmax.f32 %v731_v22, 0.0  ;;  %v735_v37 = vadd.f32 %v734_v35, %v4337_v60  ;;  %v736_v38 = vpop.f32.mrb[67].mxu1 }
 0x18b   :  { %1843 = vmatprep.mubr.bf16.mxu0 %v4356_v54  ;;  %2197 = vmatprep.mubr.bf16.mxu1 %v4356_v54  ;;  %v868_v42 = vmax.f32 %v733_v33, 0.0  ;;  %v737_v47 = vadd.f32 %v736_v38, %v4340_v2 }
 0x18c   :  { %v871_v4 = vmax.f32 %v735_v37, 0.0 }
 0x18d   :  { %v872_v48 = vmax.f32 %v737_v47, 0.0 }
 0x18e   :  { %v4499_v51 = vpack.c.bf16 %v871_v4, %v867_v10 }
 0x18f   :  { %v4501_v52 = vpack.c.bf16 %v872_v48, %v868_v42  ;;  %v740_v50 = vpop.f32.mrb[68].mxu1 }
 0x190   :  { %v741_v5 = vadd.f32 %v740_v50, %v4337_v60  ;;  %v742_v53 = vpop.f32.mrb[69].mxu1 }
 0x191   :  { %v743_v58 = vadd.f32 %v742_v53, %v4340_v2  ;;  %v744_v54 = vpop.f32.mrb[70].mxu1 }
 0x192   :  { %1844 = vmatmul.mubr.bf16.vlgmr.msra.gmra.mrb[48].mxu0 %v4354_v49  ;;  %2198 = vmatmul.mubr.bf16.vlgmr.msra.gmra.mrb[144].mxu1 %v4354_v49  ;;  %v875_v62 = vmax.f32 %v741_v5, 0.0  ;;  %v745_v0 = vadd.f32 %v744_v54, %v4337_v60  ;;  %v746_v3 = vpop.f32.mrb[71].mxu1  ;;  %v3949_v49 = vld [vmem:[%s5003_s5 + $0x50] sm:$0xff]  }
 0x193   :  { %1853 = vmatprep.mubr.bf16.mxu0 %v4368_v32  ;;  %2205 = vmatprep.mubr.bf16.mxu1 %v4368_v32  ;;  %v876_v45 = vmax.f32 %v743_v58, 0.0  ;;  %v747_v7 = vadd.f32 %v746_v3, %v4340_v2 }
 0x194   :  { %v879_v8 = vmax.f32 %v745_v0, 0.0  ;;  %3422 = vmatpush3.bf16.msra.mxu0 %v3946_v55 }
 0x195   :  { %v880_v28 = vmax.f32 %v747_v7, 0.0  ;;  %3423 = vmatprep.subr.bf16.mxu0 %v3947_v61  ;;  %v3966_v7 = vld [vmem:[%s5003_s5 + $0xa8] sm:$0xff]  }
 0x196   :  { %v4523_v14 = vpack.c.bf16 %v879_v8, %v875_v62  ;;  %v3952_v62 = vld [vmem:[%s5003_s5 + $0x18] sm:$0xff]  }
 0x197   :  { %v4525_v19 = vpack.c.bf16 %v880_v28, %v876_v45  ;;  %v750_v32 = vpop.f32.mrb[72].mxu1 }
 0x198   :  { %v751_v18 = vadd.f32 %v750_v32, %v4337_v60  ;;  %v752_v21 = vpop.f32.mrb[73].mxu1  ;;  %3424 = vmatpush3.bf16.msra.mxu0 %v3948_v13  ;;  %v3967_v32 = vld [vmem:[%s5003_s5 + $0xb0] sm:$0xff]  }
 0x199   :  { %v753_v26 = vadd.f32 %v752_v21, %v4340_v2  ;;  %v754_v30 = vpop.f32.mrb[74].mxu1  ;;  %3425 = vmatprep.subr.bf16.mxu0 %v3949_v49 }
 0x19a   :  { %1854 = vmatmul.mubr.bf16.gmra.mrb[52].mxu0 %v4366_v27  ;;  %2206 = vmatmul.mubr.bf16.gmra.mrb[148].mxu1 %v4366_v27  ;;  %v883_v22 = vmax.f32 %v751_v18, 0.0  ;;  %v755_v31 = vadd.f32 %v754_v30, %v4337_v60  ;;  %v756_v33 = vpop.f32.mrb[75].mxu1 }
 0x19b   :  { %1863 = vmatprep.mubr.bf16.mxu0 %v4380_v15  ;;  %2213 = vmatprep.mubr.bf16.mxu1 %v4380_v15  ;;  %v884_v35 = vmax.f32 %v753_v26, 0.0  ;;  %v757_v10 = vadd.f32 %v756_v33, %v4340_v2  ;;  %v3951_v15 = vld [vmem:[%s5003_s5 + $0x58] sm:$0xff]  }
 0x19c   :  { %v887_v37 = vmax.f32 %v755_v31, 0.0  ;;  %3426 = vmatpush3.bf16.msra.mxu0 %v3950_v23 }
 0x19d   :  { %v888_v38 = vmax.f32 %v757_v10, 0.0  ;;  %3427 = vmatprep.subr.bf16.mxu0 %v3951_v15 }
 0x19e   :  { %v4538_v42 = vpack.c.bf16 %v887_v37, %v883_v22 }
 0x19f   :  { %v4540_v47 = vpack.c.bf16 %v888_v38, %v884_v35  ;;  %v760_v4 = vpop.f32.mrb[76].mxu1 }
 0x1a0   :  { %v761_v27 = vadd.f32 %v760_v4, %v4337_v60  ;;  %v762_v48 = vpop.f32.mrb[77].mxu1  ;;  %3428 = vmatpush3.bf16.msra.mxu0 %v3952_v62 }
 0x1a1   :  { %v763_v50 = vadd.f32 %v762_v48, %v4340_v2  ;;  %v764_v5 = vpop.f32.mrb[78].mxu1 }
 0x1a2   :  { %1864 = vmatmul.mubr.bf16.gmra.mrb[56].mxu0 %v4378_v11  ;;  %2214 = vmatmul.mubr.bf16.gmra.mrb[152].mxu1 %v4378_v11  ;;  %v891_v53 = vmax.f32 %v761_v27, 0.0  ;;  %v765_v55 = vadd.f32 %v764_v5, %v4337_v60  ;;  %v766_v58 = vpop.f32.mrb[79].mxu1  ;;  %v3953_v60 = vld [vmem:[%s5003_s5 + $0x60] sm:$0xff]  }
 0x1a3   :  { %1873 = vmatprep.mubr.bf16.mxu0 %v4392_v59  ;;  %2221 = vmatprep.mubr.bf16.mxu1 %v4392_v59  ;;  %v892_v54 = vmax.f32 %v763_v50, 0.0  ;;  %v767_v61 = vadd.f32 %v766_v58, %v4340_v2  ;;  %v3954_v2 = vld [vmem:[%s5003_s5 + $0x20] sm:$0xff]   ;;  %v3956_v59 = vld [vmem:[%s5003_s5 + $0x68] sm:$0xff]  }
 0x1a4   :  { %v895_v0 = vmax.f32 %v765_v55, 0.0  ;;  %3429 = vmatprep.subr.bf16.mxu0 %v3953_v60 }
 0x1a5   :  { %v896_v3 = vmax.f32 %v767_v61, 0.0  ;;  %3430 = vmatpush3.bf16.msra.mxu0 %v3954_v2 }
 0x1a6   :  { %v4556_v11 = vpack.c.bf16 %v895_v0, %v891_v53  ;;  %3431 = vmatprep.subr.bf16.mxu0 %v3956_v59 }
 0x1a7   :  { %v4558_v45 = vpack.c.bf16 %v896_v3, %v892_v54 }
 0x1aa   :  { %1874 = vmatmul.mubr.bf16.gmra.mrb[60].mxu0 %v4390_v56  ;;  %2222 = vmatmul.mubr.bf16.gmra.mrb[156].mxu1 %v4390_v56  ;;  %v3955_v56 = vld [vmem:[%s5003_s5 + $0x80] sm:$0xff]  }
 0x1ab   :  { %1883 = vmatprep.mubr.bf16.mxu0 %v4404_v44  ;;  %2229 = vmatprep.mubr.bf16.mxu1 %v4404_v44  ;;  %v3958_v44 = vld [vmem:[%s5003_s5 + $0x88] sm:$0xff]  }
 0x1ac   :  { %3557 = vmatprep.subr.bf16.mxu1 %v3955_v56 }
 0x1ad   :  { %3558 = vmatpush3.bf16.msra.mxu1 %v3955_v56 }
 0x1ae   :  { %3559 = vmatprep.subr.bf16.mxu1 %v3958_v44 }
 0x1b1   :  { %3560 = vmatpush3.bf16.msra.mxu1 %v3958_v44 }
 0x1b2   :  { %1884 = vmatmul.mubr.bf16.gmra.mrb[64].mxu0 %v4402_v39  ;;  %2230 = vmatmul.mubr.bf16.gmra.mrb[160].mxu1 %v4402_v39  ;;  %v3957_v39 = vld [vmem:[%s5003_s5 + $0x28] sm:$0xff]  }
 0x1b3   :  { %1893 = vmatprep.mubr.bf16.mxu0 %v4416_v24  ;;  %2237 = vmatprep.mubr.bf16.mxu1 %v4416_v24  ;;  %v3960_v24 = vld [vmem:[%s5003_s5 + $0x30] sm:$0xff]  }
 0x1b4   :  { %3432 = vmatpush3.bf16.msra.mxu0 %v3957_v39 }
 0x1ba   :  { %1894 = vmatmul.mubr.bf16.gmra.mrb[68].mxu0 %v4414_v20  ;;  %2238 = vmatmul.mubr.bf16.gmra.mrb[164].mxu1 %v4414_v20  ;;  %v3959_v20 = vld [vmem:[%s5003_s5 + $0x70] sm:$0xff]  }
 0x1bb   :  { %1903 = vmatprep.mubr.bf16.mxu0 %v4428_v12  ;;  %2245 = vmatprep.mubr.bf16.mxu1 %v4428_v12  ;;  %v3962_v12 = vld [vmem:[%s5003_s5 + $0x78] sm:$0xff]  }
 0x1bc   :  { %3433 = vmatprep.subr.bf16.mxu0 %v3959_v20 }
 0x1bd   :  { %3434 = vmatpush3.bf16.msra.mxu0 %v3960_v24 }
 0x1be   :  { %3435 = vmatprep.subr.bf16.mxu0 %v3962_v12 }
 0x1c2   :  { %1904 = vmatmul.mubr.bf16.gmra.mrb[72].mxu0 %v4426_v6  ;;  %2246 = vmatmul.mubr.bf16.gmra.mrb[168].mxu1 %v4426_v6  ;;  %v3961_v6 = vld [vmem:[%s5003_s5 + $0x90] sm:$0xff]  }
 0x1c3   :  { %1913 = vmatprep.mubr.bf16.mxu0 %v4440_v57  ;;  %2253 = vmatprep.mubr.bf16.mxu1 %v4440_v57  ;;  %v3964_v57 = vld [vmem:[%s5003_s5 + $0x98] sm:$0xff]  }
 0x1c4   :  { %3561 = vmatprep.subr.bf16.mxu1 %v3961_v6 }
 0x1c5   :  { %3562 = vmatpush3.bf16.msra.mxu1 %v3961_v6 }
 0x1c6   :  { %3563 = vmatprep.subr.bf16.mxu1 %v3964_v57 }
 0x1c9   :  { %3564 = vmatpush3.bf16.msra.mxu1 %v3964_v57 }
 0x1ca   :  { %1914 = vmatmul.mubr.bf16.gmra.mrb[76].mxu0 %v4438_v34  ;;  %2254 = vmatmul.mubr.bf16.gmra.mrb[172].mxu1 %v4438_v34  ;;  %v3963_v34 = vld [vmem:[%s5003_s5 + $0x38] sm:$0xff]  }
 0x1cb   :  { %1923 = vmatprep.mubr.bf16.mxu0 %v4450_v17  ;;  %2261 = vmatprep.mubr.bf16.mxu1 %v4450_v17 }
 0x1cc   :  { %3436 = vmatpush3.bf16.msra.mxu0 %v3963_v34 }
 0x1d2   :  { %1924 = vmatmul.mubr.bf16.gmra.mrb[80].mxu0 %v4448_v16  ;;  %2262 = vmatmul.mubr.bf16.gmra.mrb[176].mxu1 %v4448_v16 }
 0x1d3   :  { %1933 = vmatprep.mubr.bf16.mxu0 %v4465_v46  ;;  %2269 = vmatprep.mubr.bf16.mxu1 %v4465_v46 }
 0x1da   :  { %1934 = vmatmul.mubr.bf16.gmra.mrb[84].mxu0 %v4463_v43  ;;  %2270 = vmatmul.mubr.bf16.gmra.mrb[180].mxu1 %v4463_v43 }
 0x1db   :  { %1943 = vmatprep.mubr.bf16.mxu0 %v4477_v1  ;;  %2277 = vmatprep.mubr.bf16.mxu1 %v4477_v1 }
 0x1e2   :  { %1944 = vmatmul.mubr.bf16.gmra.mrb[88].mxu0 %v4475_v63  ;;  %2278 = vmatmul.mubr.bf16.gmra.mrb[184].mxu1 %v4475_v63  ;;  %v3965_v63 = vld [vmem:[%s5003_s5 + $0xa0] sm:$0xff]  }
 0x1e3   :  { %1953 = vmatprep.mubr.bf16.mxu0 %v4489_v9  ;;  %2285 = vmatprep.mubr.bf16.mxu1 %v4489_v9 }
 0x1e4   :  { %3565 = vmatprep.subr.bf16.mxu1 %v3965_v63 }
 0x1e5   :  { %v3213_v16 = vpop.f32.mrb[80].mxu1  ;;  %3566 = vmatpush3.bf16.msra.mxu1 %v3965_v63 }
 0x1e6   :  { %v3214_v17 = vpop.f32.mrb[81].mxu1  ;;  %3567 = vmatprep.subr.bf16.mxu1 %v3966_v7 }
 0x1e7   :  { %v4628_v43 = vadd.f32 %v3214_v17, %v3213_v16  ;;  %v3216_v46 = vpop.f32.mrb[82].mxu1 }
 0x1e8   :  { %v3217_v1 = vpop.f32.mrb[83].mxu1 }
 0x1e9   :  { %v4633_v9 = vadd.f32 %v3217_v1, %v3216_v46  ;;  %3568 = vmatpush3.bf16.msra.mxu1 %v3966_v7 }
 0x1ea   :  { %1954 = vmatmul.mubr.bf16.gmra.mrb[92].mxu0 %v4487_v29  ;;  %2286 = vmatmul.mubr.bf16.gmra.mrb[188].mxu1 %v4487_v29 }
 0x1eb   :  { %1963 = vmatprep.mubr.bf16.mxu0 %v4501_v52  ;;  %2293 = vmatprep.mubr.bf16.mxu1 %v4501_v52  ;;  %v3968_v52 = vld [vmem:[%s5003_s5 + $0xb8] sm:$0xff]  }
 0x1ec   :  { %3569 = vmatprep.subr.bf16.mxu1 %v3967_v32 }
 0x1ed   :  { %v3219_v8 = vpop.f32.mrb[84].mxu1  ;;  %3570 = vmatpush3.bf16.msra.mxu1 %v3967_v32 }
 0x1ee   :  { %v3220_v13 = vpop.f32.mrb[85].mxu1  ;;  %3571 = vmatprep.subr.bf16.mxu1 %v3968_v52 }
 0x1ef   :  { %v4642_v28 = vadd.f32 %v3220_v13, %v3219_v8  ;;  %v3222_v49 = vpop.f32.mrb[86].mxu1 }
 0x1f0   :  { %v3223_v29 = vpop.f32.mrb[87].mxu1 }
 0x1f1   :  { %v4647_v18 = vadd.f32 %v3223_v29, %v3222_v49  ;;  %3572 = vmatpush3.bf16.msra.mxu1 %v3968_v52 }
 0x1f2   :  { %1964 = vmatmul.mubr.bf16.gmra.mrb[96].mxu0 %v4499_v51  ;;  %2294 = vmatmul.mubr.bf16.gmra.mrb[192].mxu1 %v4499_v51 }
 0x1f3   :  { %1973 = vmatprep.mubr.bf16.mxu0 %v4525_v19  ;;  %2301 = vmatprep.mubr.bf16.mxu1 %v4525_v19 }
 0x1f5   :  { %v3225_v21 = vpop.f32.mrb[88].mxu1 }
 0x1f6   :  { %v3226_v23 = vpop.f32.mrb[89].mxu1 }
 0x1f7   :  { %v4656_v26 = vadd.f32 %v3226_v23, %v3225_v21  ;;  %v3228_v30 = vpop.f32.mrb[90].mxu1 }
 0x1f8   :  { %v3229_v22 = vpop.f32.mrb[91].mxu1 }
 0x1f9   :  { %v4658_v31 = vadd.f32 %v3229_v22, %v3228_v30 }
 0x1fa   :  { %1974 = vmatmul.mubr.bf16.gmra.mrb[100].mxu0 %v4523_v14  ;;  %2302 = vmatmul.mubr.bf16.gmra.mrb[196].mxu1 %v4523_v14 }
 0x1fb   :  { %1983 = vmatprep.mubr.bf16.mxu0 %v4540_v47  ;;  %2309 = vmatprep.mubr.bf16.mxu1 %v4540_v47 }
 0x1fd   :  { %v3231_v51 = vpop.f32.mrb[92].mxu1 }
 0x1fe   :  { %v3232_v19 = vpop.f32.mrb[93].mxu1 }
 0x1ff   :  { %v4664_v33 = vadd.f32 %v3232_v19, %v3231_v51  ;;  %v3234_v35 = vpop.f32.mrb[94].mxu1 }
 0x200   :  { %v3235_v10 = vpop.f32.mrb[95].mxu1 }
 0x201   :  { %v4666_v37 = vadd.f32 %v3235_v10, %v3234_v35 }
 0x202   :  { %1984 = vmatmul.mubr.bf16.gmra.mrb[104].mxu0 %v4538_v42  ;;  %2310 = vmatmul.mubr.bf16.gmra.mrb[200].mxu1 %v4538_v42 }
 0x203   :  { %1993 = vmatprep.mubr.bf16.mxu0 %v4558_v45  ;;  %2317 = vmatprep.mubr.bf16.mxu1 %v4558_v45 }
 0x205   :  { %v3237_v14 = vpop.f32.mrb[96].mxu1 }
 0x206   :  { %v3238_v38 = vpop.f32.mrb[97].mxu1 }
 0x207   :  { %v4672_v4 = vadd.f32 %v3238_v38, %v3237_v14  ;;  %v3240_v47 = vpop.f32.mrb[98].mxu1 }
 0x208   :  { %v3241_v27 = vpop.f32.mrb[99].mxu1 }
 0x209   :  { %v4674_v48 = vadd.f32 %v3241_v27, %v3240_v47 }
 0x20a   :  { %1994 = vmatmul.mubr.bf16.gmra.mrb[108].mxu0 %v4556_v11  ;;  %2318 = vmatmul.mubr.bf16.gmra.mrb[204].mxu1 %v4556_v11 }
 0x20d   :  { %v3243_v50 = vpop.f32.mrb[100].mxu1 }
 0x20e   :  { %v3244_v5 = vpop.f32.mrb[101].mxu1 }
 0x20f   :  { %v4678_v15 = vadd.f32 %v3244_v5, %v3243_v50  ;;  %v3246_v42 = vpop.f32.mrb[102].mxu1 }
 0x210   :  { %v3247_v53 = vpop.f32.mrb[103].mxu1 }
 0x211   :  { %v4680_v55 = vadd.f32 %v3247_v53, %v3246_v42 }
 0x215   :  { %v3249_v58 = vpop.f32.mrb[104].mxu1 }
 0x216   :  { %v3250_v54 = vpop.f32.mrb[105].mxu1 }
 0x217   :  { %v4682_v61 = vadd.f32 %v3250_v54, %v3249_v58  ;;  %v3252_v62 = vpop.f32.mrb[106].mxu1 }
 0x218   :  { %v3253_v0 = vpop.f32.mrb[107].mxu1 }
 0x219   :  { %v4684_v3 = vadd.f32 %v3253_v0, %v3252_v62 }
 0x21d   :  { %v3255_v45 = vpop.f32.mrb[108].mxu1 }
 0x21e   :  { %v3256_v60 = vpop.f32.mrb[109].mxu1 }
 0x21f   :  { %v4686_v2 = vadd.f32 %v3256_v60, %v3255_v45  ;;  %v3258_v11 = vpop.f32.mrb[110].mxu1 }
 0x220   :  { %v3259_v56 = vpop.f32.mrb[111].mxu1 }
 0x221   :  { %v4688_v59 = vadd.f32 %v3259_v56, %v3258_v11 }
 0x225   :  { %v3261_v39 = vpop.f32.mrb[112].mxu1 }
 0x226   :  { %v3262_v44 = vpop.f32.mrb[113].mxu1 }
 0x227   :  { %v4690_v20 = vadd.f32 %v3262_v44, %v3261_v39  ;;  %v3264_v24 = vpop.f32.mrb[114].mxu1 }
 0x228   :  { %v3265_v6 = vpop.f32.mrb[115].mxu1 }
 0x229   :  { %v4692_v12 = vadd.f32 %v3265_v6, %v3264_v24  ;;  %v1089_v24 = vld [vmem:[%s5002_s4] sm:$0x7] }
 0x22d   :  { %v3267_v34 = vpop.f32.mrb[116].mxu1 }
 0x22e   :  { %v3268_v57 = vpop.f32.mrb[117].mxu1 }
 0x22f   :  { %v4694_v16 = vadd.f32 %v3268_v57, %v3267_v34  ;;  %v3270_v17 = vpop.f32.mrb[118].mxu1  ;;  %v4727_v57 = vrot.slane %v1089_v24, %v109_v41 }
 0x230   :  { %v3271_v46 = vpop.f32.mrb[119].mxu1 }
 0x231   :  { %v4696_v63 = vadd.f32 %v3271_v46, %v3270_v17  ;;  %v4731_v17 = vrot.slane %v1089_v24, %v117_v36  ;;  %v4735_v46 = vrot.slane %v1089_v24, %v113_v25 }
 0x233   :  { %v2042_v25 = vadd.f32 %v4633_v9, %v4731_v17  ;;  %v2047_v9 = vadd.f32 %v4642_v28, %v4731_v17 }
 0x235   :  { %v3273_v1 = vpop.f32.mrb[120].mxu1 }
 0x236   :  { %v3274_v7 = vpop.f32.mrb[121].mxu1 }
 0x237   :  { %v4698_v8 = vadd.f32 %v3274_v7, %v3273_v1  ;;  %v3276_v13 = vpop.f32.mrb[122].mxu1 }
 0x238   :  { %v3277_v49 = vpop.f32.mrb[123].mxu1 }
 0x239   :  { %v4700_v32 = vadd.f32 %v3277_v49, %v3276_v13 }
 0x23d   :  { %v3279_v29 = vpop.f32.mrb[124].mxu1 }
 0x23e   :  { %v3280_v52 = vpop.f32.mrb[125].mxu1 }
 0x23f   :  { %v4702_v21 = vadd.f32 %v3280_v52, %v3279_v29  ;;  %v3282_v23 = vpop.f32.mrb[126].mxu1  ;;  %v2039_v52 = vadd.f32 %v4628_v43, %v4731_v17 }
 0x240   :  { %v3283_v30 = vpop.f32.mrb[127].mxu1 }
 0x241   :  { %v4704_v22 = vadd.f32 %v3283_v30, %v3282_v23 }
 0x245   :  { %v3285_v51 = vpop.f32.mrb[128].mxu1 }
 0x246   :  { %v3286_v19 = vpop.f32.mrb[129].mxu1 }
 0x247   :  { %v4706_v35 = vadd.f32 %v3286_v19, %v3285_v51  ;;  %v3288_v10 = vpop.f32.mrb[130].mxu1 }
 0x248   :  { %v3289_v14 = vpop.f32.mrb[131].mxu1 }
 0x249   :  { %v4708_v38 = vadd.f32 %v3289_v14, %v3288_v10 }
 0x24d   :  { %v3291_v47 = vpop.f32.mrb[132].mxu1 }
 0x24e   :  { %v3292_v27 = vpop.f32.mrb[133].mxu1 }
 0x24f   :  { %v4710_v50 = vadd.f32 %v3292_v27, %v3291_v47  ;;  %v3294_v5 = vpop.f32.mrb[134].mxu1 }
 0x250   :  { %v3295_v42 = vpop.f32.mrb[135].mxu1 }
 0x251   :  { %v4712_v53 = vadd.f32 %v3295_v42, %v3294_v5 }
 0x255   :  { %v3297_v58 = vpop.f32.mrb[136].mxu1 }
 0x256   :  { %v3298_v54 = vpop.f32.mrb[137].mxu1 }
 0x257   :  { %v4714_v62 = vadd.f32 %v3298_v54, %v3297_v58  ;;  %v3300_v0 = vpop.f32.mrb[138].mxu1 }
 0x258   :  { %v3301_v45 = vpop.f32.mrb[139].mxu1 }
 0x259   :  { %v4716_v60 = vadd.f32 %v3301_v45, %v3300_v0 }
 0x25d   :  { %v3303_v11 = vpop.f32.mrb[140].mxu1 }
 0x25e   :  { %v3304_v56 = vpop.f32.mrb[141].mxu1 }
 0x25f   :  { %v4718_v39 = vadd.f32 %v3304_v56, %v3303_v11  ;;  %v3306_v44 = vpop.f32.mrb[142].mxu1 }
 0x260   :  { %v3307_v6 = vpop.f32.mrb[143].mxu1 }
 0x261   :  { %v4723_v34 = vadd.f32 %v3307_v6, %v3306_v44 }
 0x265   :  { %v1845_v1 = vpop.f32.mrb[48].mxu0  ;;  %v3325_v7 = vpop.f32.mrb[144].mxu1 }
 0x266   :  { %v3621_v13 = vadd.f32 %v1845_v1, %v4727_v57  ;;  %v1847_v49 = vpop.f32.mrb[49].mxu0  ;;  %v3326_v29 = vpop.f32.mrb[145].mxu1 }
 0x267   :  { %v3622_v41 = vadd.f32 %v1847_v49, %v4735_v46  ;;  %v3327_v23 = vadd.f32 %v3326_v29, %v3325_v7  ;;  %v1849_v30 = vpop.f32.mrb[50].mxu0  ;;  %v3328_v51 = vpop.f32.mrb[146].mxu1 }
 0x268   :  { %v3623_v36 = vadd.f32 %v1849_v30, %v4727_v57  ;;  %v1851_v19 = vpop.f32.mrb[51].mxu0  ;;  %v3329_v40 = vpop.f32.mrb[147].mxu1  ;;  %v2326_v27 = vmax.f32 %v3621_v13, 0.0 }
 0x269   :  { %v2200_v10 = vadd.f32 %v3327_v23, %v2039_v52  ;;  %v3624_v14 = vadd.f32 %v1851_v19, %v4735_v46  ;;  %v3330_v47 = vadd.f32 %v3329_v40, %v3328_v51  ;;  %v2327_v42 = vmax.f32 %v3622_v41, 0.0 }
 0x26a   :  { %v2329_v5 = vmax.f32 %v3623_v36, 0.0  ;;  %v2050_v51 = vadd.f32 %v4647_v18, %v4731_v17 }
 0x26b   :  { %v2330_v43 = vmax.f32 %v3624_v14, 0.0  ;;  %v2203_v58 = vadd.f32 %v3330_v47, %v2042_v25  ;;  %v2328_v0 = vmax.f32 %v2200_v10, 0.0 }
 0x26c   :  { %v2422_v54 = vpack.c.bf16 %v2329_v5, %v2326_v27 }
 0x26d   :  { %v2423_v45 = vpack.c.bf16 %v2330_v43, %v2327_v42  ;;  %v2331_v11 = vmax.f32 %v2203_v58, 0.0  ;;  %v1855_v56 = vpop.f32.mrb[52].mxu0  ;;  %v3331_v44 = vpop.f32.mrb[148].mxu1 }
 0x26e   :  { %v3625_v24 = vadd.f32 %v1855_v56, %v4727_v57  ;;  %v1857_v6 = vpop.f32.mrb[53].mxu0  ;;  %v3332_v1 = vpop.f32.mrb[149].mxu1 }
 0x26f   :  { %v3626_v7 = vadd.f32 %v1857_v6, %v4735_v46  ;;  %v3333_v13 = vadd.f32 %v3332_v1, %v3331_v44  ;;  %v1859_v49 = vpop.f32.mrb[54].mxu0  ;;  %v3334_v29 = vpop.f32.mrb[150].mxu1  ;;  %2701 = vmatprep.mubr.bf16.mxu0 %v2423_v45  ;;  %v2424_v52 = vpack.c.bf16 %v2331_v11, %v2328_v0  ;;  %v2055_v11 = vadd.f32 %v4656_v26, %v4731_v17 }
 0x270   :  { %v3627_v41 = vadd.f32 %v1859_v49, %v4727_v57  ;;  %v1861_v23 = vpop.f32.mrb[55].mxu0  ;;  %v3335_v30 = vpop.f32.mrb[151].mxu1  ;;  %2702 = vmatmul.mubr.bf16.vlgmr.msra.gmra.mrb[112].mxu0 %v2422_v54  ;;  %v2332_v28 = vmax.f32 %v3625_v24, 0.0  ;;  %v2058_v49 = vadd.f32 %v4658_v31, %v4731_v17 }
 0x271   :  { %v2208_v36 = vadd.f32 %v3333_v13, %v2047_v9  ;;  %v3628_v19 = vadd.f32 %v1861_v23, %v4735_v46  ;;  %v3336_v40 = vadd.f32 %v3335_v30, %v3334_v29  ;;  %3573 = vmatprep.mubr.bf16.mxu1 %v2424_v52  ;;  %v2333_v10 = vmax.f32 %v3626_v7, 0.0 }
 0x272   :  { %v2335_v25 = vmax.f32 %v3627_v41, 0.0 }
 0x273   :  { %v2336_v14 = vmax.f32 %v3628_v19, 0.0  ;;  %v2211_v47 = vadd.f32 %v3336_v40, %v2050_v51  ;;  %v2334_v5 = vmax.f32 %v2208_v36, 0.0 }
 0x274   :  { %v2425_v27 = vpack.c.bf16 %v2335_v25, %v2332_v28 }
 0x275   :  { %v2426_v42 = vpack.c.bf16 %v2336_v14, %v2333_v10  ;;  %v2337_v43 = vmax.f32 %v2211_v47, 0.0  ;;  %v1865_v58 = vpop.f32.mrb[56].mxu0  ;;  %v3337_v0 = vpop.f32.mrb[152].mxu1 }
 0x276   :  { %v3629_v54 = vadd.f32 %v1865_v58, %v4727_v57  ;;  %v1867_v45 = vpop.f32.mrb[57].mxu0  ;;  %v3338_v18 = vpop.f32.mrb[153].mxu1 }
 0x277   :  { %v2427_v56 = vpack.c.bf16 %v2337_v43, %v2334_v5  ;;  %v3630_v44 = vadd.f32 %v1867_v45, %v4735_v46  ;;  %v3339_v24 = vadd.f32 %v3338_v18, %v3337_v0  ;;  %v1869_v6 = vpop.f32.mrb[58].mxu0  ;;  %v3340_v1 = vpop.f32.mrb[154].mxu1  ;;  %2709 = vmatprep.mubr.bf16.mxu0 %v2426_v42  ;;  %v2063_v5 = vadd.f32 %v4664_v33, %v4731_v17 }
 0x278   :  { %v3631_v9 = vadd.f32 %v1869_v6, %v4727_v57  ;;  %v1871_v7 = vpop.f32.mrb[59].mxu0  ;;  %v3341_v13 = vpop.f32.mrb[155].mxu1  ;;  %2710 = vmatmul.mubr.bf16.gmra.mrb[116].mxu0 %v2425_v27  ;;  %v2338_v26 = vmax.f32 %v3629_v54, 0.0 }
 0x279   :  { %v2216_v29 = vadd.f32 %v3339_v24, %v2055_v11  ;;  %v3632_v52 = vadd.f32 %v1871_v7, %v4735_v46  ;;  %v3342_v41 = vadd.f32 %v3341_v13, %v3340_v1  ;;  %3574 = vmatmul.mubr.bf16.vlgmr.msra.gmra.mrb[208].mxu1 %v2427_v56  ;;  %v2339_v30 = vmax.f32 %v3630_v44, 0.0 }
 0x27a   :  { %v2341_v23 = vmax.f32 %v3631_v9, 0.0  ;;  %v2066_v56 = vadd.f32 %v4666_v37, %v4731_v17 }
 0x27b   :  { %v2342_v51 = vmax.f32 %v3632_v52, 0.0  ;;  %v2219_v36 = vadd.f32 %v3342_v41, %v2058_v49  ;;  %v2340_v40 = vmax.f32 %v2216_v29, 0.0 }
 0x27c   :  { %v2428_v19 = vpack.c.bf16 %v2341_v23, %v2338_v26 }
 0x27d   :  { %v2429_v28 = vpack.c.bf16 %v2342_v51, %v2339_v30  ;;  %v2343_v25 = vmax.f32 %v2219_v36, 0.0  ;;  %v1875_v10 = vpop.f32.mrb[60].mxu0  ;;  %v3343_v14 = vpop.f32.mrb[156].mxu1  ;;  %v2071_v36 = vadd.f32 %v4672_v4, %v4731_v17 }
 0x27e   :  { %v3633_v47 = vadd.f32 %v1875_v10, %v4727_v57  ;;  %v1877_v27 = vpop.f32.mrb[61].mxu0  ;;  %v3344_v31 = vpop.f32.mrb[157].mxu1 }
 0x27f   :  { %v3634_v42 = vadd.f32 %v1877_v27, %v4735_v46  ;;  %v3345_v43 = vadd.f32 %v3344_v31, %v3343_v14  ;;  %v1879_v58 = vpop.f32.mrb[62].mxu0  ;;  %v3346_v0 = vpop.f32.mrb[158].mxu1  ;;  %2717 = vmatprep.mubr.bf16.mxu0 %v2429_v28  ;;  %v2430_v54 = vpack.c.bf16 %v2343_v25, %v2340_v40  ;;  %v2074_v31 = vadd.f32 %v4674_v48, %v4731_v17 }
 0x280   :  { %v3635_v45 = vadd.f32 %v1879_v58, %v4727_v57  ;;  %v1881_v18 = vpop.f32.mrb[63].mxu0  ;;  %v3347_v11 = vpop.f32.mrb[159].mxu1  ;;  %2718 = vmatmul.mubr.bf16.gmra.mrb[120].mxu0 %v2428_v19  ;;  %v2344_v33 = vmax.f32 %v3633_v47, 0.0 }
 0x281   :  { %v2224_v44 = vadd.f32 %v3345_v43, %v2063_v5  ;;  %v3636_v24 = vadd.f32 %v1881_v18, %v4735_v46  ;;  %v3348_v6 = vadd.f32 %v3347_v11, %v3346_v0  ;;  %3577 = vmatprep.mubr.bf16.mxu1 %v2430_v54  ;;  %v2345_v9 = vmax.f32 %v3634_v42, 0.0 }
 0x282   :  { %v2347_v1 = vmax.f32 %v3635_v45, 0.0 }
 0x283   :  { %v2348_v7 = vmax.f32 %v3636_v24, 0.0  ;;  %v2227_v13 = vadd.f32 %v3348_v6, %v2066_v56  ;;  %v2346_v29 = vmax.f32 %v2224_v44, 0.0 }
 0x284   :  { %v2431_v49 = vpack.c.bf16 %v2347_v1, %v2344_v33 }
 0x285   :  { %v2432_v52 = vpack.c.bf16 %v2348_v7, %v2345_v9  ;;  %v2349_v41 = vmax.f32 %v2227_v13, 0.0  ;;  %v1885_v26 = vpop.f32.mrb[64].mxu0  ;;  %v3349_v23 = vpop.f32.mrb[160].mxu1  ;;  %v2079_v9 = vadd.f32 %v4678_v15, %v4731_v17 }
 0x286   :  { %v3637_v30 = vadd.f32 %v1885_v26, %v4727_v57  ;;  %v1887_v51 = vpop.f32.mrb[65].mxu0  ;;  %v3350_v37 = vpop.f32.mrb[161].mxu1 }
 0x287   :  { %v3638_v19 = vadd.f32 %v1887_v51, %v4735_v46  ;;  %v3351_v40 = vadd.f32 %v3350_v37, %v3349_v23  ;;  %v1889_v28 = vpop.f32.mrb[66].mxu0  ;;  %v3352_v25 = vpop.f32.mrb[162].mxu1  ;;  %2725 = vmatprep.mubr.bf16.mxu0 %v2432_v52  ;;  %v2433_v10 = vpack.c.bf16 %v2349_v41, %v2346_v29 }
 0x288   :  { %v3639_v14 = vadd.f32 %v1889_v28, %v4727_v57  ;;  %v1891_v47 = vpop.f32.mrb[67].mxu0  ;;  %v3353_v27 = vpop.f32.mrb[163].mxu1  ;;  %2726 = vmatmul.mubr.bf16.gmra.mrb[124].mxu0 %v2431_v49  ;;  %v2350_v4 = vmax.f32 %v3637_v30, 0.0  ;;  %v2082_v30 = vadd.f32 %v4680_v55, %v4731_v17 }
 0x289   :  { %v2232_v5 = vadd.f32 %v3351_v40, %v2071_v36  ;;  %v3640_v42 = vadd.f32 %v1891_v47, %v4735_v46  ;;  %v3354_v43 = vadd.f32 %v3353_v27, %v3352_v25  ;;  %3578 = vmatmul.mubr.bf16.gmra.mrb[212].mxu1 %v2433_v10  ;;  %v2351_v0 = vmax.f32 %v3638_v19, 0.0 }
 0x28a   :  { %v2353_v58 = vmax.f32 %v3639_v14, 0.0 }
 0x28b   :  { %v2354_v54 = vmax.f32 %v3640_v42, 0.0  ;;  %v2235_v45 = vadd.f32 %v3354_v43, %v2074_v31  ;;  %v2352_v11 = vmax.f32 %v2232_v5, 0.0 }
 0x28c   :  { %v2434_v18 = vpack.c.bf16 %v2353_v58, %v2350_v4  ;;  %v2087_v4 = vadd.f32 %v4682_v61, %v4731_v17 }
 0x28d   :  { %v2435_v56 = vpack.c.bf16 %v2354_v54, %v2351_v0  ;;  %v2355_v44 = vmax.f32 %v2235_v45, 0.0  ;;  %v1895_v24 = vpop.f32.mrb[68].mxu0  ;;  %v3355_v6 = vpop.f32.mrb[164].mxu1 }
 0x28e   :  { %v3641_v33 = vadd.f32 %v1895_v24, %v4727_v57  ;;  %v1897_v1 = vpop.f32.mrb[69].mxu0  ;;  %v3356_v48 = vpop.f32.mrb[165].mxu1  ;;  %v2090_v24 = vadd.f32 %v4684_v3, %v4731_v17 }
 0x28f   :  { %v3642_v7 = vadd.f32 %v1897_v1, %v4735_v46  ;;  %v3357_v13 = vadd.f32 %v3356_v48, %v3355_v6  ;;  %v1899_v49 = vpop.f32.mrb[70].mxu0  ;;  %v3358_v29 = vpop.f32.mrb[166].mxu1  ;;  %2733 = vmatprep.mubr.bf16.mxu0 %v2435_v56  ;;  %v2436_v52 = vpack.c.bf16 %v2355_v44, %v2352_v11 }
 0x290   :  { %v3643_v41 = vadd.f32 %v1899_v49, %v4727_v57  ;;  %v1901_v26 = vpop.f32.mrb[71].mxu0  ;;  %v3359_v23 = vpop.f32.mrb[167].mxu1  ;;  %2734 = vmatmul.mubr.bf16.gmra.mrb[128].mxu0 %v2434_v18  ;;  %v2356_v15 = vmax.f32 %v3641_v33, 0.0 }
 0x291   :  { %v2240_v51 = vadd.f32 %v3357_v13, %v2079_v9  ;;  %v3644_v37 = vadd.f32 %v1901_v26, %v4735_v46  ;;  %v3360_v36 = vadd.f32 %v3359_v23, %v3358_v29  ;;  %3581 = vmatprep.mubr.bf16.mxu1 %v2436_v52  ;;  %v2357_v40 = vmax.f32 %v3642_v7, 0.0 }
 0x292   :  { %v2359_v19 = vmax.f32 %v3643_v41, 0.0 }
 0x293   :  { %v2360_v28 = vmax.f32 %v3644_v37, 0.0  ;;  %v2243_v25 = vadd.f32 %v3360_v36, %v2082_v30  ;;  %v2358_v14 = vmax.f32 %v2240_v51, 0.0  ;;  %v2095_v37 = vadd.f32 %v4686_v2, %v4731_v17 }
 0x294   :  { %v2437_v10 = vpack.c.bf16 %v2359_v19, %v2356_v15 }
 0x295   :  { %v2438_v47 = vpack.c.bf16 %v2360_v28, %v2357_v40  ;;  %v2361_v27 = vmax.f32 %v2243_v25, 0.0  ;;  %v1905_v31 = vpop.f32.mrb[72].mxu0  ;;  %v3361_v5 = vpop.f32.mrb[168].mxu1 }
 0x296   :  { %v3645_v42 = vadd.f32 %v1905_v31, %v4727_v57  ;;  %v1907_v43 = vpop.f32.mrb[73].mxu0  ;;  %v3362_v55 = vpop.f32.mrb[169].mxu1 }
 0x297   :  { %v3646_v58 = vadd.f32 %v1907_v43, %v4735_v46  ;;  %v3363_v0 = vadd.f32 %v3362_v55, %v3361_v5  ;;  %v1909_v54 = vpop.f32.mrb[74].mxu0  ;;  %v3364_v45 = vpop.f32.mrb[170].mxu1  ;;  %2741 = vmatprep.mubr.bf16.mxu0 %v2438_v47  ;;  %v2439_v18 = vpack.c.bf16 %v2361_v27, %v2358_v14  ;;  %v2098_v47 = vadd.f32 %v4688_v59, %v4731_v17 }
 0x298   :  { %v3647_v11 = vadd.f32 %v1909_v54, %v4727_v57  ;;  %v1911_v56 = vpop.f32.mrb[75].mxu0  ;;  %v3365_v44 = vpop.f32.mrb[171].mxu1  ;;  %2742 = vmatmul.mubr.bf16.gmra.mrb[132].mxu0 %v2437_v10  ;;  %v2362_v61 = vmax.f32 %v3645_v42, 0.0 }
 0x299   :  { %v2248_v6 = vadd.f32 %v3363_v0, %v2087_v4  ;;  %v3648_v33 = vadd.f32 %v1911_v56, %v4735_v46  ;;  %v3366_v1 = vadd.f32 %v3365_v44, %v3364_v45  ;;  %3582 = vmatmul.mubr.bf16.gmra.mrb[216].mxu1 %v2439_v18  ;;  %v2363_v9 = vmax.f32 %v3646_v58, 0.0 }
 0x29a   :  { %v2365_v48 = vmax.f32 %v3647_v11, 0.0 }
 0x29b   :  { %v2366_v7 = vmax.f32 %v3648_v33, 0.0  ;;  %v2251_v13 = vadd.f32 %v3366_v1, %v2090_v24  ;;  %v2364_v29 = vmax.f32 %v2248_v6, 0.0  ;;  %v2103_v24 = vadd.f32 %v4690_v20, %v4731_v17 }
 0x29c   :  { %v2440_v49 = vpack.c.bf16 %v2365_v48, %v2362_v61 }
 0x29d   :  { %v2441_v52 = vpack.c.bf16 %v2366_v7, %v2363_v9  ;;  %v2367_v41 = vmax.f32 %v2251_v13, 0.0  ;;  %v1915_v26 = vpop.f32.mrb[76].mxu0  ;;  %v3367_v23 = vpop.f32.mrb[172].mxu1 }
 0x29e   :  { %v3649_v30 = vadd.f32 %v1915_v26, %v4727_v57  ;;  %v1917_v51 = vpop.f32.mrb[77].mxu0  ;;  %v3368_v3 = vpop.f32.mrb[173].mxu1 }
 0x29f   :  { %v3650_v36 = vadd.f32 %v1917_v51, %v4735_v46  ;;  %v3369_v15 = vadd.f32 %v3368_v3, %v3367_v23  ;;  %v1919_v19 = vpop.f32.mrb[78].mxu0  ;;  %v3370_v40 = vpop.f32.mrb[174].mxu1  ;;  %2749 = vmatprep.mubr.bf16.mxu0 %v2441_v52  ;;  %v2442_v28 = vpack.c.bf16 %v2367_v41, %v2364_v29 }
 0x2a0   :  { %v3651_v25 = vadd.f32 %v1919_v19, %v4727_v57  ;;  %v1921_v10 = vpop.f32.mrb[79].mxu0  ;;  %v3371_v14 = vpop.f32.mrb[175].mxu1  ;;  %2750 = vmatmul.mubr.bf16.gmra.mrb[136].mxu0 %v2440_v49  ;;  %v2368_v2 = vmax.f32 %v3649_v30, 0.0  ;;  %v2106_v49 = vadd.f32 %v4692_v12, %v4731_v17 }
 0x2a1   :  { %v2256_v27 = vadd.f32 %v3369_v15, %v2095_v37  ;;  %v3652_v31 = vadd.f32 %v1921_v10, %v4735_v46  ;;  %v3372_v5 = vadd.f32 %v3371_v14, %v3370_v40  ;;  %3585 = vmatprep.mubr.bf16.mxu1 %v2442_v28  ;;  %v2369_v43 = vmax.f32 %v3650_v36, 0.0 }
 0x2a2   :  { %v2371_v42 = vmax.f32 %v3651_v25, 0.0  ;;  %v2111_v10 = vadd.f32 %v4694_v16, %v4731_v17 }
 0x2a3   :  { %v2372_v55 = vmax.f32 %v3652_v31, 0.0  ;;  %v2259_v4 = vadd.f32 %v3372_v5, %v2098_v47  ;;  %v2370_v0 = vmax.f32 %v2256_v27, 0.0 }
 0x2a4   :  { %v2443_v58 = vpack.c.bf16 %v2371_v42, %v2368_v2 }
 0x2a5   :  { %v2444_v54 = vpack.c.bf16 %v2372_v55, %v2369_v43  ;;  %v2373_v45 = vmax.f32 %v2259_v4, 0.0  ;;  %v1925_v18 = vpop.f32.mrb[80].mxu0  ;;  %v3373_v11 = vpop.f32.mrb[176].mxu1  ;;  %v2114_v55 = vadd.f32 %v4696_v63, %v4731_v17 }
 0x2a6   :  { %v3653_v56 = vadd.f32 %v1925_v18, %v4727_v57  ;;  %v1927_v44 = vpop.f32.mrb[81].mxu0  ;;  %v3374_v59 = vpop.f32.mrb[177].mxu1 }
 0x2a7   :  { %v3654_v6 = vadd.f32 %v1927_v44, %v4735_v46  ;;  %v3375_v33 = vadd.f32 %v3374_v59, %v3373_v11  ;;  %v1929_v1 = vpop.f32.mrb[82].mxu0  ;;  %v3376_v61 = vpop.f32.mrb[178].mxu1  ;;  %2757 = vmatprep.mubr.bf16.mxu0 %v2444_v54  ;;  %v2445_v48 = vpack.c.bf16 %v2373_v45, %v2370_v0 }
 0x2a8   :  { %v3655_v9 = vadd.f32 %v1929_v1, %v4727_v57  ;;  %v1931_v7 = vpop.f32.mrb[83].mxu0  ;;  %v3377_v13 = vpop.f32.mrb[179].mxu1  ;;  %2758 = vmatmul.mubr.bf16.gmra.mrb[140].mxu0 %v2443_v58  ;;  %v2374_v20 = vmax.f32 %v3653_v56, 0.0 }
 0x2a9   :  { %v2264_v29 = vadd.f32 %v3375_v33, %v2103_v24  ;;  %v3656_v52 = vadd.f32 %v1931_v7, %v4735_v46  ;;  %v3378_v41 = vadd.f32 %v3377_v13, %v3376_v61  ;;  %3586 = vmatmul.mubr.bf16.gmra.mrb[220].mxu1 %v2445_v48  ;;  %v2375_v23 = vmax.f32 %v3654_v6, 0.0 }
 0x2aa   :  { %v2377_v26 = vmax.f32 %v3655_v9, 0.0  ;;  %v2119_v48 = vadd.f32 %v4698_v8, %v4731_v17 }
 0x2ab   :  { %v2378_v30 = vmax.f32 %v3656_v52, 0.0  ;;  %v2267_v51 = vadd.f32 %v3378_v41, %v2106_v49  ;;  %v2376_v37 = vmax.f32 %v2264_v29, 0.0 }
 0x2ac   :  { %v2446_v3 = vpack.c.bf16 %v2377_v26, %v2374_v20  ;;  %v2122_v26 = vadd.f32 %v4700_v32, %v4731_v17 }
 0x2ad   :  { %v2447_v36 = vpack.c.bf16 %v2378_v30, %v2375_v23  ;;  %v2379_v15 = vmax.f32 %v2267_v51, 0.0  ;;  %v1935_v19 = vpop.f32.mrb[84].mxu0  ;;  %v3379_v40 = vpop.f32.mrb[180].mxu1 }
 0x2ae   :  { %v3657_v28 = vadd.f32 %v1935_v19, %v4727_v57  ;;  %v1937_v25 = vpop.f32.mrb[85].mxu0  ;;  %v3380_v12 = vpop.f32.mrb[181].mxu1 }
 0x2af   :  { %v3658_v14 = vadd.f32 %v1937_v25, %v4735_v46  ;;  %v3381_v47 = vadd.f32 %v3380_v12, %v3379_v40  ;;  %v1939_v27 = vpop.f32.mrb[86].mxu0  ;;  %v3382_v31 = vpop.f32.mrb[182].mxu1  ;;  %2765 = vmatprep.mubr.bf16.mxu0 %v2447_v36  ;;  %v2448_v5 = vpack.c.bf16 %v2379_v15, %v2376_v37 }
 0x2b0   :  { %v3659_v2 = vadd.f32 %v1939_v27, %v4727_v57  ;;  %v1941_v42 = vpop.f32.mrb[87].mxu0  ;;  %v3383_v43 = vpop.f32.mrb[183].mxu1  ;;  %2766 = vmatmul.mubr.bf16.gmra.mrb[144].mxu0 %v2446_v3  ;;  %v2380_v16 = vmax.f32 %v3657_v28, 0.0  ;;  %v2127_v27 = vadd.f32 %v4702_v21, %v4731_v17 }
 0x2b1   :  { %v2272_v4 = vadd.f32 %v3381_v47, %v2111_v10  ;;  %v3660_v58 = vadd.f32 %v1941_v42, %v4735_v46  ;;  %v3384_v0 = vadd.f32 %v3383_v43, %v3382_v31  ;;  %3589 = vmatprep.mubr.bf16.mxu1 %v2448_v5  ;;  %v2381_v45 = vmax.f32 %v3658_v14, 0.0 }
 0x2b2   :  { %v2383_v54 = vmax.f32 %v3659_v2, 0.0 }
 0x2b3   :  { %v2384_v18 = vmax.f32 %v3660_v58, 0.0  ;;  %v2275_v11 = vadd.f32 %v3384_v0, %v2114_v55  ;;  %v2382_v44 = vmax.f32 %v2272_v4, 0.0  ;;  %v2130_v0 = vadd.f32 %v4704_v22, %v4731_v17 }
 0x2b4   :  { %v2449_v56 = vpack.c.bf16 %v2383_v54, %v2380_v16 }
 0x2b5   :  { %v2450_v59 = vpack.c.bf16 %v2384_v18, %v2381_v45  ;;  %v2385_v24 = vmax.f32 %v2275_v11, 0.0  ;;  %v1945_v6 = vpop.f32.mrb[88].mxu0  ;;  %v3385_v33 = vpop.f32.mrb[184].mxu1 }
 0x2b6   :  { %v3661_v1 = vadd.f32 %v1945_v6, %v4727_v57  ;;  %v1947_v61 = vpop.f32.mrb[89].mxu0  ;;  %v3386_v63 = vpop.f32.mrb[185].mxu1 }
 0x2b7   :  { %v3662_v9 = vadd.f32 %v1947_v61, %v4735_v46  ;;  %v3387_v7 = vadd.f32 %v3386_v63, %v3385_v33  ;;  %v1949_v13 = vpop.f32.mrb[90].mxu0  ;;  %v3388_v49 = vpop.f32.mrb[186].mxu1  ;;  %2773 = vmatprep.mubr.bf16.mxu0 %v2450_v59  ;;  %v2451_v29 = vpack.c.bf16 %v2385_v24, %v2382_v44 }
 0x2b8   :  { %v3663_v52 = vadd.f32 %v1949_v13, %v4727_v57  ;;  %v1951_v41 = vpop.f32.mrb[91].mxu0  ;;  %v3389_v20 = vpop.f32.mrb[187].mxu1  ;;  %2774 = vmatmul.mubr.bf16.gmra.mrb[148].mxu0 %v2449_v56  ;;  %v2386_v8 = vmax.f32 %v3661_v1, 0.0 }
 0x2b9   :  { %v2280_v23 = vadd.f32 %v3387_v7, %v2119_v48  ;;  %v3664_v30 = vadd.f32 %v1951_v41, %v4735_v46  ;;  %v3390_v51 = vadd.f32 %v3389_v20, %v3388_v49  ;;  %3590 = vmatmul.mubr.bf16.gmra.mrb[224].mxu1 %v2451_v29  ;;  %v2387_v37 = vmax.f32 %v3662_v9, 0.0 }
 0x2ba   :  { %v2389_v3 = vmax.f32 %v3663_v52, 0.0  ;;  %v2135_v9 = vadd.f32 %v4706_v35, %v4731_v17 }
 0x2bb   :  { %v2390_v36 = vmax.f32 %v3664_v30, 0.0  ;;  %v2283_v15 = vadd.f32 %v3390_v51, %v2122_v26  ;;  %v2388_v40 = vmax.f32 %v2280_v23, 0.0  ;;  %v2138_v23 = vadd.f32 %v4708_v38, %v4731_v17 }
 0x2bc   :  { %v2452_v19 = vpack.c.bf16 %v2389_v3, %v2386_v8 }
 0x2bd   :  { %v2453_v28 = vpack.c.bf16 %v2390_v36, %v2387_v37  ;;  %v2391_v25 = vmax.f32 %v2283_v15, 0.0  ;;  %v1955_v12 = vpop.f32.mrb[92].mxu0  ;;  %v3391_v10 = vpop.f32.mrb[188].mxu1 }
 0x2be   :  { %v3665_v14 = vadd.f32 %v1955_v12, %v4727_v57  ;;  %v1957_v47 = vpop.f32.mrb[93].mxu0  ;;  %v3392_v32 = vpop.f32.mrb[189].mxu1 }
 0x2bf   :  { %v3666_v31 = vadd.f32 %v1957_v47, %v4735_v46  ;;  %v3393_v5 = vadd.f32 %v3392_v32, %v3391_v10  ;;  %v1959_v2 = vpop.f32.mrb[94].mxu0  ;;  %v3394_v42 = vpop.f32.mrb[190].mxu1  ;;  %2781 = vmatprep.mubr.bf16.mxu0 %v2453_v28  ;;  %v2454_v43 = vpack.c.bf16 %v2391_v25, %v2388_v40  ;;  %v2143_v32 = vadd.f32 %v4710_v50, %v4731_v17 }
 0x2c0   :  { %v3667_v55 = vadd.f32 %v1959_v2, %v4727_v57  ;;  %v1961_v4 = vpop.f32.mrb[95].mxu0  ;;  %v3395_v58 = vpop.f32.mrb[191].mxu1  ;;  %2782 = vmatmul.mubr.bf16.gmra.mrb[152].mxu0 %v2452_v19  ;;  %v2392_v21 = vmax.f32 %v3665_v14, 0.0 }
 0x2c1   :  { %v2288_v16 = vadd.f32 %v3393_v5, %v2127_v27  ;;  %v3668_v54 = vadd.f32 %v1961_v4, %v4735_v46  ;;  %v3396_v45 = vadd.f32 %v3395_v58, %v3394_v42  ;;  %3593 = vmatprep.mubr.bf16.mxu1 %v2454_v43  ;;  %v2393_v11 = vmax.f32 %v3666_v31, 0.0 }
 0x2c2   :  { %v2395_v18 = vmax.f32 %v3667_v55, 0.0  ;;  %v2146_v58 = vadd.f32 %v4712_v53, %v4731_v17 }
 0x2c3   :  { %v2396_v56 = vmax.f32 %v3668_v54, 0.0  ;;  %v2291_v44 = vadd.f32 %v3396_v45, %v2130_v0  ;;  %v2394_v24 = vmax.f32 %v2288_v16, 0.0 }
 0x2c4   :  { %v2455_v59 = vpack.c.bf16 %v2395_v18, %v2392_v21 }
 0x2c5   :  { %v2456_v6 = vpack.c.bf16 %v2396_v56, %v2393_v11  ;;  %v2397_v33 = vmax.f32 %v2291_v44, 0.0  ;;  %v1965_v1 = vpop.f32.mrb[96].mxu0  ;;  %v3397_v61 = vpop.f32.mrb[192].mxu1 }
 0x2c6   :  { %v3669_v63 = vadd.f32 %v1965_v1, %v4727_v57  ;;  %v1967_v48 = vpop.f32.mrb[97].mxu0  ;;  %v3398_v22 = vpop.f32.mrb[193].mxu1 }
 0x2c7   :  { %v3670_v7 = vadd.f32 %v1967_v48, %v4735_v46  ;;  %v3399_v13 = vadd.f32 %v3398_v22, %v3397_v61  ;;  %v1969_v49 = vpop.f32.mrb[98].mxu0  ;;  %v3400_v29 = vpop.f32.mrb[194].mxu1  ;;  %2789 = vmatprep.mubr.bf16.mxu0 %v2456_v6  ;;  %v2457_v52 = vpack.c.bf16 %v2397_v33, %v2394_v24 }
 0x2c8   :  { %v3671_v41 = vadd.f32 %v1969_v49, %v4727_v57  ;;  %v1971_v20 = vpop.f32.mrb[99].mxu0  ;;  %v3401_v26 = vpop.f32.mrb[195].mxu1  ;;  %2790 = vmatmul.mubr.bf16.gmra.mrb[156].mxu0 %v2455_v59  ;;  %v2398_v35 = vmax.f32 %v3669_v63, 0.0  ;;  %v2151_v63 = vadd.f32 %v4714_v62, %v4731_v17 }
 0x2c9   :  { %v2296_v30 = vadd.f32 %v3399_v13, %v2135_v9  ;;  %v3672_v51 = vadd.f32 %v1971_v20, %v4735_v46  ;;  %v3402_v8 = vadd.f32 %v3401_v26, %v3400_v29  ;;  %3594 = vmatmul.mubr.bf16.gmra.mrb[228].mxu1 %v2457_v52  ;;  %v2399_v37 = vmax.f32 %v3670_v7, 0.0 }
 0x2ca   :  { %v2401_v3 = vmax.f32 %v3671_v41, 0.0  ;;  %v2154_v41 = vadd.f32 %v4716_v60, %v4731_v17 }
 0x2cb   :  { %v2402_v36 = vmax.f32 %v3672_v51, 0.0  ;;  %v2299_v15 = vadd.f32 %v3402_v8, %v2138_v23  ;;  %v2400_v40 = vmax.f32 %v2296_v30, 0.0 }
 0x2cc   :  { %v2458_v19 = vpack.c.bf16 %v2401_v3, %v2398_v35 }
 0x2cd   :  { %v2459_v28 = vpack.c.bf16 %v2402_v36, %v2399_v37  ;;  %v2403_v25 = vmax.f32 %v2299_v15, 0.0  ;;  %v1975_v12 = vpop.f32.mrb[100].mxu0  ;;  %v3403_v10 = vpop.f32.mrb[196].mxu1 }
 0x2ce   :  { %v3673_v14 = vadd.f32 %v1975_v12, %v4727_v57  ;;  %v1977_v47 = vpop.f32.mrb[101].mxu0  ;;  %v3404_v38 = vpop.f32.mrb[197].mxu1  ;;  %v2159_v12 = vadd.f32 %v4718_v39, %v4731_v17 }
 0x2cf   :  { %v3674_v27 = vadd.f32 %v1977_v47, %v4735_v46  ;;  %v3405_v31 = vadd.f32 %v3404_v38, %v3403_v10  ;;  %v1979_v5 = vpop.f32.mrb[102].mxu0  ;;  %v3406_v2 = vpop.f32.mrb[198].mxu1  ;;  %2797 = vmatprep.mubr.bf16.mxu0 %v2459_v28  ;;  %v2460_v42 = vpack.c.bf16 %v2403_v25, %v2400_v40 }
 0x2d0   :  { %v3675_v43 = vadd.f32 %v1979_v5, %v4727_v57  ;;  %v1981_v55 = vpop.f32.mrb[103].mxu0  ;;  %v3407_v4 = vpop.f32.mrb[199].mxu1  ;;  %2798 = vmatmul.mubr.bf16.gmra.mrb[160].mxu0 %v2458_v19  ;;  %v2404_v50 = vmax.f32 %v3673_v14, 0.0 }
 0x2d1   :  { %v2304_v0 = vadd.f32 %v3405_v31, %v2143_v32  ;;  %v3676_v16 = vadd.f32 %v1981_v55, %v4735_v46  ;;  %v3408_v54 = vadd.f32 %v3407_v4, %v3406_v2  ;;  %3597 = vmatprep.mubr.bf16.mxu1 %v2460_v42  ;;  %v2405_v21 = vmax.f32 %v3674_v27, 0.0 }
 0x2d2   :  { %v2407_v45 = vmax.f32 %v3675_v43, 0.0  ;;  %v2162_v2 = vadd.f32 %v4723_v34, %v4731_v17 }
 0x2d3   :  { %v2408_v18 = vmax.f32 %v3676_v16, 0.0  ;;  %v2307_v11 = vadd.f32 %v3408_v54, %v2146_v58  ;;  %v2406_v44 = vmax.f32 %v2304_v0, 0.0 }
 0x2d4   :  { %v2461_v56 = vpack.c.bf16 %v2407_v45, %v2404_v50 }
 0x2d5   :  { %v2462_v59 = vpack.c.bf16 %v2408_v18, %v2405_v21  ;;  %v2409_v24 = vmax.f32 %v2307_v11, 0.0  ;;  %v1985_v6 = vpop.f32.mrb[104].mxu0  ;;  %v3409_v33 = vpop.f32.mrb[200].mxu1 }
 0x2d6   :  { %v3677_v1 = vadd.f32 %v1985_v6, %v4727_v57  ;;  %v1987_v61 = vpop.f32.mrb[105].mxu0  ;;  %v3410_v53 = vpop.f32.mrb[201].mxu1 }
 0x2d7   :  { %v3678_v48 = vadd.f32 %v1987_v61, %v4735_v46  ;;  %v3411_v22 = vadd.f32 %v3410_v53, %v3409_v33  ;;  %v1989_v9 = vpop.f32.mrb[106].mxu0  ;;  %v3412_v7 = vpop.f32.mrb[202].mxu1  ;;  %2805 = vmatprep.mubr.bf16.mxu0 %v2462_v59  ;;  %v2463_v13 = vpack.c.bf16 %v2409_v24, %v2406_v44  ;;  %v4868_v44 = vld [vmem:[%s5004_s6] ss:$0 sm:$0xff] }
 0x2d8   :  { %v3679_v49 = vadd.f32 %v1989_v9, %v4727_v57  ;;  %v1991_v29 = vpop.f32.mrb[107].mxu0  ;;  %v3413_v52 = vpop.f32.mrb[203].mxu1  ;;  %2806 = vmatmul.mubr.bf16.gmra.mrb[164].mxu0 %v2461_v56  ;;  %v2410_v62 = vmax.f32 %v3677_v1, 0.0 }
 0x2d9   :  { %v2312_v20 = vadd.f32 %v3411_v22, %v2151_v63  ;;  %v3680_v26 = vadd.f32 %v1991_v29, %v4735_v46  ;;  %v3414_v23 = vadd.f32 %v3413_v52, %v3412_v7  ;;  %3598 = vmatmul.mubr.bf16.gmra.mrb[232].mxu1 %v2463_v13  ;;  %v2411_v51 = vmax.f32 %v3678_v48, 0.0 }
 0x2da   :  { %v2413_v30 = vmax.f32 %v3679_v49, 0.0 }
 0x2db   :  { %v2414_v8 = vmax.f32 %v3680_v26, 0.0  ;;  %v2315_v35 = vadd.f32 %v3414_v23, %v2154_v41  ;;  %v2412_v37 = vmax.f32 %v2312_v20, 0.0 }
 0x2dc   :  { %v2464_v3 = vpack.c.bf16 %v2413_v30, %v2410_v62 }
 0x2dd   :  { %v2465_v36 = vpack.c.bf16 %v2414_v8, %v2411_v51  ;;  %v2415_v15 = vmax.f32 %v2315_v35, 0.0  ;;  %v1995_v19 = vpop.f32.mrb[108].mxu0  ;;  %v3415_v40 = vpop.f32.mrb[204].mxu1 }
 0x2de   :  { %v3681_v28 = vadd.f32 %v1995_v19, %v4727_v57  ;;  %v1997_v25 = vpop.f32.mrb[109].mxu0  ;;  %v3416_v60 = vpop.f32.mrb[205].mxu1 }
 0x2df   :  { %v3682_v10 = vadd.f32 %v1997_v25, %v4735_v46  ;;  %v3417_v14 = vadd.f32 %v3416_v60, %v3415_v40  ;;  %v1999_v47 = vpop.f32.mrb[110].mxu0  ;;  %v3418_v38 = vpop.f32.mrb[206].mxu1  ;;  %2813 = vmatprep.mubr.bf16.mxu0 %v2465_v36  ;;  %v2466_v32 = vpack.c.bf16 %v2415_v15, %v2412_v37 }
 0x2e0   :  { %v3683_v27 = vadd.f32 %v1999_v47, %v4727_v57  ;;  %v2001_v31 = vpop.f32.mrb[111].mxu0  ;;  %v3419_v5 = vpop.f32.mrb[207].mxu1  ;;  %2814 = vmatmul.mubr.bf16.gmra.mrb[168].mxu0 %v2464_v3  ;;  %v2416_v39 = vmax.f32 %v3681_v28, 0.0 }
 0x2e1   :  { %v2320_v42 = vadd.f32 %v3417_v14, %v2159_v12  ;;  %v3684_v43 = vadd.f32 %v2001_v31, %v4735_v46  ;;  %v3420_v55 = vadd.f32 %v3419_v5, %v3418_v38  ;;  %3601 = vmatprep.mubr.bf16.mxu1 %v2466_v32  ;;  %v2417_v58 = vmax.f32 %v3682_v10, 0.0 }
 0x2e2   :  { %v2419_v4 = vmax.f32 %v3683_v27, 0.0 }
 0x2e3   :  { %v2420_v0 = vmax.f32 %v3684_v43, 0.0  ;;  %v2323_v16 = vadd.f32 %v3420_v55, %v2162_v2  ;;  %v2418_v50 = vmax.f32 %v2320_v42, 0.0 }
 0x2e4   :  { %v2467_v54 = vpack.c.bf16 %v2419_v4, %v2416_v39 }
 0x2e5   :  { %v2468_v45 = vpack.c.bf16 %v2420_v0, %v2417_v58  ;;  %v2421_v57 = vmax.f32 %v2323_v16, 0.0 }
 0x2e7   :  { %2821 = vmatprep.mubr.bf16.mxu0 %v2468_v45  ;;  %v2469_v21 = vpack.c.bf16 %v2421_v57, %v2418_v50 }
 0x2e8   :  { %2822 = vmatmul.mubr.bf16.gmra.mrb[172].mxu0 %v2467_v54 }
 0x2e9   :  { %3602 = vmatmul.mubr.bf16.gmra.mrb[236].mxu1 %v2469_v21 }
 0x343   :  { %v3437_v18 = vpop.f32.mrb[112].mxu0 }
 0x344   :  { %v3438_v34 = vpop.f32.mrb[113].mxu0 }
 0x345   :  { %v3439_v17 = vadd.f32 %v3438_v34, %v3437_v18  ;;  %v3440_v11 = vpop.f32.mrb[114].mxu0 }
 0x346   :  { %v3441_v46 = vpop.f32.mrb[115].mxu0 }
 0x347   :  { %v3442_v56 = vadd.f32 %v3441_v46, %v3440_v11  ;;  %v2704_v33 = vadd.f32 %v3439_v17, %v4868_v44 }
 0x349   :  { %v2707_v9 = vadd.f32 %v3442_v56, %v4868_v44 }
 0x34b   :  { %v3443_v59 = vpop.f32.mrb[116].mxu0 }
 0x34c   :  { %v3444_v24 = vpop.f32.mrb[117].mxu0  ;;  %v3575_v6 = vpop.f32.mrb[208].mxu1 }
 0x34d   :  { %v3445_v1 = vadd.f32 %v3444_v24, %v3443_v59  ;;  %v3446_v61 = vpop.f32.mrb[118].mxu0  ;;  %v2864_v53 = vpop.f32.mrb[209].mxu1 }
 0x34e   :  { %v2865_v63 = vadd.f32 %v2864_v53, %v2704_v33  ;;  %v3447_v48 = vpop.f32.mrb[119].mxu0  ;;  %v3576_v22 = vpop.f32.mrb[210].mxu1 }
 0x34f   :  { %v2712_v7 = vadd.f32 %v3445_v1, %v4868_v44  ;;  %v3448_v13 = vadd.f32 %v3447_v48, %v3446_v61  ;;  %v2867_v49 = vpop.f32.mrb[211].mxu1 }
 0x350   :  { %2991 = vst [vmem:[%s5005_s7] sm:$0xff] %v2865_v63  ;;  %v2868_v29 = vadd.f32 %v2867_v49, %v2707_v9 }
 0x351   :  { %v2873_v52 = vadd.f32 %v3575_v6, %v2712_v7  ;;  %v2715_v41 = vadd.f32 %v3448_v13, %v4868_v44 }
 0x352   :  { %2992 = vst [vmem:[%s5005_s7 + $0x8] sm:$0xff] %v2868_v29 }
 0x353   :  { %2993 = vst [vmem:[%s5005_s7 + $0x10] sm:$0xff] %v2873_v52  ;;  %v2876_v20 = vadd.f32 %v3576_v22, %v2715_v41  ;;  %v3449_v26 = vpop.f32.mrb[120].mxu0 }
 0x354   :  { %v3450_v23 = vpop.f32.mrb[121].mxu0 }
 0x355   :  { %2994 = vst [vmem:[%s5005_s7 + $0x18] sm:$0xff] %v2876_v20  ;;  %v3451_v62 = vadd.f32 %v3450_v23, %v3449_v26  ;;  %v3452_v30 = vpop.f32.mrb[122].mxu0 }
 0x356   :  { %v3453_v51 = vpop.f32.mrb[123].mxu0 }
 0x357   :  { %v3454_v8 = vadd.f32 %v3453_v51, %v3452_v30  ;;  %v2720_v36 = vadd.f32 %v3451_v62, %v4868_v44 }
 0x359   :  { %v2723_v12 = vadd.f32 %v3454_v8, %v4868_v44 }
 0x35b   :  { %v3455_v35 = vpop.f32.mrb[124].mxu0 }
 0x35c   :  { %v3456_v3 = vpop.f32.mrb[125].mxu0  ;;  %v3579_v37 = vpop.f32.mrb[212].mxu1 }
 0x35d   :  { %v3457_v15 = vadd.f32 %v3456_v3, %v3455_v35  ;;  %v3458_v19 = vpop.f32.mrb[126].mxu0  ;;  %v2880_v40 = vpop.f32.mrb[213].mxu1 }
 0x35e   :  { %v2881_v28 = vadd.f32 %v2880_v40, %v2720_v36  ;;  %v3459_v25 = vpop.f32.mrb[127].mxu0  ;;  %v3580_v60 = vpop.f32.mrb[214].mxu1 }
 0x35f   :  { %v2728_v10 = vadd.f32 %v3457_v15, %v4868_v44  ;;  %v3460_v14 = vadd.f32 %v3459_v25, %v3458_v19  ;;  %v2883_v47 = vpop.f32.mrb[215].mxu1 }
 0x360   :  { %2995 = vst [vmem:[%s5005_s7 + $0x20] sm:$0xff] %v2881_v28  ;;  %v2884_v38 = vadd.f32 %v2883_v47, %v2723_v12 }
 0x361   :  { %v2889_v32 = vadd.f32 %v3579_v37, %v2728_v10  ;;  %v2731_v27 = vadd.f32 %v3460_v14, %v4868_v44 }
 0x362   :  { %2996 = vst [vmem:[%s5005_s7 + $0x28] sm:$0xff] %v2884_v38 }
 0x363   :  { %2997 = vst [vmem:[%s5005_s7 + $0x30] sm:$0xff] %v2889_v32  ;;  %v2892_v31 = vadd.f32 %v3580_v60, %v2731_v27  ;;  %v3461_v5 = vpop.f32.mrb[128].mxu0 }
 0x364   :  { %v3462_v2 = vpop.f32.mrb[129].mxu0 }
 0x365   :  { %2998 = vst [vmem:[%s5005_s7 + $0x38] sm:$0xff] %v2892_v31  ;;  %v3463_v42 = vadd.f32 %v3462_v2, %v3461_v5  ;;  %v3464_v43 = vpop.f32.mrb[130].mxu0 }
 0x366   :  { %v3465_v55 = vpop.f32.mrb[131].mxu0 }
 0x367   :  { %v3466_v39 = vadd.f32 %v3465_v55, %v3464_v43  ;;  %v2736_v16 = vadd.f32 %v3463_v42, %v4868_v44 }
 0x369   :  { %v2739_v34 = vadd.f32 %v3466_v39, %v4868_v44 }
 0x36b   :  { %v3467_v4 = vpop.f32.mrb[132].mxu0 }
 0x36c   :  { %v3468_v58 = vpop.f32.mrb[133].mxu0  ;;  %v3583_v0 = vpop.f32.mrb[216].mxu1 }
 0x36d   :  { %v3469_v54 = vadd.f32 %v3468_v58, %v3467_v4  ;;  %v3470_v50 = vpop.f32.mrb[134].mxu0  ;;  %v2896_v45 = vpop.f32.mrb[217].mxu1 }
 0x36e   :  { %v2897_v57 = vadd.f32 %v2896_v45, %v2736_v16  ;;  %v3471_v21 = vpop.f32.mrb[135].mxu0  ;;  %v3584_v18 = vpop.f32.mrb[218].mxu1 }
 0x36f   :  { %v2744_v17 = vadd.f32 %v3469_v54, %v4868_v44  ;;  %v3472_v11 = vadd.f32 %v3471_v21, %v3470_v50  ;;  %v2899_v46 = vpop.f32.mrb[219].mxu1 }
 0x370   :  { %2999 = vst [vmem:[%s5005_s7 + $0x40] sm:$0xff] %v2897_v57  ;;  %v2900_v56 = vadd.f32 %v2899_v46, %v2739_v34 }
 0x371   :  { %v2905_v59 = vadd.f32 %v3583_v0, %v2744_v17  ;;  %v2747_v24 = vadd.f32 %v3472_v11, %v4868_v44 }
 0x372   :  { %3000 = vst [vmem:[%s5005_s7 + $0x48] sm:$0xff] %v2900_v56 }
 0x373   :  { %3001 = vst [vmem:[%s5005_s7 + $0x50] sm:$0xff] %v2905_v59  ;;  %v2908_v6 = vadd.f32 %v3584_v18, %v2747_v24  ;;  %v3473_v33 = vpop.f32.mrb[136].mxu0 }
 0x374   :  { %v3474_v1 = vpop.f32.mrb[137].mxu0 }
 0x375   :  { %3002 = vst [vmem:[%s5005_s7 + $0x58] sm:$0xff] %v2908_v6  ;;  %v3475_v61 = vadd.f32 %v3474_v1, %v3473_v33  ;;  %v3476_v53 = vpop.f32.mrb[138].mxu0 }
 0x376   :  { %v3477_v63 = vpop.f32.mrb[139].mxu0 }
 0x377   :  { %v3478_v48 = vadd.f32 %v3477_v63, %v3476_v53  ;;  %v2752_v13 = vadd.f32 %v3475_v61, %v4868_v44 }
 0x379   :  { %v2755_v23 = vadd.f32 %v3478_v48, %v4868_v44 }
 0x37b   :  { %v3479_v22 = vpop.f32.mrb[140].mxu0 }
 0x37c   :  { %v3480_v9 = vpop.f32.mrb[141].mxu0  ;;  %v3587_v7 = vpop.f32.mrb[220].mxu1 }
 0x37d   :  { %v3481_v49 = vadd.f32 %v3480_v9, %v3479_v22  ;;  %v3482_v29 = vpop.f32.mrb[142].mxu0  ;;  %v2912_v52 = vpop.f32.mrb[221].mxu1 }
 0x37e   :  { %v2913_v41 = vadd.f32 %v2912_v52, %v2752_v13  ;;  %v3483_v20 = vpop.f32.mrb[143].mxu0  ;;  %v3588_v26 = vpop.f32.mrb[222].mxu1 }
 0x37f   :  { %v2760_v62 = vadd.f32 %v3481_v49, %v4868_v44  ;;  %v3484_v30 = vadd.f32 %v3483_v20, %v3482_v29  ;;  %v2915_v51 = vpop.f32.mrb[223].mxu1 }
 0x380   :  { %3003 = vst [vmem:[%s5005_s7 + $0x60] sm:$0xff] %v2913_v41  ;;  %v2916_v8 = vadd.f32 %v2915_v51, %v2755_v23 }
 0x381   :  { %v2921_v35 = vadd.f32 %v3587_v7, %v2760_v62  ;;  %v2763_v3 = vadd.f32 %v3484_v30, %v4868_v44 }
 0x382   :  { %3004 = vst [vmem:[%s5005_s7 + $0x68] sm:$0xff] %v2916_v8 }
 0x383   :  { %3005 = vst [vmem:[%s5005_s7 + $0x70] sm:$0xff] %v2921_v35  ;;  %v2924_v37 = vadd.f32 %v3588_v26, %v2763_v3  ;;  %v3485_v36 = vpop.f32.mrb[144].mxu0 }
 0x384   :  { %v3486_v15 = vpop.f32.mrb[145].mxu0 }
 0x385   :  { %3006 = vst [vmem:[%s5005_s7 + $0x78] sm:$0xff] %v2924_v37  ;;  %v3487_v19 = vadd.f32 %v3486_v15, %v3485_v36  ;;  %v3488_v40 = vpop.f32.mrb[146].mxu0 }
 0x386   :  { %v3489_v28 = vpop.f32.mrb[147].mxu0 }
 0x387   :  { %v3490_v25 = vadd.f32 %v3489_v28, %v3488_v40  ;;  %v2768_v14 = vadd.f32 %v3487_v19, %v4868_v44 }
 0x389   :  { %v2771_v2 = vadd.f32 %v3490_v25, %v4868_v44 }
 0x38b   :  { %v3491_v60 = vpop.f32.mrb[148].mxu0 }
 0x38c   :  { %v3492_v12 = vpop.f32.mrb[149].mxu0  ;;  %v3591_v10 = vpop.f32.mrb[224].mxu1 }
 0x38d   :  { %v3493_v47 = vadd.f32 %v3492_v12, %v3491_v60  ;;  %v3494_v38 = vpop.f32.mrb[150].mxu0  ;;  %v2928_v32 = vpop.f32.mrb[225].mxu1 }
 0x38e   :  { %v2929_v27 = vadd.f32 %v2928_v32, %v2768_v14  ;;  %v3495_v31 = vpop.f32.mrb[151].mxu0  ;;  %v3592_v5 = vpop.f32.mrb[226].mxu1 }
 0x38f   :  { %v2776_v42 = vadd.f32 %v3493_v47, %v4868_v44  ;;  %v3496_v43 = vadd.f32 %v3495_v31, %v3494_v38  ;;  %v2931_v55 = vpop.f32.mrb[227].mxu1 }
 0x390   :  { %3007 = vst [vmem:[%s5005_s7 + $0x80] sm:$0xff] %v2929_v27  ;;  %v2932_v39 = vadd.f32 %v2931_v55, %v2771_v2 }
 0x391   :  { %v2937_v4 = vadd.f32 %v3591_v10, %v2776_v42  ;;  %v2779_v58 = vadd.f32 %v3496_v43, %v4868_v44 }
 0x392   :  { %3008 = vst [vmem:[%s5005_s7 + $0x88] sm:$0xff] %v2932_v39 }
 0x393   :  { %3009 = vst [vmem:[%s5005_s7 + $0x90] sm:$0xff] %v2937_v4  ;;  %v2940_v0 = vadd.f32 %v3592_v5, %v2779_v58  ;;  %v3497_v16 = vpop.f32.mrb[152].mxu0 }
 0x394   :  { %v3498_v54 = vpop.f32.mrb[153].mxu0 }
 0x395   :  { %3010 = vst [vmem:[%s5005_s7 + $0x98] sm:$0xff] %v2940_v0  ;;  %v3499_v50 = vadd.f32 %v3498_v54, %v3497_v16  ;;  %v3500_v45 = vpop.f32.mrb[154].mxu0 }
 0x396   :  { %v3501_v57 = vpop.f32.mrb[155].mxu0 }
 0x397   :  { %v3502_v21 = vadd.f32 %v3501_v57, %v3500_v45  ;;  %v2784_v11 = vadd.f32 %v3499_v50, %v4868_v44 }
 0x399   :  { %v2787_v1 = vadd.f32 %v3502_v21, %v4868_v44 }
 0x39b   :  { %v3503_v18 = vpop.f32.mrb[156].mxu0 }
 0x39c   :  { %v3504_v34 = vpop.f32.mrb[157].mxu0  ;;  %v3595_v17 = vpop.f32.mrb[228].mxu1 }
 0x39d   :  { %v3505_v46 = vadd.f32 %v3504_v34, %v3503_v18  ;;  %v3506_v56 = vpop.f32.mrb[158].mxu0  ;;  %v2944_v59 = vpop.f32.mrb[229].mxu1 }
 0x39e   :  { %v2945_v24 = vadd.f32 %v2944_v59, %v2784_v11  ;;  %v3507_v6 = vpop.f32.mrb[159].mxu0  ;;  %v3596_v33 = vpop.f32.mrb[230].mxu1 }
 0x39f   :  { %v2792_v61 = vadd.f32 %v3505_v46, %v4868_v44  ;;  %v3508_v53 = vadd.f32 %v3507_v6, %v3506_v56  ;;  %v2947_v63 = vpop.f32.mrb[231].mxu1 }
 0x3a0   :  { %3011 = vst [vmem:[%s5005_s7 + $0xa0] sm:$0xff] %v2945_v24  ;;  %v2948_v48 = vadd.f32 %v2947_v63, %v2787_v1 }
 0x3a1   :  { %v2953_v22 = vadd.f32 %v3595_v17, %v2792_v61  ;;  %v2795_v9 = vadd.f32 %v3508_v53, %v4868_v44 }
 0x3a2   :  { %3012 = vst [vmem:[%s5005_s7 + $0xa8] sm:$0xff] %v2948_v48 }
 0x3a3   :  { %3013 = vst [vmem:[%s5005_s7 + $0xb0] sm:$0xff] %v2953_v22  ;;  %v2956_v7 = vadd.f32 %v3596_v33, %v2795_v9  ;;  %v3509_v13 = vpop.f32.mrb[160].mxu0 }
 0x3a4   :  { %v3510_v49 = vpop.f32.mrb[161].mxu0 }
 0x3a5   :  { %3014 = vst [vmem:[%s5005_s7 + $0xb8] sm:$0xff] %v2956_v7  ;;  %v3511_v29 = vadd.f32 %v3510_v49, %v3509_v13  ;;  %v3512_v52 = vpop.f32.mrb[162].mxu0 }
 0x3a6   :  { %v3513_v41 = vpop.f32.mrb[163].mxu0 }
 0x3a7   :  { %v3514_v20 = vadd.f32 %v3513_v41, %v3512_v52  ;;  %v2800_v30 = vadd.f32 %v3511_v29, %v4868_v44 }
 0x3a9   :  { %v2803_v15 = vadd.f32 %v3514_v20, %v4868_v44 }
 0x3ab   :  { %v3515_v26 = vpop.f32.mrb[164].mxu0 }
 0x3ac   :  { %v3516_v23 = vpop.f32.mrb[165].mxu0  ;;  %v3599_v62 = vpop.f32.mrb[232].mxu1 }
 0x3ad   :  { %v3517_v51 = vadd.f32 %v3516_v23, %v3515_v26  ;;  %v3518_v8 = vpop.f32.mrb[166].mxu0  ;;  %v2960_v35 = vpop.f32.mrb[233].mxu1 }
 0x3ae   :  { %v2961_v3 = vadd.f32 %v2960_v35, %v2800_v30  ;;  %v3519_v37 = vpop.f32.mrb[167].mxu0  ;;  %v3600_v36 = vpop.f32.mrb[234].mxu1 }
 0x3af   :  { %v2808_v19 = vadd.f32 %v3517_v51, %v4868_v44  ;;  %v3520_v40 = vadd.f32 %v3519_v37, %v3518_v8  ;;  %v2963_v28 = vpop.f32.mrb[235].mxu1 }
 0x3b0   :  { %3015 = vst [vmem:[%s5005_s7 + $0xc0] sm:$0xff] %v2961_v3  ;;  %v2964_v25 = vadd.f32 %v2963_v28, %v2803_v15 }
 0x3b1   :  { %v2969_v60 = vadd.f32 %v3599_v62, %v2808_v19  ;;  %v2811_v12 = vadd.f32 %v3520_v40, %v4868_v44 }
 0x3b2   :  { %3016 = vst [vmem:[%s5005_s7 + $0xc8] sm:$0xff] %v2964_v25 }
 0x3b3   :  { %3017 = vst [vmem:[%s5005_s7 + $0xd0] sm:$0xff] %v2969_v60  ;;  %v2972_v10 = vadd.f32 %v3600_v36, %v2811_v12  ;;  %v3521_v14 = vpop.f32.mrb[168].mxu0 }
 0x3b4   :  { %v3522_v47 = vpop.f32.mrb[169].mxu0 }
 0x3b5   :  { %3018 = vst [vmem:[%s5005_s7 + $0xd8] sm:$0xff] %v2972_v10  ;;  %v3523_v38 = vadd.f32 %v3522_v47, %v3521_v14  ;;  %v3524_v32 = vpop.f32.mrb[170].mxu0 }
 0x3b6   :  { %v3525_v27 = vpop.f32.mrb[171].mxu0 }
 0x3b7   :  { %v3526_v31 = vadd.f32 %v3525_v27, %v3524_v32  ;;  %v2816_v43 = vadd.f32 %v3523_v38, %v4868_v44 }
 0x3b9   :  { %v2819_v54 = vadd.f32 %v3526_v31, %v4868_v44 }
 0x3bb   :  { %v3527_v5 = vpop.f32.mrb[172].mxu0 }
 0x3bc   :  { %v3528_v2 = vpop.f32.mrb[173].mxu0  ;;  %v3603_v42 = vpop.f32.mrb[236].mxu1 }
 0x3bd   :  { %v3529_v55 = vadd.f32 %v3528_v2, %v3527_v5  ;;  %v3530_v39 = vpop.f32.mrb[174].mxu0  ;;  %v2976_v4 = vpop.f32.mrb[237].mxu1 }
 0x3be   :  { %v2977_v58 = vadd.f32 %v2976_v4, %v2816_v43  ;;  %v3531_v0 = vpop.f32.mrb[175].mxu0  ;;  %v3604_v16 = vpop.f32.mrb[238].mxu1 }
 0x3bf   :  { %v2824_v50 = vadd.f32 %v3529_v55, %v4868_v44  ;;  %v3532_v45 = vadd.f32 %v3531_v0, %v3530_v39  ;;  %v2979_v57 = vpop.f32.mrb[239].mxu1 }
 0x3c0   :  { %3019 = vst [vmem:[%s5005_s7 + $0xe0] sm:$0xff] %v2977_v58  ;;  %v2980_v21 = vadd.f32 %v2979_v57, %v2819_v54 }
 0x3c1   :  { %v2985_v18 = vadd.f32 %v3603_v42, %v2824_v50  ;;  %v2827_v34 = vadd.f32 %v3532_v45, %v4868_v44 }
 0x3c2   :  { %3020 = vst [vmem:[%s5005_s7 + $0xe8] sm:$0xff] %v2980_v21 }
 0x3c3   :  { %3021 = vst [vmem:[%s5005_s7 + $0xf0] sm:$0xff] %v2985_v18  ;;  %v2988_v17 = vadd.f32 %v3604_v16, %v2827_v34 }
 0x3c5   :  { %3022 = vst [vmem:[%s5005_s7 + $0xf8] sm:$0xff] %v2988_v17 }
 0x3c6   :  { %3027 = vsyncpa [#allocation3], 1 }

</bundles_post_ra>
